<compile_context>
chip_gen: v7x
topology: tpu7x:2x2x1
jax: 0.10.0
libtpu: 0.0.40
codegen_flags: <defaults>
</compile_context>

<pallas_src>
import jax
import jax.numpy as jnp
import numpy as np
from jax.experimental import pallas as pl
from jax.experimental.pallas import tpu as pltpu

C = 256       # channel width of every conv layer
K = 3         # conv kernel size
N_CONV = 5    # number of conv layers


def _round_up(x, m):
    return ((x + m - 1) // m) * m


# ----------------------------- fused conv stack kernel -----------------------------
def _make_conv_stack_kernel(lin):
    """Fused 5x (Conv1d k=3, valid) + ReLU for input length `lin` (static)."""
    l1 = lin - (K - 1)              # length after conv1
    l5 = lin - N_CONV * (K - 1)     # length after conv5

    def kernel(x_ref, w1_ref, b1_ref, w_ref, b_ref, o_ref, buf_a, buf_b):
        # x_ref : (1, lin, 1)   input in (L, Cin=1) layout for this batch element
        # w1_ref: (K, C)        conv1 weight, w1[k, cout]
        # b1_ref: (1, C)        conv1 bias (lane-aligned)
        # w_ref : (4, K, C, C)  conv2..5 weights, w[layer, k, cin, cout]
        # b_ref : (4, 1, C)     conv2..5 biases
        # o_ref : (1, l5, C)    conv5 output, lane-dense (C last)
        # buf_a, buf_b: VMEM scratch ping-pong buffers, (round_up(l1, 8), C) f32

        # ---- conv1 (Cin == 1): VPU broadcast multiply-add, keeps the MXU free ----
        x = x_ref[0]                                    # (lin, 1)
        acc = jnp.zeros((l1, C), jnp.float32)
        for k in range(K):                              # static unroll
            acc = acc + x[k:k + l1, :] * w1_ref[k:k + 1, :]   # (l1,1)*(1,C) -> (l1,C)
        buf_a[0:l1, :] = jnp.maximum(acc + b1_ref[...], 0.0)

        # ---- conv2..conv5: per-tap MXU matmuls, 256-deep contraction, 256-wide out ----
        bufs = (buf_a, buf_b)
        src = 0
        l_prev = l1
        for layer in range(N_CONV - 1):                 # static unroll (4 layers)
            l_out = l_prev - (K - 1)
            acc = jnp.zeros((l_out, C), jnp.float32)
            for k in range(K):                          # static unroll (3 taps)
                acc = acc + jnp.dot(
                    bufs[src][k:k + l_out, :],          # (l_out, C) sublane-offset load
                    w_ref[layer, k],                    # (C, C)
                    preferred_element_type=jnp.float32,
                )
            h = jnp.maximum(acc + b_ref[layer], 0.0)    # bias (1, C) lane broadcast
            if layer == N_CONV - 2:
                o_ref[0] = h                            # final layer -> lane-dense output
            else:
                bufs[1 - src][0:l_out, :] = h
                src = 1 - src
            l_prev = l_out

    return kernel, l1, l5


def conv_stack(x_lc, w1_t, b1, w_stack, b_stack):
    """x_lc: (B, Lin, 1) f32 -> (B, L5, 256) f32 activations in (L, C) layout."""
    B, lin, _ = x_lc.shape
    kernel, l1, l5 = _make_conv_stack_kernel(lin)
    l_scr = _round_up(l1, 8)
    return pl.pallas_call(
        kernel,
        out_shape=jax.ShapeDtypeStruct((B, l5, C), jnp.float32),
        grid_spec=pltpu.PrefetchScalarGridSpec(
            num_scalar_prefetch=0,
            grid=(B,),
            in_specs=[
                pl.BlockSpec((1, lin, 1), lambda i: (i, 0, 0)),
                pl.BlockSpec((K, C), lambda i: (0, 0)),
                pl.BlockSpec((1, C), lambda i: (0, 0)),
                pl.BlockSpec((N_CONV - 1, K, C, C), lambda i: (0, 0, 0, 0)),
                pl.BlockSpec((N_CONV - 1, 1, C), lambda i: (0, 0, 0)),
            ],
            out_specs=pl.BlockSpec((1, l5, C), lambda i: (i, 0, 0)),
            scratch_shapes=[
                pltpu.VMEM((l_scr, C), jnp.float32),
                pltpu.VMEM((l_scr, C), jnp.float32),
            ],
        ),
        compiler_params=pltpu.CompilerParams(dimension_semantics=("parallel",)),
    )(x_lc, w1_t, b1, w_stack, b_stack)


# ----------------------------- Linear (fc) kernel -----------------------------
def _fc_kernel(x_ref, w_ref, b_ref, o_ref):
    # x_ref: (tn, 256)  w_ref: (256, 29) pre-transposed  b_ref: (1, 29)  o_ref: (tn, 29)
    o_ref[...] = (
        jnp.dot(x_ref[...], w_ref[...], preferred_element_type=jnp.float32)
        + b_ref[...]
    )


def linear(x, w_t, b):
    """x: (N, Din), w_t: (Din, Dout) pre-transposed, b: (Dout,) -> (N, Dout)."""
    N, Din = x.shape
    Dout = w_t.shape[1]
    tn = 256 if N >= 256 else N      # tile N; full-array block for small N
    return pl.pallas_call(
        _fc_kernel,
        out_shape=jax.ShapeDtypeStruct((N, Dout), jnp.float32),
        grid_spec=pltpu.PrefetchScalarGridSpec(
            num_scalar_prefetch=0,
            grid=(pl.cdiv(N, tn),),
            in_specs=[
                pl.BlockSpec((tn, Din), lambda i: (i, 0)),
                pl.BlockSpec((Din, Dout), lambda i: (0, 0)),
                pl.BlockSpec((1, Dout), lambda i: (0, 0)),
            ],
            out_specs=pl.BlockSpec((tn, Dout), lambda i: (i, 0)),
        ),
        compiler_params=pltpu.CompilerParams(dimension_semantics=("parallel",)),
    )(x, w_t, b.reshape(1, Dout))


# ----------------------------- QuartzNet forward -----------------------------
def quartznet_forward(x, params):
    # x: (B, 1, T) float32 in PyTorch NCL layout (matching nn.Conv1d(1, 256, 3) input).
    x_lc = jnp.transpose(x, (0, 2, 1))                    # (B, T, 1): L on sublanes
    h = conv_stack(
        x_lc,
        params["conv1_w_t"], params["conv1_b"],
        params["conv_w_stack"], params["conv_b_stack"],
    )                                                      # (B, L5, 256)
    # Reproduce PyTorch: x.view(-1, 256) on contiguous (B, 256, L5) (mixes C and L).
    h_ncl = jnp.transpose(h, (0, 2, 1))                    # (B, 256, L5)
    h_flat = jnp.reshape(h_ncl, (-1, C))
    return linear(h_flat, params["fc_w_t"], params["fc_b"])


# ----------------------------- params (torch layout + kernel packing) -----------------------------
def init_params(key):
    ks = jax.random.split(key, 12)
    params = {}
    cins = [1, 256, 256, 256, 256]
    for i, cin in enumerate(cins, start=1):
        fan_in = cin * 3
        bound = 1.0 / np.sqrt(fan_in)
        params[f"conv{i}_w"] = jax.random.uniform(
            ks[2 * (i - 1)], (256, cin, 3), jnp.float32, -bound, bound
        )
        params[f"conv{i}_b"] = jax.random.uniform(
            ks[2 * (i - 1) + 1], (256,), jnp.float32, -bound, bound
        )
    bound = 1.0 / np.sqrt(256.0)
    params["fc_w"] = jax.random.uniform(ks[10], (29, 256), jnp.float32, -bound, bound)
    params["fc_b"] = jax.random.uniform(ks[11], (29,), jnp.float32, -bound, bound)
    return params


def pack_params(p):
    """Reshape torch-layout weights into the lane-friendly layouts the kernels expect."""
    packed = {}
    # conv1: (256, 1, 3) -> (3, 256) with [k, cout]
    packed["conv1_w_t"] = jnp.transpose(p["conv1_w"], (2, 1, 0)).reshape(K, C)
    packed["conv1_b"] = p["conv1_b"].reshape(1, C)
    # conv2..5: (256, 256, 3) -> stacked (4, 3, 256, 256) with [layer, k, cin, cout]
    packed["conv_w_stack"] = jnp.stack(
        [jnp.transpose(p[f"conv{i}_w"], (2, 1, 0)) for i in range(2, 6)], axis=0
    )
    packed["conv_b_stack"] = jnp.stack(
        [p[f"conv{i}_b"].reshape(1, C) for i in range(2, 6)], axis=0
    )
    # fc: pre-transpose once (no in-kernel .T / XLU transpose)
    packed["fc_w_t"] = jnp.transpose(p["fc_w"], (1, 0))   # (256, 29)
    packed["fc_b"] = p["fc_b"]
    return packed


# ----------------------------- pure-JAX reference (for verification) -----------------------------
def _ref_forward(x, params):
    h = x
    for i in range(1, 6):
        w = params[f"conv{i}_w"]
        b = params[f"conv{i}_b"]
        Lout = h.shape[2] - 2
        acc = jnp.zeros((h.shape[0], 256, Lout), jnp.float32)
        for k in range(3):
            acc = acc + jnp.einsum("oc,bcl->bol", w[:, :, k], h[:, :, k:k + Lout])
        h = jnp.maximum(acc + b[None, :, None], 0.0)
    h = jnp.reshape(h, (-1, 256))
    return h @ params["fc_w"].T + params["fc_b"]


if __name__ == "__main__":
    key = jax.random.PRNGKey(0)
    pkey, xkey = jax.random.split(key)
    params_torch = init_params(pkey)
    params = pack_params(params_torch)

    # Small, valid input: B=2, 1 input channel, length 26 -> final conv length 16.
    x = jax.random.normal(xkey, (2, 1, 26), jnp.float32)

    out = jax.block_until_ready(quartznet_forward(x, params))
    ref = jax.block_until_ready(_ref_forward(x, params_torch))

    assert out.shape == (2 * 16, 29), out.shape
    np.testing.assert_allclose(np.asarray(out), np.asarray(ref), rtol=1e-5, atol=1e-5)
    print("KERNEL_OK")
</pallas_src>

<mosaic_0001>
module attributes {stable_mosaic.version = 11 : i64} {
  func.func @kernel(%arg0: i32, %arg1: memref<1x26x1xf32, #tpu.memory_space<vmem>>, %arg2: memref<3x256xf32, #tpu.memory_space<vmem>>, %arg3: memref<1x256xf32, #tpu.memory_space<vmem>>, %arg4: memref<4x3x256x256xf32, #tpu.memory_space<vmem>>, %arg5: memref<4x1x256xf32, #tpu.memory_space<vmem>>, %arg6: memref<1x16x256xf32, #tpu.memory_space<vmem>>, %arg7: memref<24x256xf32, #tpu.memory_space<vmem>>, %arg8: memref<24x256xf32, #tpu.memory_space<vmem>>) attributes {dimension_semantics = [#tpu.dimension_semantics<parallel>], iteration_bounds = array<i64: 2>, scalar_prefetch = 0 : i64, scratch_operands = 2 : i64, tpu.core_type = #tpu.core_type<tc>, window_params = [{transform_indices = @transform_0, window_bounds = array<i64: 1, 26, 1>}, {pipeline_mode = #tpu.pipeline_mode<synchronous>, transform_indices = @transform_1, window_bounds = array<i64: 3, 256>}, {pipeline_mode = #tpu.pipeline_mode<synchronous>, transform_indices = @transform_2, window_bounds = array<i64: 1, 256>}, {pipeline_mode = #tpu.pipeline_mode<synchronous>, transform_indices = @transform_3, window_bounds = array<i64: 4, 3, 256, 256>}, {pipeline_mode = #tpu.pipeline_mode<synchronous>, transform_indices = @transform_4, window_bounds = array<i64: 4, 1, 256>}, {transform_indices = @transform_5, window_bounds = array<i64: 1, 16, 256>}]} {
    %c0 = arith.constant 0 : index
    %c0_0 = arith.constant 0 : index
    %c0_1 = arith.constant 0 : index
    %0 = vector.load %arg1[%c0, %c0_0, %c0_1] : memref<1x26x1xf32, #tpu.memory_space<vmem>>, vector<1x26x1xf32>
    %1 = vector.shape_cast %0 : vector<1x26x1xf32> to vector<26x1xf32>
    %cst = arith.constant 0.000000e+00 : f32
    %2 = vector.broadcast %cst : f32 to vector<24x256xf32>
    %3 = vector.extract_strided_slice %1 {offsets = [0, 0], sizes = [24, 1], strides = [1, 1]} : vector<26x1xf32> to vector<24x1xf32>
    %c0_2 = arith.constant 0 : index
    %c0_3 = arith.constant 0 : index
    %4 = vector.load %arg2[%c0_2, %c0_3] : memref<3x256xf32, #tpu.memory_space<vmem>>, vector<1x256xf32>
    %5 = vector.broadcast %3 : vector<24x1xf32> to vector<24x256xf32>
    %6 = vector.broadcast %4 : vector<1x256xf32> to vector<24x256xf32>
    %7 = arith.mulf %5, %6 : vector<24x256xf32>
    %8 = arith.addf %2, %7 : vector<24x256xf32>
    %9 = vector.extract_strided_slice %1 {offsets = [1, 0], sizes = [24, 1], strides = [1, 1]} : vector<26x1xf32> to vector<24x1xf32>
    %c1 = arith.constant 1 : index
    %c0_4 = arith.constant 0 : index
    %10 = vector.load %arg2[%c1, %c0_4] : memref<3x256xf32, #tpu.memory_space<vmem>>, vector<1x256xf32>
    %11 = vector.broadcast %9 : vector<24x1xf32> to vector<24x256xf32>
    %12 = vector.broadcast %10 : vector<1x256xf32> to vector<24x256xf32>
    %13 = arith.mulf %11, %12 : vector<24x256xf32>
    %14 = arith.addf %8, %13 : vector<24x256xf32>
    %15 = vector.extract_strided_slice %1 {offsets = [2, 0], sizes = [24, 1], strides = [1, 1]} : vector<26x1xf32> to vector<24x1xf32>
    %c2 = arith.constant 2 : index
    %c0_5 = arith.constant 0 : index
    %16 = vector.load %arg2[%c2, %c0_5] : memref<3x256xf32, #tpu.memory_space<vmem>>, vector<1x256xf32>
    %17 = vector.broadcast %15 : vector<24x1xf32> to vector<24x256xf32>
    %18 = vector.broadcast %16 : vector<1x256xf32> to vector<24x256xf32>
    %19 = arith.mulf %17, %18 : vector<24x256xf32>
    %20 = arith.addf %14, %19 : vector<24x256xf32>
    %c0_6 = arith.constant 0 : index
    %c0_7 = arith.constant 0 : index
    %21 = vector.load %arg3[%c0_6, %c0_7] : memref<1x256xf32, #tpu.memory_space<vmem>>, vector<1x256xf32>
    %22 = vector.broadcast %21 : vector<1x256xf32> to vector<24x256xf32>
    %23 = arith.addf %20, %22 : vector<24x256xf32>
    %cst_8 = arith.constant 0.000000e+00 : f32
    %24 = vector.broadcast %cst_8 : f32 to vector<24x256xf32>
    %25 = arith.maximumf %23, %24 : vector<24x256xf32>
    %c0_9 = arith.constant 0 : index
    %c0_10 = arith.constant 0 : index
    %26 = vector.load %arg7[%c0_9, %c0_10] : memref<24x256xf32, #tpu.memory_space<vmem>>, vector<24x256xf32>
    tpu.vector_store %arg7[%c0_9, %c0_10], %25 {strides = array<i32>} : memref<24x256xf32, #tpu.memory_space<vmem>>, vector<24x256xf32>,
    %cst_11 = arith.constant 0.000000e+00 : f32
    %27 = vector.broadcast %cst_11 : f32 to vector<22x256xf32>
    %c0_12 = arith.constant 0 : index
    %c0_13 = arith.constant 0 : index
    %28 = vector.load %arg7[%c0_12, %c0_13] : memref<24x256xf32, #tpu.memory_space<vmem>>, vector<22x256xf32>
    %c0_14 = arith.constant 0 : index
    %c0_15 = arith.constant 0 : index
    %c0_16 = arith.constant 0 : index
    %c0_17 = arith.constant 0 : index
    %29 = vector.load %arg4[%c0_14, %c0_15, %c0_16, %c0_17] : memref<4x3x256x256xf32, #tpu.memory_space<vmem>>, vector<1x1x256x256xf32>
    %30 = vector.shape_cast %29 : vector<1x1x256x256xf32> to vector<256x256xf32>
    %cst_18 = arith.constant dense<0.000000e+00> : vector<22x256xf32>
    %31 = tpu.matmul %28, %30, %cst_18 {dimension_numbers = #tpu.dot_dimension_numbers<[1], [0], [0], [1], [0, 0, 1, 1], [], []>} : vector<22x256xf32>, vector<256x256xf32>, vector<22x256xf32> -> vector<22x256xf32>
    %32 = arith.addf %27, %31 : vector<22x256xf32>
    %c1_19 = arith.constant 1 : index
    %c0_20 = arith.constant 0 : index
    %33 = vector.load %arg7[%c1_19, %c0_20] : memref<24x256xf32, #tpu.memory_space<vmem>>, vector<22x256xf32>
    %c0_21 = arith.constant 0 : index
    %c1_22 = arith.constant 1 : index
    %c0_23 = arith.constant 0 : index
    %c0_24 = arith.constant 0 : index
    %34 = vector.load %arg4[%c0_21, %c1_22, %c0_23, %c0_24] : memref<4x3x256x256xf32, #tpu.memory_space<vmem>>, vector<1x1x256x256xf32>
    %35 = vector.shape_cast %34 : vector<1x1x256x256xf32> to vector<256x256xf32>
    %cst_25 = arith.constant dense<0.000000e+00> : vector<22x256xf32>
    %36 = tpu.matmul %33, %35, %cst_25 {dimension_numbers = #tpu.dot_dimension_numbers<[1], [0], [0], [1], [0, 0, 1, 1], [], []>} : vector<22x256xf32>, vector<256x256xf32>, vector<22x256xf32> -> vector<22x256xf32>
    %37 = arith.addf %32, %36 : vector<22x256xf32>
    %c2_26 = arith.constant 2 : index
    %c0_27 = arith.constant 0 : index
    %38 = vector.load %arg7[%c2_26, %c0_27] : memref<24x256xf32, #tpu.memory_space<vmem>>, vector<22x256xf32>
    %c0_28 = arith.constant 0 : index
    %c2_29 = arith.constant 2 : index
    %c0_30 = arith.constant 0 : index
    %c0_31 = arith.constant 0 : index
    %39 = vector.load %arg4[%c0_28, %c2_29, %c0_30, %c0_31] : memref<4x3x256x256xf32, #tpu.memory_space<vmem>>, vector<1x1x256x256xf32>
    %40 = vector.shape_cast %39 : vector<1x1x256x256xf32> to vector<256x256xf32>
    %cst_32 = arith.constant dense<0.000000e+00> : vector<22x256xf32>
    %41 = tpu.matmul %38, %40, %cst_32 {dimension_numbers = #tpu.dot_dimension_numbers<[1], [0], [0], [1], [0, 0, 1, 1], [], []>} : vector<22x256xf32>, vector<256x256xf32>, vector<22x256xf32> -> vector<22x256xf32>
    %42 = arith.addf %37, %41 : vector<22x256xf32>
    %c0_33 = arith.constant 0 : index
    %c0_34 = arith.constant 0 : index
    %c0_35 = arith.constant 0 : index
    %43 = vector.load %arg5[%c0_33, %c0_34, %c0_35] : memref<4x1x256xf32, #tpu.memory_space<vmem>>, vector<1x1x256xf32>
    %44 = vector.shape_cast %43 : vector<1x1x256xf32> to vector<1x256xf32>
    %45 = vector.broadcast %44 : vector<1x256xf32> to vector<22x256xf32>
    %46 = arith.addf %42, %45 : vector<22x256xf32>
    %cst_36 = arith.constant 0.000000e+00 : f32
    %47 = vector.broadcast %cst_36 : f32 to vector<22x256xf32>
    %48 = arith.maximumf %46, %47 : vector<22x256xf32>
    %c0_37 = arith.constant 0 : index
    %c0_38 = arith.constant 0 : index
    %49 = vector.load %arg8[%c0_37, %c0_38] : memref<24x256xf32, #tpu.memory_space<vmem>>, vector<22x256xf32>
    tpu.vector_store %arg8[%c0_37, %c0_38], %48 {strides = array<i32>} : memref<24x256xf32, #tpu.memory_space<vmem>>, vector<22x256xf32>,
    %cst_39 = arith.constant 0.000000e+00 : f32
    %50 = vector.broadcast %cst_39 : f32 to vector<20x256xf32>
    %c0_40 = arith.constant 0 : index
    %c0_41 = arith.constant 0 : index
    %51 = vector.load %arg8[%c0_40, %c0_41] : memref<24x256xf32, #tpu.memory_space<vmem>>, vector<20x256xf32>
    %c1_42 = arith.constant 1 : index
    %c0_43 = arith.constant 0 : index
    %c0_44 = arith.constant 0 : index
    %c0_45 = arith.constant 0 : index
    %52 = vector.load %arg4[%c1_42, %c0_43, %c0_44, %c0_45] : memref<4x3x256x256xf32, #tpu.memory_space<vmem>>, vector<1x1x256x256xf32>
    %53 = vector.shape_cast %52 : vector<1x1x256x256xf32> to vector<256x256xf32>
    %cst_46 = arith.constant dense<0.000000e+00> : vector<20x256xf32>
    %54 = tpu.matmul %51, %53, %cst_46 {dimension_numbers = #tpu.dot_dimension_numbers<[1], [0], [0], [1], [0, 0, 1, 1], [], []>} : vector<20x256xf32>, vector<256x256xf32>, vector<20x256xf32> -> vector<20x256xf32>
    %55 = arith.addf %50, %54 : vector<20x256xf32>
    %c1_47 = arith.constant 1 : index
    %c0_48 = arith.constant 0 : index
    %56 = vector.load %arg8[%c1_47, %c0_48] : memref<24x256xf32, #tpu.memory_space<vmem>>, vector<20x256xf32>
    %c1_49 = arith.constant 1 : index
    %c1_50 = arith.constant 1 : index
    %c0_51 = arith.constant 0 : index
    %c0_52 = arith.constant 0 : index
    %57 = vector.load %arg4[%c1_49, %c1_50, %c0_51, %c0_52] : memref<4x3x256x256xf32, #tpu.memory_space<vmem>>, vector<1x1x256x256xf32>
    %58 = vector.shape_cast %57 : vector<1x1x256x256xf32> to vector<256x256xf32>
    %cst_53 = arith.constant dense<0.000000e+00> : vector<20x256xf32>
    %59 = tpu.matmul %56, %58, %cst_53 {dimension_numbers = #tpu.dot_dimension_numbers<[1], [0], [0], [1], [0, 0, 1, 1], [], []>} : vector<20x256xf32>, vector<256x256xf32>, vector<20x256xf32> -> vector<20x256xf32>
    %60 = arith.addf %55, %59 : vector<20x256xf32>
    %c2_54 = arith.constant 2 : index
    %c0_55 = arith.constant 0 : index
    %61 = vector.load %arg8[%c2_54, %c0_55] : memref<24x256xf32, #tpu.memory_space<vmem>>, vector<20x256xf32>
    %c1_56 = arith.constant 1 : index
    %c2_57 = arith.constant 2 : index
    %c0_58 = arith.constant 0 : index
    %c0_59 = arith.constant 0 : index
    %62 = vector.load %arg4[%c1_56, %c2_57, %c0_58, %c0_59] : memref<4x3x256x256xf32, #tpu.memory_space<vmem>>, vector<1x1x256x256xf32>
    %63 = vector.shape_cast %62 : vector<1x1x256x256xf32> to vector<256x256xf32>
    %cst_60 = arith.constant dense<0.000000e+00> : vector<20x256xf32>
    %64 = tpu.matmul %61, %63, %cst_60 {dimension_numbers = #tpu.dot_dimension_numbers<[1], [0], [0], [1], [0, 0, 1, 1], [], []>} : vector<20x256xf32>, vector<256x256xf32>, vector<20x256xf32> -> vector<20x256xf32>
    %65 = arith.addf %60, %64 : vector<20x256xf32>
    %c1_61 = arith.constant 1 : index
    %c0_62 = arith.constant 0 : index
    %c0_63 = arith.constant 0 : index
    %66 = vector.load %arg5[%c1_61, %c0_62, %c0_63] : memref<4x1x256xf32, #tpu.memory_space<vmem>>, vector<1x1x256xf32>
    %67 = vector.shape_cast %66 : vector<1x1x256xf32> to vector<1x256xf32>
    %68 = vector.broadcast %67 : vector<1x256xf32> to vector<20x256xf32>
    %69 = arith.addf %65, %68 : vector<20x256xf32>
    %cst_64 = arith.constant 0.000000e+00 : f32
    %70 = vector.broadcast %cst_64 : f32 to vector<20x256xf32>
    %71 = arith.maximumf %69, %70 : vector<20x256xf32>
    %c0_65 = arith.constant 0 : index
    %c0_66 = arith.constant 0 : index
    %72 = vector.load %arg7[%c0_65, %c0_66] : memref<24x256xf32, #tpu.memory_space<vmem>>, vector<20x256xf32>
    tpu.vector_store %arg7[%c0_65, %c0_66], %71 {strides = array<i32>} : memref<24x256xf32, #tpu.memory_space<vmem>>, vector<20x256xf32>,
    %cst_67 = arith.constant 0.000000e+00 : f32
    %73 = vector.broadcast %cst_67 : f32 to vector<18x256xf32>
    %c0_68 = arith.constant 0 : index
    %c0_69 = arith.constant 0 : index
    %74 = vector.load %arg7[%c0_68, %c0_69] : memref<24x256xf32, #tpu.memory_space<vmem>>, vector<18x256xf32>
    %c2_70 = arith.constant 2 : index
    %c0_71 = arith.constant 0 : index
    %c0_72 = arith.constant 0 : index
    %c0_73 = arith.constant 0 : index
    %75 = vector.load %arg4[%c2_70, %c0_71, %c0_72, %c0_73] : memref<4x3x256x256xf32, #tpu.memory_space<vmem>>, vector<1x1x256x256xf32>
    %76 = vector.shape_cast %75 : vector<1x1x256x256xf32> to vector<256x256xf32>
    %cst_74 = arith.constant dense<0.000000e+00> : vector<18x256xf32>
    %77 = tpu.matmul %74, %76, %cst_74 {dimension_numbers = #tpu.dot_dimension_numbers<[1], [0], [0], [1], [0, 0, 1, 1], [], []>} : vector<18x256xf32>, vector<256x256xf32>, vector<18x256xf32> -> vector<18x256xf32>
    %78 = arith.addf %73, %77 : vector<18x256xf32>
    %c1_75 = arith.constant 1 : index
    %c0_76 = arith.constant 0 : index
    %79 = vector.load %arg7[%c1_75, %c0_76] : memref<24x256xf32, #tpu.memory_space<vmem>>, vector<18x256xf32>
    %c2_77 = arith.constant 2 : index
    %c1_78 = arith.constant 1 : index
    %c0_79 = arith.constant 0 : index
    %c0_80 = arith.constant 0 : index
    %80 = vector.load %arg4[%c2_77, %c1_78, %c0_79, %c0_80] : memref<4x3x256x256xf32, #tpu.memory_space<vmem>>, vector<1x1x256x256xf32>
    %81 = vector.shape_cast %80 : vector<1x1x256x256xf32> to vector<256x256xf32>
    %cst_81 = arith.constant dense<0.000000e+00> : vector<18x256xf32>
    %82 = tpu.matmul %79, %81, %cst_81 {dimension_numbers = #tpu.dot_dimension_numbers<[1], [0], [0], [1], [0, 0, 1, 1], [], []>} : vector<18x256xf32>, vector<256x256xf32>, vector<18x256xf32> -> vector<18x256xf32>
    %83 = arith.addf %78, %82 : vector<18x256xf32>
    %c2_82 = arith.constant 2 : index
    %c0_83 = arith.constant 0 : index
    %84 = vector.load %arg7[%c2_82, %c0_83] : memref<24x256xf32, #tpu.memory_space<vmem>>, vector<18x256xf32>
    %c2_84 = arith.constant 2 : index
    %c2_85 = arith.constant 2 : index
    %c0_86 = arith.constant 0 : index
    %c0_87 = arith.constant 0 : index
    %85 = vector.load %arg4[%c2_84, %c2_85, %c0_86, %c0_87] : memref<4x3x256x256xf32, #tpu.memory_space<vmem>>, vector<1x1x256x256xf32>
    %86 = vector.shape_cast %85 : vector<1x1x256x256xf32> to vector<256x256xf32>
    %cst_88 = arith.constant dense<0.000000e+00> : vector<18x256xf32>
    %87 = tpu.matmul %84, %86, %cst_88 {dimension_numbers = #tpu.dot_dimension_numbers<[1], [0], [0], [1], [0, 0, 1, 1], [], []>} : vector<18x256xf32>, vector<256x256xf32>, vector<18x256xf32> -> vector<18x256xf32>
    %88 = arith.addf %83, %87 : vector<18x256xf32>
    %c2_89 = arith.constant 2 : index
    %c0_90 = arith.constant 0 : index
    %c0_91 = arith.constant 0 : index
    %89 = vector.load %arg5[%c2_89, %c0_90, %c0_91] : memref<4x1x256xf32, #tpu.memory_space<vmem>>, vector<1x1x256xf32>
    %90 = vector.shape_cast %89 : vector<1x1x256xf32> to vector<1x256xf32>
    %91 = vector.broadcast %90 : vector<1x256xf32> to vector<18x256xf32>
    %92 = arith.addf %88, %91 : vector<18x256xf32>
    %cst_92 = arith.constant 0.000000e+00 : f32
    %93 = vector.broadcast %cst_92 : f32 to vector<18x256xf32>
    %94 = arith.maximumf %92, %93 : vector<18x256xf32>
    %c0_93 = arith.constant 0 : index
    %c0_94 = arith.constant 0 : index
    %95 = vector.load %arg8[%c0_93, %c0_94] : memref<24x256xf32, #tpu.memory_space<vmem>>, vector<18x256xf32>
    tpu.vector_store %arg8[%c0_93, %c0_94], %94 {strides = array<i32>} : memref<24x256xf32, #tpu.memory_space<vmem>>, vector<18x256xf32>,
    %cst_95 = arith.constant 0.000000e+00 : f32
    %96 = vector.broadcast %cst_95 : f32 to vector<16x256xf32>
    %c0_96 = arith.constant 0 : index
    %c0_97 = arith.constant 0 : index
    %97 = vector.load %arg8[%c0_96, %c0_97] : memref<24x256xf32, #tpu.memory_space<vmem>>, vector<16x256xf32>
    %c3 = arith.constant 3 : index
    %c0_98 = arith.constant 0 : index
    %c0_99 = arith.constant 0 : index
    %c0_100 = arith.constant 0 : index
    %98 = vector.load %arg4[%c3, %c0_98, %c0_99, %c0_100] : memref<4x3x256x256xf32, #tpu.memory_space<vmem>>, vector<1x1x256x256xf32>
    %99 = vector.shape_cast %98 : vector<1x1x256x256xf32> to vector<256x256xf32>
    %cst_101 = arith.constant dense<0.000000e+00> : vector<16x256xf32>
    %100 = tpu.matmul %97, %99, %cst_101 {dimension_numbers = #tpu.dot_dimension_numbers<[1], [0], [0], [1], [0, 0, 1, 1], [], []>} : vector<16x256xf32>, vector<256x256xf32>, vector<16x256xf32> -> vector<16x256xf32>
    %101 = arith.addf %96, %100 : vector<16x256xf32>
    %c1_102 = arith.constant 1 : index
    %c0_103 = arith.constant 0 : index
    %102 = vector.load %arg8[%c1_102, %c0_103] : memref<24x256xf32, #tpu.memory_space<vmem>>, vector<16x256xf32>
    %c3_104 = arith.constant 3 : index
    %c1_105 = arith.constant 1 : index
    %c0_106 = arith.constant 0 : index
    %c0_107 = arith.constant 0 : index
    %103 = vector.load %arg4[%c3_104, %c1_105, %c0_106, %c0_107] : memref<4x3x256x256xf32, #tpu.memory_space<vmem>>, vector<1x1x256x256xf32>
    %104 = vector.shape_cast %103 : vector<1x1x256x256xf32> to vector<256x256xf32>
    %cst_108 = arith.constant dense<0.000000e+00> : vector<16x256xf32>
    %105 = tpu.matmul %102, %104, %cst_108 {dimension_numbers = #tpu.dot_dimension_numbers<[1], [0], [0], [1], [0, 0, 1, 1], [], []>} : vector<16x256xf32>, vector<256x256xf32>, vector<16x256xf32> -> vector<16x256xf32>
    %106 = arith.addf %101, %105 : vector<16x256xf32>
    %c2_109 = arith.constant 2 : index
    %c0_110 = arith.constant 0 : index
    %107 = vector.load %arg8[%c2_109, %c0_110] : memref<24x256xf32, #tpu.memory_space<vmem>>, vector<16x256xf32>
    %c3_111 = arith.constant 3 : index
    %c2_112 = arith.constant 2 : index
    %c0_113 = arith.constant 0 : index
    %c0_114 = arith.constant 0 : index
    %108 = vector.load %arg4[%c3_111, %c2_112, %c0_113, %c0_114] : memref<4x3x256x256xf32, #tpu.memory_space<vmem>>, vector<1x1x256x256xf32>
    %109 = vector.shape_cast %108 : vector<1x1x256x256xf32> to vector<256x256xf32>
    %cst_115 = arith.constant dense<0.000000e+00> : vector<16x256xf32>
    %110 = tpu.matmul %107, %109, %cst_115 {dimension_numbers = #tpu.dot_dimension_numbers<[1], [0], [0], [1], [0, 0, 1, 1], [], []>} : vector<16x256xf32>, vector<256x256xf32>, vector<16x256xf32> -> vector<16x256xf32>
    %111 = arith.addf %106, %110 : vector<16x256xf32>
    %c3_116 = arith.constant 3 : index
    %c0_117 = arith.constant 0 : index
    %c0_118 = arith.constant 0 : index
    %112 = vector.load %arg5[%c3_116, %c0_117, %c0_118] : memref<4x1x256xf32, #tpu.memory_space<vmem>>, vector<1x1x256xf32>
    %113 = vector.shape_cast %112 : vector<1x1x256xf32> to vector<1x256xf32>
    %114 = vector.broadcast %113 : vector<1x256xf32> to vector<16x256xf32>
    %115 = arith.addf %111, %114 : vector<16x256xf32>
    %cst_119 = arith.constant 0.000000e+00 : f32
    %116 = vector.broadcast %cst_119 : f32 to vector<16x256xf32>
    %117 = arith.maximumf %115, %116 : vector<16x256xf32>
    %c0_120 = arith.constant 0 : index
    %c0_121 = arith.constant 0 : index
    %c0_122 = arith.constant 0 : index
    %118 = vector.load %arg6[%c0_120, %c0_121, %c0_122] : memref<1x16x256xf32, #tpu.memory_space<vmem>>, vector<1x16x256xf32>
    %119 = vector.shape_cast %118 : vector<1x16x256xf32> to vector<16x256xf32>
    %120 = vector.shape_cast %117 : vector<16x256xf32> to vector<1x16x256xf32>
    tpu.vector_store %arg6[%c0_120, %c0_121, %c0_122], %120 {strides = array<i32>} : memref<1x16x256xf32, #tpu.memory_space<vmem>>, vector<1x16x256xf32>,
    return
  }
  func.func @transform_0(%arg0: i32) -> (i32, i32, i32) {
    %c0_i32 = arith.constant 0 : i32
    %c0_i32_0 = arith.constant 0 : i32
    %c0_i32_1 = arith.constant 0 : i32
    return %arg0, %c0_i32, %c0_i32_0 : i32, i32, i32
  }
  func.func @transform_1(%arg0: i32) -> (i32, i32) {
    %c0_i32 = arith.constant 0 : i32
    %c0_i32_0 = arith.constant 0 : i32
    %c0_i32_1 = arith.constant 0 : i32
    return %c0_i32, %c0_i32_0 : i32, i32
  }
  func.func @transform_2(%arg0: i32) -> (i32, i32) {
    %c0_i32 = arith.constant 0 : i32
    %c0_i32_0 = arith.constant 0 : i32
    %c0_i32_1 = arith.constant 0 : i32
    return %c0_i32, %c0_i32_0 : i32, i32
  }
  func.func @transform_3(%arg0: i32) -> (i32, i32, i32, i32) {
    %c0_i32 = arith.constant 0 : i32
    %c0_i32_0 = arith.constant 0 : i32
    %c0_i32_1 = arith.constant 0 : i32
    %c0_i32_2 = arith.constant 0 : i32
    %c0_i32_3 = arith.constant 0 : i32
    return %c0_i32, %c0_i32_0, %c0_i32_1, %c0_i32_2 : i32, i32, i32, i32
  }
  func.func @transform_4(%arg0: i32) -> (i32, i32, i32) {
    %c0_i32 = arith.constant 0 : i32
    %c0_i32_0 = arith.constant 0 : i32
    %c0_i32_1 = arith.constant 0 : i32
    %c0_i32_2 = arith.constant 0 : i32
    return %c0_i32, %c0_i32_0, %c0_i32_1 : i32, i32, i32
  }
  func.func @transform_5(%arg0: i32) -> (i32, i32, i32) {
    %c0_i32 = arith.constant 0 : i32
    %c0_i32_0 = arith.constant 0 : i32
    %c0_i32_1 = arith.constant 0 : i32
    return %arg0, %c0_i32, %c0_i32_0 : i32, i32, i32
  }
}

</mosaic_0001>

<bundles_post_ra>
// kernel: tpu_custom_call.1
= control target key start
LH: loop header
LB: loop body
LE: loop exit
PB: predicated region body
PF: predicated region fallthrough
CT: control target
= control target key end

     0   :  { %s4268_s0 = inlined_call_operand.vmem [shape: f32[2,26,1], index: 0, kind: input, shape index: {}]   ;;  %s4269_s1 = inlined_call_operand.hbm [shape: f32[3,256], index: 1, kind: input, shape index: {}]   ;;  %s4270_s2 = inlined_call_operand.hbm [shape: f32[1,256], index: 2, kind: input, shape index: {}]   ;;  %s4271_s3 = inlined_call_operand.hbm [shape: f32[4,3,256,256], index: 3, kind: input, shape index: {}]   ;;  %s4272_s4 = inlined_call_operand.hbm [shape: f32[4,1,256], index: 4, kind: input, shape index: {}]   ;;  %s4273_s5 = inlined_call_operand.hbm [shape: f32[2,16,256], index: 5, kind: output, shape index: {}]  }
   0x1   :  { %4277 = sst [smem:[#allocation17_spill]] %s4269_s1 }
   0x2   :  { %10 = vsyncpa [#allocation5], 0 }
   0x3   :  { %11 = vsyncpa [#allocation8], 0 }
   0x4   :  { %12 = vsyncpa [#allocation11], 0 }
   0x5   :  { %13 = vsyncpa [#allocation6], 0 }
   0x6   :  { %15 = vsyncpa [#allocation6 + $0x1], 0  ;;  %s3854_s18 = smov 0   ;;  %s3856_s19 = smov 0  }
   0x7   :  { %s3858_s20 = smov 0   ;;  %s3860_s21 = smov 0  }
   0x8 LB: > { %s3875_s22 = sadd.s32 4294967295, %s3810_s21   ;;  %s2701_s23 = sadd.s32 4294967294, %s3810_s21   ;;  %s3810_s21 = sphi %s3860_s21, %s4296_s21   ;;  %s3806_s20 = sphi %s3858_s20, %s4295_s20   ;;  %s3802_s19 = sphi %s3856_s19, %s4294_s19   ;;  %s3798_s18 = sphi %s3854_s18, %s4293_s18  }
   0x9   : > { %s3879_s24 = sadd.s32 1, %s3810_s21   ;;  %s138_s25 = sadd.s32 1, %s3806_s20 }
   0xa   : > { %s135_s26 = ssub.s32 %s3810_s21, %s3879_s24  ;;  %p148_p0 = scmp.ne.s32.totalorder %s3806_s20, %s3802_s19 }
   0xb   : > { %p136_p1 = scmp.eq.s32.totalorder %s135_s26, 0  ;;  %p149_p2 = scmp.eq.s32.totalorder %s3875_s22, 1 }
   0xc   : > { %p154_p3 = scmp.ne.s32.totalorder %s3802_s19, %s3798_s18  ;;  %p155_p4 = scmp.eq.s32.totalorder %s2701_s23, 1 }
   0xd   : > { %s3890_s27 = scalar_select %p136_p1, %s3806_s20, %s138_s25  }
   0xe   : > { %p3892_p5 = por %p149_p2, %p148_p0  ;;  %p3896_p6 = por %p155_p4, %p154_p3 }
   0xf   : > { %p2702_p7 = scmp.ge.s32.totalorder %s3810_s21, 1  ;;  %p162_p8 = scmp.lt.s32.totalorder %s3810_s21, 3 }
  0x10   : > { %s4278_s28 = scalar_select %p3892_p5, 1, 0 }
  0x11   : > { %s4279_s29 = scalar_select %p3896_p6, 1, 0 }
  0x12   : > { %p4274_p9 = scmp.eq.s32.totalorder %s3875_s22, 0  ;;  %p3903_p10 = pnand %p2702_p7, %p162_p8 }
  0x13   : > { %s3812_s6 = smov [#allocation7]   ;;  %s3813_s8 = smov [#allocation4]  }
  0x14   : > { %s4280_s30 = scalar_select %p3903_p10, 1, 0 }
  0x15   : > { %s186_s7 = sshll.u32 %s3812_s6, 4  ;;  %p3553_p11 = pneg %p3903_p10  ;;  %s187_s7 = int_to_ptr.vmem [resolvable:$true] %s186_s7 }
  0x16   : > { %s175_s9 = sshll.u32 %s3813_s8, 4  ;;  %s3814_s11 = smov [#allocation9]   ;;  %s3915_s9 = int_to_ptr.vmem [resolvable:$true] %s175_s9 }
  0x17   : > { %p3911_p12 = pnand %p4274_p9, %p3553_p11  ;;  %s196_s12 = sshll.u32 %s3814_s11, 4  ;;  %s3917_s12 = int_to_ptr.vmem [resolvable:$true] %s196_s12 }
  0x18   : > { %s3624_s15 = scalar_lea.hbm %s4270_s2, 32 }
  0x19   : > { %p3625_p13 = scmp.ne.s32.totalorder %s4270_s2, %s3624_s15  ;;  %p3927_p0 = pneg %p3911_p12 }
  0x1a   : > { %p3631_p3 = scmp.lt.u32.totalorder %s3624_s15, %s4270_s2 }
  0x1b   : > { %p3627_p1 = pnand %p3927_p0, %p3625_p13 }
  0x1d   : > { %p3628_p2 = pneg %p3627_p1 }
  0x1f   : > { %p3633_p4 = pnand %p3631_p3, %p3628_p2 }
  0x21   : > { %3636 = shalt.err (!%p3633_p4)
}
  0x22   : > { %s3637_s6 = scalar_lea.vmem %s187_s7, 32  ;;  %p3645_p9 = scmp.lt.s32.totalorder %s187_s7, %s187_s7 }
  0x23   : > { %p3638_p7 = scmp.ne.s32.totalorder %s187_s7, %s3637_s6  ;;  %p3646_p6 = scmp.lt.s32.totalorder %s3637_s6, %s3637_s6 }
  0x25   : > { %p3640_p8 = pnand %p3638_p7, %p3927_p0  ;;  %p3647_p5 = por %p3646_p6, %p3645_p9 }
  0x27   : > { %p3641_p11 = pneg %p3640_p8 }
  0x29   : > { %p3648_p10 = pnand %p3647_p5, %p3641_p11 }
  0x2b   : > { %3651 = shalt.err (!%p3648_p10)
}
  0x2c   : > { %3559 = dma.hbm_to_vmem [thread:$0]  (!%p3911_p12), %s4270_s2, 32, %s187_s7, [#allocation8]  }
  0x2d   : > { %s4283_s1 = sld [smem:[#allocation17_spill]] }
  0x33   : > { %s3652_s15 = scalar_lea.hbm %s4283_s1, 128 }
  0x34   : > { %p3653_p13 = scmp.ne.s32.totalorder %s4283_s1, %s3652_s15  ;;  %p3659_p5 = scmp.lt.u32.totalorder %s3652_s15, %s4283_s1 }
  0x36   : > { %p3655_p1 = pnand %p3653_p13, %p3927_p0 }
  0x38   : > { %p3656_p6 = pneg %p3655_p1 }
  0x3a   : > { %p3661_p9 = pnand %p3659_p5, %p3656_p6 }
  0x3c   : > { %3664 = shalt.err (!%p3661_p9)
}
  0x3d   : > { %s3665_s7 = scalar_lea.vmem %s3915_s9, 128  ;;  %p3673_p4 = scmp.lt.s32.totalorder %s3915_s9, %s3915_s9 }
  0x3e   : > { %p3666_p10 = scmp.ne.s32.totalorder %s3915_s9, %s3665_s7  ;;  %p3674_p7 = scmp.lt.s32.totalorder %s3665_s7, %s3665_s7 }
  0x40   : > { %p3668_p2 = pnand %p3666_p10, %p3927_p0  ;;  %p3675_p8 = por %p3674_p7, %p3673_p4 }
  0x42   : > { %p3669_p3 = pneg %p3668_p2 }
  0x44   : > { %p3676_p11 = pnand %p3675_p8, %p3669_p3 }
  0x46   : > { %3679 = shalt.err (!%p3676_p11)
}
  0x47   : > { %3556 = dma.hbm_to_vmem [thread:$0]  (!%p3911_p12), %s4283_s1, 128, %s3915_s9, [#allocation5]  }
  0x48   : > { %s3680_s14 = scalar_lea.hbm %s4271_s3, 98304 }
  0x49   : > { %p3681_p13 = scmp.ne.s32.totalorder %s4271_s3, %s3680_s14  ;;  %p3687_p5 = scmp.lt.u32.totalorder %s3680_s14, %s4271_s3 }
  0x4b   : > { %p3683_p1 = pnand %p3681_p13, %p3927_p0 }
  0x4d   : > { %p3684_p6 = pneg %p3683_p1 }
  0x4f   : > { %p3689_p9 = pnand %p3687_p5, %p3684_p6 }
  0x51   : > { %3692 = shalt.err (!%p3689_p9)
}
  0x52   : > { %s3693_s9 = scalar_lea.vmem %s3917_s12, 98304  ;;  %p3701_p4 = scmp.lt.s32.totalorder %s3917_s12, %s3917_s12 }
  0x53   : > { %p3694_p10 = scmp.ne.s32.totalorder %s3917_s12, %s3693_s9  ;;  %p3702_p7 = scmp.lt.s32.totalorder %s3693_s9, %s3693_s9 }
  0x55   : > { %p3696_p2 = pnand %p3694_p10, %p3927_p0  ;;  %p3703_p8 = por %p3702_p7, %p3701_p4 }
  0x57   : > { %p3697_p3 = pneg %p3696_p2 }
  0x59   : > { %p3704_p11 = pnand %p3703_p8, %p3697_p3 }
  0x5b   : > { %3707 = shalt.err (!%p3704_p11)
}
  0x5c   : > { %s3815_s26 = smov 256   ;;  %s3816_s7 = smov 16  }
  0x5d   : > { %3562 = dma.hbm_to_vmem [thread:$0]  (!%p3911_p12), %s4271_s3, 98304, %s3917_s12, [#allocation8], %s3815_s26, %s3815_s26, %s3816_s7  }
  0x5e   : > { %s3817_s11 = smov [#allocation10]   ;;  %s3708_s16 = scalar_lea.hbm %s4272_s4, 128 }
  0x5f   : > { %s209_s13 = sshll.u32 %s3817_s11, 4  ;;  %p3709_p13 = scmp.ne.s32.totalorder %s4272_s4, %s3708_s16  ;;  %s210_s13 = int_to_ptr.vmem [resolvable:$true] %s209_s13 }
  0x60   : > { %p3715_p5 = scmp.lt.u32.totalorder %s3708_s16, %s4272_s4 }
  0x61   : > { %p3711_p1 = pnand %p3709_p13, %p3927_p0 }
  0x63   : > { %p3712_p6 = pneg %p3711_p1 }
  0x65   : > { %p3717_p9 = pnand %p3715_p5, %p3712_p6 }
  0x67   : > { %3720 = shalt.err (!%p3717_p9)
}
  0x68   : > { %s3721_s12 = scalar_lea.vmem %s210_s13, 128  ;;  %p3729_p4 = scmp.lt.s32.totalorder %s210_s13, %s210_s13 }
  0x69   : > { %p3722_p10 = scmp.ne.s32.totalorder %s210_s13, %s3721_s12  ;;  %p3730_p7 = scmp.lt.s32.totalorder %s3721_s12, %s3721_s12 }
  0x6b   : > { %p3724_p2 = pnand %p3722_p10, %p3927_p0  ;;  %p3731_p8 = por %p3730_p7, %p3729_p4 }
  0x6d   : > { %p3725_p3 = pneg %p3724_p2 }
  0x6f   : > { %p3732_p11 = pnand %p3731_p8, %p3725_p3 }
  0x71   : > { %3735 = shalt.err (!%p3732_p11)
}
  0x72   : > { %s3818_s26 = smov 32   ;;  %s3819_s7 = smov 2  }
  0x73   : > { %3565 = dma.hbm_to_vmem [thread:$0]  (!%p3911_p12), %s4272_s4, 128, %s210_s13, [#allocation11], %s3818_s26, %s3818_s26, %s3819_s7  }
  0x74   : > { %p4284_p13 = scmp.ne.s32.totalorder %s4280_s30, 0 }
  0x75   : > { %p4285_p1 = scmp.eq.s32.totalorder (!%p4284_p13), %s3875_s22, 0 }
  0x76   : > { %233 = sbr.rel (%p4284_p13) target bundleno = 1737 (0x6c9), region = 40 }
  0x7d   : > { %3781 = dma.done.wait (%p4285_p1), [#allocation5], 128   ;;  %p4286_p0 = pmov %p4285_p1 }
  0x7f   : > { %3783 = vsyncadd (%p4286_p0), [#allocation5], 4294967168  ;;  %p4287_p6 = pmov %p4286_p0 }
  0x80   : > { %p4288_p5 = pmov %p4286_p0 }
  0x81   : > { %3785 = dma.done.wait (%p4287_p6), [#allocation8], 98336  }
  0x82   : > { %3787 = vsyncadd (%p4288_p5), [#allocation8], 4294868960  ;;  %p4289_p9 = pmov %p4286_p0 }
  0x83   : > { %p4290_p12 = pmov %p4286_p0 }
  0x84   : > { %3789 = dma.done.wait (%p4289_p9), [#allocation11], 128  }
  0x85   : > { %3791 = vsyncadd (%p4290_p12), [#allocation11], 4294967168  ;;  %p273_p10 = scmp.lt.s32.totalorder %s3875_s22, 1  ;;  %v3820_v0 = vmov 0   ;;  %v544_v5 = vld [vmem:[#allocation9 + $0x208] sm:$0xff]  ;;  %v546_v6 = vld [vmem:[#allocation9 + $0x218] sm:$0xff] }
  0x86   : > { %3623 = vset.pattern.permute.xlu1 %v3820_v0  ;;  %3622 = vset.pattern.permute.xlu0 %v3820_v0  ;;  %v2723_v7 = vpack.c.bf16 %v546_v6, %v544_v5  ;;  %v543_v8 = vld [vmem:[#allocation9 + $0x200] sm:$0xff]  ;;  %v545_v9 = vld [vmem:[#allocation9 + $0x210] sm:$0xff]  ;;  %v548_v10 = vld [vmem:[#allocation9 + $0x228] sm:$0xff]  ;;  %vm355_vm0 = vcmask 1046528   ;;  %vm411_vm1 = vcmask 1045504   ;;  %s270_s13 = sand.u32 1, %s3802_s19  }
  0x87   : > { %s274_s30 = scalar_select %p273_p10, %s3875_s22, 1  ;;  %v2725_v11 = vpack.c.bf16 %v545_v9, %v543_v8  ;;  %v550_v12 = vld [vmem:[#allocation9 + $0x238] sm:$0xff]  ;;  %v547_v13 = vld [vmem:[#allocation9 + $0x220] sm:$0xff]  ;;  %v549_v14 = vld [vmem:[#allocation9 + $0x230] sm:$0xff] }
  0x88   : > { %2724 = vmatprep.subr.bf16.mxu0 %v2723_v7  ;;  %v2727_v15 = vpack.c.bf16 %v550_v12, %v548_v10  ;;  %v552_v16 = vld [vmem:[#allocation9 + $0x248] sm:$0xff]  ;;  %v554_v17 = vld [vmem:[#allocation9 + $0x258] sm:$0xff]  ;;  %v2729_v18 = vpack.c.bf16 %v549_v14, %v547_v13  ;;  %v551_v20 = vld [vmem:[#allocation9 + $0x240] sm:$0xff]  ;;  %s2713_s14 = sshll.u32 %s270_s13, 5  ;;  %s2722_s17 = sshll.u32 %s3875_s22, 9 }
  0x89   : > { %s2721_s10 = sshll.u32 %s274_s30, 5  ;;  %2726 = vmatpush1.bf16.msra.mxu0 %v2725_v11  ;;  %v2731_v19 = vpack.c.bf16 %v554_v17, %v552_v16  ;;  %v553_v21 = vld [vmem:[#allocation9 + $0x250] sm:$0xff]  ;;  %v556_v22 = vld [vmem:[#allocation9 + $0x268] sm:$0xff]  ;;  %v558_v23 = vld [vmem:[#allocation9 + $0x278] sm:$0xff]  ;;  %s272_s15 = scalar_lea.vmem [#allocation12], %s2713_s14 }
  0x8a   : > { %s277_s11 = scalar_lea.vmem %s4268_s0, %s2721_s10  ;;  %2728 = vmatprep.subr.bf16.mxu0 %v2727_v15  ;;  %v2733_v24 = vpack.c.bf16 %v553_v21, %v551_v20  ;;  %v2735_v25 = vpack.c.bf16 %v558_v23, %v556_v22  ;;  %v555_v26 = vld [vmem:[#allocation9 + $0x260] sm:$0xff]  ;;  %v557_v27 = vld [vmem:[#allocation9 + $0x270] sm:$0xff]  ;;  %v560_v28 = vld [vmem:[#allocation9 + $0x288] sm:$0xff]  ;;  %s2598_s16 = sshll.u32 %s272_s15, 4  ;;  %s4220_s16 = int_to_ptr.vmem [resolvable:$true] %s2598_s16 }
  0x8b   : > { %v280_v1 = vld [vmem:[%s277_s11 + $0x10] sm:$0xff]  ;;  %v278_v2 = vld [vmem:[%s277_s11] sm:$0xff]  ;;  %v281_v3 = vld [vmem:[%s277_s11 + $0x18] sm:$0x3]  ;;  %v2737_v30 = vpack.c.bf16 %v557_v27, %v555_v26  ;;  %s4225_s12 = scalar_lea.hbm %s4273_s5, %s2722_s17  ;;  %s4227_s26 = scalar_lea.sflag [#allocation6], %s270_s13 }
  0x8c   : > { %295 = vperm.xlu1 %3623, %v280_v1   ;;  %285 = vperm.xlu0 %3622, %v278_v2   ;;  %v279_v4 = vld [vmem:[%s277_s11 + $0x8] sm:$0xff]  ;;  %v561_v33 = vld [vmem:[#allocation9 + $0x290] sm:$0xff]  ;;  %v564_v34 = vld [vmem:[#allocation9 + $0x2a8] sm:$0xff]  ;;  %s3736_s7 = scalar_lea.vmem %s4220_s16, 512  ;;  %p4291_p3 = scmp.ne.s32.totalorder %s4278_s28, 0 }
  0x8d   : > { %2730 = vmatpush1.bf16.msra.mxu0 %v2729_v18  ;;  %v562_v29 = vld [vmem:[#allocation9 + $0x298] sm:$0xff]  ;;  %v559_v32 = vld [vmem:[#allocation9 + $0x280] sm:$0xff]  ;;  %v565_v39 = vld [vmem:[#allocation9 + $0x2b0] sm:$0xff]  ;;  %p3737_p2 = scmp.ne.s32.totalorder %s4220_s16, %s3736_s7  ;;  %s3821_s22 = smov [#allocation12]  }
  0x8e   : > { %2732 = vmatprep.subr.bf16.mxu0 %v2731_v19  ;;  %v2739_v31 = vpack.c.bf16 %v562_v29, %v560_v28  ;;  %v566_v35 = vld [vmem:[#allocation9 + $0x2b8] sm:$0xff]  ;;  %v2741_v36 = vpack.c.bf16 %v561_v33, %v559_v32  ;;  %v563_v38 = vld [vmem:[#allocation9 + $0x2a0] sm:$0xff]  ;;  %v568_v40 = vld [vmem:[#allocation9 + $0x2c8] sm:$0xff]  ;;  %s3740_s6 = sshll.u32 %s3821_s22, 4  ;;  %s3741_s6 = int_to_ptr.vmem [resolvable:$false] %s3740_s6 }
  0x8f   : > { %v2743_v37 = vpack.c.bf16 %v566_v35, %v564_v34  ;;  %v570_v41 = vld [vmem:[#allocation9 + $0x2d8] sm:$0xff]  ;;  %v2745_v42 = vpack.c.bf16 %v565_v39, %v563_v38  ;;  %v567_v44 = vld [vmem:[#allocation9 + $0x2c0] sm:$0xff]  ;;  %v569_v45 = vld [vmem:[#allocation9 + $0x2d0] sm:$0xff]  ;;  %p3738_p4 = pnand %p3737_p2, %p4291_p3  ;;  %s3742_s1 = scalar_lea.vmem %s3741_s6, 1024 }
  0x90   : > { %325 = vperm.xlu1 %3623, %v281_v3   ;;  %290 = vperm.xlu0 %3622, %v279_v4   ;;  %v2747_v43 = vpack.c.bf16 %v570_v41, %v568_v40  ;;  %v572_v46 = vld [vmem:[#allocation9 + $0x2e8] sm:$0xff]  ;;  %v574_v47 = vld [vmem:[#allocation9 + $0x2f8] sm:$0xff]  ;;  %v2749_v48 = vpack.c.bf16 %v569_v45, %v567_v44  ;;  %v571_v50 = vld [vmem:[#allocation9 + $0x2e0] sm:$0xff]  ;;  %v299_v40 = vlaneseq  ;;  %p3743_p8 = scmp.lt.s32.totalorder %s4220_s16, %s3741_s6  ;;  %p3744_p11 = scmp.lt.s32.totalorder %s3742_s1, %s3736_s7 }
  0x91   : > { %2734 = vmatpush1.bf16.msra.mxu0 %v2733_v24  ;;  %v2751_v49 = vpack.c.bf16 %v574_v47, %v572_v46  ;;  %v573_v51 = vld [vmem:[#allocation9 + $0x2f0] sm:$0xff]  ;;  %v576_v52 = vld [vmem:[#allocation9 + $0x308] sm:$0xff]  ;;  %v578_v53 = vld [vmem:[#allocation9 + $0x318] sm:$0xff]  ;;  %p3739_p7 = pneg %p3738_p4 }
  0x92   : > { %2736 = vmatprep.subr.bf16.mxu0 %v2735_v25  ;;  %v2753_v54 = vpack.c.bf16 %v573_v51, %v571_v50  ;;  %v2755_v55 = vpack.c.bf16 %v578_v53, %v576_v52  ;;  %v575_v56 = vld [vmem:[#allocation9 + $0x300] sm:$0xff]  ;;  %v577_v57 = vld [vmem:[#allocation9 + $0x310] sm:$0xff]  ;;  %v580_v58 = vld [vmem:[#allocation9 + $0x328] sm:$0xff]  ;;  %v300_v41 = vshrl.u32 %v299_v40, 7  ;;  %p3745_p13 = por %p3744_p11, %p3743_p8 }
  0x93   : > { %v582_v59 = vld [vmem:[#allocation9 + $0x338] sm:$0xff]  ;;  %v2757_v60 = vpack.c.bf16 %v577_v57, %v575_v56  ;;  %v579_v62 = vld [vmem:[#allocation9 + $0x320] sm:$0xff]  ;;  %v581_v63 = vld [vmem:[#allocation9 + $0x330] sm:$0xff] }
  0x94   : > { %v2759_v61 = vpack.c.bf16 %v582_v59, %v580_v58  ;;  %v584_v0 = vld [vmem:[#allocation9 + $0x348] sm:$0xff]  ;;  %v586_v1 = vld [vmem:[#allocation9 + $0x358] sm:$0xff]  ;;  %v2761_v2 = vpack.c.bf16 %v581_v63, %v579_v62  ;;  %v583_v4 = vld [vmem:[#allocation9 + $0x340] sm:$0xff]  ;;  %p3746_p1 = pnand %p3745_p13, %p3739_p7 }
  0x95   : > { %2738 = vmatpush1.bf16.msra.mxu0 %v2737_v30  ;;  %v2763_v3 = vpack.c.bf16 %v586_v1, %v584_v0  ;;  %v585_v5 = vld [vmem:[#allocation9 + $0x350] sm:$0xff]  ;;  %v588_v6 = vld [vmem:[#allocation9 + $0x368] sm:$0xff]  ;;  %v590_v7 = vld [vmem:[#allocation9 + $0x378] sm:$0xff] }
  0x96   : > { %2740 = vmatprep.subr.bf16.mxu0 %v2739_v31  ;;  %v2765_v8 = vpack.c.bf16 %v585_v5, %v583_v4  ;;  %v2767_v9 = vpack.c.bf16 %v590_v7, %v588_v6  ;;  %v587_v10 = vld [vmem:[#allocation9 + $0x360] sm:$0xff]  ;;  %v589_v11 = vld [vmem:[#allocation9 + $0x370] sm:$0xff]  ;;  %v592_v12 = vld [vmem:[#allocation9 + $0x388] sm:$0xff] }
  0x97   : > { %v594_v13 = vld [vmem:[#allocation9 + $0x398] sm:$0xff]  ;;  %v2769_v14 = vpack.c.bf16 %v589_v11, %v587_v10  ;;  %v591_v16 = vld [vmem:[#allocation9 + $0x380] sm:$0xff]  ;;  %v593_v17 = vld [vmem:[#allocation9 + $0x390] sm:$0xff] }
  0x98   : > { %v2771_v15 = vpack.c.bf16 %v594_v13, %v592_v12  ;;  %v596_v18 = vld [vmem:[#allocation9 + $0x3a8] sm:$0xff]  ;;  %v598_v19 = vld [vmem:[#allocation9 + $0x3b8] sm:$0xff]  ;;  %v2773_v20 = vpack.c.bf16 %v593_v17, %v591_v16  ;;  %v595_v22 = vld [vmem:[#allocation9 + $0x3a0] sm:$0xff] }
  0x99   : > { %2742 = vmatpush1.bf16.msra.mxu0 %v2741_v36  ;;  %v2775_v21 = vpack.c.bf16 %v598_v19, %v596_v18  ;;  %v597_v23 = vld [vmem:[#allocation9 + $0x3b0] sm:$0xff]  ;;  %v600_v24 = vld [vmem:[#allocation9 + $0x3c8] sm:$0xff]  ;;  %v602_v25 = vld [vmem:[#allocation9 + $0x3d8] sm:$0xff] }
  0x9a   : > { %2744 = vmatprep.subr.bf16.mxu0 %v2743_v37  ;;  %v2777_v26 = vpack.c.bf16 %v597_v23, %v595_v22  ;;  %v2779_v27 = vpack.c.bf16 %v602_v25, %v600_v24  ;;  %v599_v28 = vld [vmem:[#allocation9 + $0x3c0] sm:$0xff]  ;;  %v601_v29 = vld [vmem:[#allocation9 + $0x3d0] sm:$0xff]  ;;  %v604_v30 = vld [vmem:[#allocation9 + $0x3e8] sm:$0xff] }
  0x9b   : > { %v606_v31 = vld [vmem:[#allocation9 + $0x3f8] sm:$0xff]  ;;  %v2781_v32 = vpack.c.bf16 %v601_v29, %v599_v28  ;;  %v603_v34 = vld [vmem:[#allocation9 + $0x3e0] sm:$0xff]  ;;  %v605_v35 = vld [vmem:[#allocation9 + $0x3f0] sm:$0xff] }
  0x9c   : > { %v2783_v33 = vpack.c.bf16 %v606_v31, %v604_v30  ;;  %v475_v36 = vld [vmem:[#allocation9 + $0x8] sm:$0xff]  ;;  %v477_v37 = vld [vmem:[#allocation9 + $0x18] sm:$0xff]  ;;  %v2785_v38 = vpack.c.bf16 %v605_v35, %v603_v34 }
  0x9d   : > { %2746 = vmatpush1.bf16.msra.mxu0 %v2745_v42  ;;  %v2787_v39 = vpack.c.bf16 %v477_v37, %v475_v36  ;;  %v4026_v42 = vsub.s32 0, %v300_v41  ;;  %v282_v44 = vld [vmem:[#allocation4] ss:$4 sm:$0x3] }
  0x9e   : > { %2748 = vmatprep.subr.bf16.mxu0 %v2747_v43  ;;  %v4028_v43 = vsub.s32 1, %v300_v41  ;;  %v322_v45 = vld [vmem:[#allocation4 + $0x1] ss:$4 sm:$0x3] }
  0x9f   : > { %v383_v46 = vld [vmem:[#allocation4 + $0x2] ss:$4 sm:$0x3]  ;;  %v302_v47 = vrot.slane %v282_v44, %v4026_v42  ;;  %v332_v50 = vrot.slane %v322_v45, %v4026_v42 }
  0xa0   : > { %v336_v51 = vrot.slane %v322_v45, %v4028_v43  ;;  %v388_v52 = vrot.slane %v383_v46, %v4026_v42  ;;  %v392_v53 = vrot.slane %v383_v46, %v4028_v43 }
  0xa1   : > { %2750 = vmatpush1.bf16.msra.mxu0 %v2749_v48  ;;  %v306_v48 = vrot.slane %v282_v44, %v4028_v43 }
  0xa2   : > { %2752 = vmatprep.subr.bf16.mxu0 %v2751_v49  ;;  %v438_v49 = vld [vmem:[#allocation7] sm:$0x3] }
  0xa3   : > { %v4037_v58 = vrot.slane %v438_v49, %v4026_v42  ;;  %v4040_v59 = vrot.slane %v438_v49, %v4028_v43 }
  0xa5   : > { %2754 = vmatpush1.bf16.msra.mxu0 %v2753_v54 }
  0xa6   : > { %2756 = vmatprep.subr.bf16.mxu0 %v2755_v55 }
  0xa9   : > { %2758 = vmatpush1.bf16.msra.mxu0 %v2757_v60 }
  0xaa   : > { %2760 = vmatprep.subr.bf16.mxu0 %v2759_v61 }
  0xad   : > { %2762 = vmatpush1.bf16.msra.mxu0 %v2761_v2 }
  0xae   : > { %2764 = vmatprep.subr.bf16.mxu0 %v2763_v3 }
  0xb1   : > { %2766 = vmatpush1.bf16.msra.mxu0 %v2765_v8 }
  0xb2   : > { %2768 = vmatprep.subr.bf16.mxu0 %v2767_v9 }
  0xb5   : > { %2770 = vmatpush1.bf16.msra.mxu0 %v2769_v14 }
  0xb6   : > { %2772 = vmatprep.subr.bf16.mxu0 %v2771_v15 }
  0xb9   : > { %2774 = vmatpush1.bf16.msra.mxu0 %v2773_v20 }
  0xba   : > { %2776 = vmatprep.subr.bf16.mxu0 %v2775_v21 }
  0xbd   : > { %2778 = vmatpush1.bf16.msra.mxu0 %v2777_v26 }
  0xbe   : > { %2780 = vmatprep.subr.bf16.mxu0 %v2779_v27 }
  0xc1   : > { %2782 = vmatpush1.bf16.msra.mxu0 %v2781_v32 }
  0xc2   : > { %2784 = vmatprep.subr.bf16.mxu0 %v2783_v33 }
  0xc5   : > { %2786 = vmatpush1.bf16.msra.mxu0 %v2785_v38 }
  0xc6   : > { %2788 = vmatprep.subr.bf16.mxu0 %v2787_v39 }
 0x10b   : > { %v296_v54 = vpop.permute.xlu1 %295  ;;  %v286_v55 = vpop.permute.xlu0 %285 }
 0x10c   : > { %v309_v56 = vmul.f32 %v302_v47, %v286_v55  ;;  %v310_v57 = vmul.f32 %v306_v48, %v286_v55  ;;  %v343_v60 = vmul.f32 %v332_v50, %v296_v54  ;;  %v344_v61 = vmul.f32 %v336_v51, %v296_v54 }
 0x10d   : > { %v4042_v62 = vmul.f32 %v388_v52, %v296_v54  ;;  %v400_v63 = vmul.f32 %v392_v53, %v296_v54  ;;  %v339_v0 = vmul.f32 %v332_v50, %v286_v55  ;;  %v340_v1 = vmul.f32 %v336_v51, %v286_v55 }
 0x10e   : > { %v395_v2 = vmul.f32 %v388_v52, %v286_v55  ;;  %v396_v3 = vmul.f32 %v392_v53, %v286_v55  ;;  %v313_v4 = vmul.f32 %v302_v47, %v296_v54  ;;  %v314_v5 = vmul.f32 %v306_v48, %v296_v54 }
 0x10f   : > { %v362_v6 = vrot.slane %v343_v60, 1  ;;  %v364_v7 = vrot.slane %v344_v61, 1  ;;  %v326_v8 = vpop.permute.xlu1 %325  ;;  %v418_v9 = vrot.slane %v4042_v62, 2  ;;  %v420_v10 = vrot.slane %v400_v63, 2  ;;  %v291_v13 = vpop.permute.xlu0 %290 }
 0x110   : > { %v345_v11 = vmul.f32 %v332_v50, %v326_v8  ;;  %v346_v12 = vmul.f32 %v336_v51, %v326_v8  ;;  %v356_v14 = vrot.slane %v339_v0, 1  ;;  %v359_v15 = vrot.slane %v340_v1, 1 }
 0x111   : > { %v401_v16 = vmul.f32 %v388_v52, %v326_v8  ;;  %v402_v17 = vmul.f32 %v392_v53, %v326_v8  ;;  %v412_v20 = vrot.slane %v395_v2, 2  ;;  %v415_v21 = vrot.slane %v396_v3, 2 }
 0x112   : > { %v366_v18 = vrot.slane %v345_v11, 1  ;;  %v368_v19 = vrot.slane %v346_v12, 1  ;;  %v341_v24 = vmul.f32 %v332_v50, %v291_v13  ;;  %v342_v25 = vmul.f32 %v336_v51, %v291_v13  ;;  %v474_v11 = vld [vmem:[#allocation9] sm:$0xff]  ;;  %v476_v12 = vld [vmem:[#allocation9 + $0x10] sm:$0xff] }
 0x113   : > { %v422_v22 = vrot.slane %v401_v16, 2  ;;  %v424_v23 = vrot.slane %v402_v17, 2  ;;  %v397_v28 = vmul.f32 %v388_v52, %v291_v13  ;;  %v398_v29 = vmul.f32 %v392_v53, %v291_v13  ;;  %v481_v17 = vld [vmem:[#allocation9 + $0x38] sm:$0xff] }
 0x114   : > { %v367_v26 = vsel %vm355_vm0, %v362_v6, %v366_v18  ;;  %v369_v27 = vsel %vm355_vm0, %v364_v7, %v368_v19  ;;  %v311_v34 = vmul.f32 %v302_v47, %v291_v13  ;;  %v312_v35 = vmul.f32 %v306_v48, %v291_v13  ;;  %v479_v13 = vld [vmem:[#allocation9 + $0x28] sm:$0xff] }
 0x115   : > { %v380_v30 = vadd.f32 %v367_v26, %v313_v4  ;;  %v381_v31 = vadd.f32 %v369_v27, %v314_v5  ;;  %v423_v32 = vsel %vm411_vm1, %v418_v9, %v422_v22  ;;  %v425_v33 = vsel %vm411_vm1, %v420_v10, %v424_v23  ;;  %v480_v26 = vld [vmem:[#allocation9 + $0x30] sm:$0xff] }
 0x116   : > { %v357_v36 = vrot.slane %v341_v24, 1  ;;  %v360_v37 = vrot.slane %v342_v25, 1  ;;  %v413_v40 = vrot.slane %v397_v28, 2  ;;  %v416_v41 = vrot.slane %v398_v29, 2  ;;  %v478_v25 = vld [vmem:[#allocation9 + $0x20] sm:$0xff]  ;;  %v483_v28 = vld [vmem:[#allocation9 + $0x48] sm:$0xff] }
 0x117   : > { %v436_v38 = vadd.f32 %v423_v32, %v380_v30  ;;  %v437_v39 = vadd.f32 %v425_v33, %v381_v31  ;;  %v2791_v24 = vpack.c.bf16 %v481_v17, %v479_v13  ;;  %v485_v29 = vld [vmem:[#allocation9 + $0x58] sm:$0xff]  ;;  %v2793_v31 = vpack.c.bf16 %v480_v26, %v478_v25  ;;  %v482_v33 = vld [vmem:[#allocation9 + $0x40] sm:$0xff]  ;;  %v1093_v26 = vld [vmem:[#allocation9 + $0x870] sm:$0xff] }
 0x118   : > { %v358_v44 = vsel %vm355_vm0, %v356_v14, %v357_v36  ;;  %v361_v45 = vsel %vm355_vm0, %v359_v15, %v360_v37  ;;  %v363_v46 = vsel %vm355_vm0, %v357_v36, %v362_v6  ;;  %v365_v49 = vsel %vm355_vm0, %v360_v37, %v364_v7  ;;  %v487_v36 = vld [vmem:[#allocation9 + $0x68] sm:$0xff]  ;;  %v489_v37 = vld [vmem:[#allocation9 + $0x78] sm:$0xff]  ;;  %v494_v13 = vld [vmem:[#allocation9 + $0xa0] sm:$0xff] }
 0x119   : > { %v4054_v50 = vadd.f32 %v4037_v58, %v436_v38  ;;  %v4057_v47 = vadd.f32 %v4040_v59, %v437_v39  ;;  %v376_v48 = vadd.f32 %v358_v44, %v309_v56  ;;  %v377_v51 = vadd.f32 %v361_v45, %v310_v57  ;;  %v491_v44 = vld [vmem:[#allocation9 + $0x88] sm:$0xff]  ;;  %v493_v45 = vld [vmem:[#allocation9 + $0x98] sm:$0xff]  ;;  %v1091_v25 = vld [vmem:[#allocation9 + $0x860] sm:$0xff] }
 0x11a   : > { %v378_v52 = vadd.f32 %v363_v46, %v311_v34  ;;  %v379_v53 = vadd.f32 %v365_v49, %v312_v35  ;;  %v414_v60 = vsel %vm411_vm1, %v412_v20, %v413_v40  ;;  %v417_v61 = vsel %vm411_vm1, %v415_v21, %v416_v41  ;;  %v484_v34 = vld [vmem:[#allocation9 + $0x50] sm:$0xff]  ;;  %v490_v46 = vld [vmem:[#allocation9 + $0x80] sm:$0xff] }
 0x11b   : > { %v460_v54 = vmax.f32 %v4054_v50, 0.0  ;;  %v461_v55 = vmax.f32 %v4057_v47, 0.0  ;;  %v421_v62 = vsel %vm411_vm1, %v416_v41, %v420_v10  ;;  %v432_v63 = vadd.f32 %v414_v60, %v376_v48  ;;  %v488_v41 = vld [vmem:[#allocation9 + $0x70] sm:$0xff]  ;;  %v1080_v48 = vld [vmem:[#allocation9 + $0x808] sm:$0xff] }
 0x11c   : > { %v433_v0 = vadd.f32 %v417_v61, %v377_v51  ;;  %v419_v56 = vsel %vm411_vm1, %v413_v40, %v418_v9  ;;  %v435_v57 = vadd.f32 %v421_v62, %v379_v53  ;;  %v2789_v21 = vpack.c.bf16 %v476_v12, %v474_v11  ;;  %v486_v40 = vld [vmem:[#allocation9 + $0x60] sm:$0xff]  ;;  %v492_v49 = vld [vmem:[#allocation9 + $0x90] sm:$0xff]  ;;  %v1082_v51 = vld [vmem:[#allocation9 + $0x818] sm:$0xff] }
 0x11d   : > { %466 = vst [vmem:[#allocation2 + $0x20] sm:$0xff] %v460_v54  ;;  %467 = vst [vmem:[#allocation2 + $0x28] sm:$0xff] %v461_v55  ;;  %v434_v1 = vadd.f32 %v419_v56, %v378_v52  ;;  %v4070_v2 = vadd.f32 %v4037_v58, %v432_v63  ;;  %v2795_v32 = vpack.c.bf16 %v485_v29, %v483_v28  ;;  %v1079_v52 = vld [vmem:[#allocation9 + $0x800] sm:$0xff]  ;;  %v1081_v61 = vld [vmem:[#allocation9 + $0x810] sm:$0xff] }
 0x11e   : > { %v451_v3 = vadd.f32 %v4040_v59, %v433_v0  ;;  %v453_v6 = vadd.f32 %v4040_v59, %v435_v57  ;;  %v2797_v38 = vpack.c.bf16 %v484_v34, %v482_v33  ;;  %v2799_v39 = vpack.c.bf16 %v489_v37, %v487_v36  ;;  %v1084_v62 = vld [vmem:[#allocation9 + $0x828] sm:$0xff]  ;;  %v1086_v63 = vld [vmem:[#allocation9 + $0x838] sm:$0xff]  ;;  %v500_v28 = vld [vmem:[#allocation9 + $0xd0] sm:$0xff] }
 0x11f   : > { %v456_v4 = vmax.f32 %v4070_v2, 0.0  ;;  %v452_v7 = vadd.f32 %v4037_v58, %v434_v1  ;;  %v2801_v53 = vpack.c.bf16 %v488_v41, %v486_v40  ;;  %v2915_v60 = vpack.c.bf16 %v1082_v51, %v1080_v48  ;;  %v1083_v1 = vld [vmem:[#allocation9 + $0x820] sm:$0xff]  ;;  %v1090_v11 = vld [vmem:[#allocation9 + $0x858] sm:$0xff]  ;;  %v1096_v29 = vld [vmem:[#allocation9 + $0x888] sm:$0xff] }
 0x120   : > { %v457_v5 = vmax.f32 %v451_v3, 0.0  ;;  %v4078_v8 = vmax.f32 %v453_v6, 0.0  ;;  %v2803_v0 = vpack.c.bf16 %v493_v45, %v491_v44  ;;  %v2917_v56 = vpack.c.bf16 %v1081_v61, %v1079_v52  ;;  %v1085_v3 = vld [vmem:[#allocation9 + $0x830] sm:$0xff]  ;;  %v1088_v6 = vld [vmem:[#allocation9 + $0x848] sm:$0xff]  ;;  %v1095_v37 = vld [vmem:[#allocation9 + $0x880] sm:$0xff] }
 0x121   : > { %462 = vst [vmem:[#allocation2] sm:$0xff] %v456_v4  ;;  %v4080_v9 = vmax.f32 %v452_v7, 0.0  ;;  %v2919_v57 = vpack.c.bf16 %v1086_v63, %v1084_v62  ;;  %v495_v7 = vld [vmem:[#allocation9 + $0xa8] sm:$0xff]  ;;  %2916 = vmatprep.subr.bf16.mxu1 %v2915_v60  ;;  %v2921_v12 = vpack.c.bf16 %v1085_v3, %v1083_v1  ;;  %v2929_v33 = vpack.c.bf16 %v1093_v26, %v1091_v25  ;;  %v504_v40 = vld [vmem:[#allocation9 + $0xf0] sm:$0xff]  ;;  %v1102_v44 = vld [vmem:[#allocation9 + $0x8b8] sm:$0xff] }
 0x122   : > { %463 = vst [vmem:[#allocation2 + $0x8] sm:$0xff] %v457_v5  ;;  %v617_v15 = vrot.slane %v4078_v8, 1  ;;  %2918 = vmatpush1.bf16.msra.mxu1 %v2917_v56  ;;  %v1100_v41 = vld [vmem:[#allocation9 + $0x8a8] sm:$0xff]  ;;  %v506_v51 = vld [vmem:[#allocation9 + $0x100] sm:$0xff]  ;;  %v1101_v60 = vld [vmem:[#allocation9 + $0x8b0] sm:$0xff]  ;;  %v872_v2 = vrot.slane %v4078_v8, 2 }
 0x123   : > { %v614_v58 = vrot.slane %v4080_v9, 1  ;;  %2920 = vmatprep.subr.bf16.mxu1 %v2919_v57  ;;  %v507_v45 = vld [vmem:[#allocation9 + $0x108] sm:$0xff]  ;;  %v2935_v52 = vpack.c.bf16 %v1102_v44, %v1100_v41  ;;  %v508_v62 = vld [vmem:[#allocation9 + $0x110] sm:$0xff]  ;;  %v513_v57 = vld [vmem:[#allocation9 + $0x138] sm:$0xff] }
 0x124   : > { %v541_v10 = vld [vmem:[#allocation2 + $0x28] sm:$0x7f]  ;;  %v540_v20 = vld [vmem:[#allocation2 + $0x20] sm:$0x7f]  ;;  %v1104_v63 = vld [vmem:[#allocation9 + $0x8c8] sm:$0xff]  ;;  %v2821_v3 = vpack.c.bf16 %v508_v62, %v506_v51 }
 0x125   : > { %v621_v19 = vrot.slane %v541_v10, 1  ;;  %v619_v27 = vrot.slane %v540_v20, 1  ;;  %v497_v10 = vld [vmem:[#allocation9 + $0xb8] sm:$0xff]  ;;  %v511_v56 = vld [vmem:[#allocation9 + $0x128] sm:$0xff]  ;;  %v522_v41 = vld [vmem:[#allocation9 + $0x180] sm:$0xff] }
 0x126   : > { %v2807_v17 = vpack.c.bf16 %v497_v10, %v495_v7  ;;  %v501_v20 = vld [vmem:[#allocation9 + $0xd8] sm:$0xff]  ;;  %2922 = vmatpush1.bf16.msra.mxu1 %v2921_v12  ;;  %v1103_v10 = vld [vmem:[#allocation9 + $0x8c0] sm:$0xff]  ;;  %v2823_v12 = vpack.c.bf16 %v513_v57, %v511_v56  ;;  %v519_v25 = vld [vmem:[#allocation9 + $0x168] sm:$0xff] }
 0x127   : > { %v622_v30 = vsel %vm355_vm0, %v617_v15, %v621_v19  ;;  %v620_v35 = vsel %vm355_vm0, %v614_v58, %v619_v27  ;;  %v521_v26 = vld [vmem:[#allocation9 + $0x178] sm:$0xff]  ;;  %v1120_v51 = vld [vmem:[#allocation9 + $0x948] sm:$0xff]  ;;  %v1121_v56 = vld [vmem:[#allocation9 + $0x950] sm:$0xff] }
 0x128   : > { %v538_v16 = vld [vmem:[#allocation2] sm:$0xfe]  ;;  %v1124_v47 = vld [vmem:[#allocation9 + $0x968] sm:$0xff] }
 0x129   : > { %v539_v14 = vld [vmem:[#allocation2 + $0x8] sm:$0xfe]  ;;  %v613_v18 = vrot.slane %v538_v16, 1  ;;  %v1089_v16 = vld [vmem:[#allocation9 + $0x850] sm:$0xff]  ;;  %v1128_v50 = vld [vmem:[#allocation9 + $0x988] sm:$0xff] }
 0x12a   : > { %v616_v59 = vrot.slane %v539_v14, 1  ;;  %v2923_v14 = vpack.c.bf16 %v1090_v11, %v1088_v6  ;;  %v510_v6 = vld [vmem:[#allocation9 + $0x120] sm:$0xff]  ;;  %v1105_v11 = vld [vmem:[#allocation9 + $0x8d0] sm:$0xff] }
 0x12b   : > { %v615_v23 = vsel %vm355_vm0, %v613_v18, %v614_v58  ;;  %v1092_v18 = vld [vmem:[#allocation9 + $0x868] sm:$0xff]  ;;  %v1094_v58 = vld [vmem:[#allocation9 + $0x878] sm:$0xff] }
 0x12c   : > { %v618_v22 = vsel %vm355_vm0, %v616_v59, %v617_v15  ;;  %v1087_v15 = vld [vmem:[#allocation9 + $0x840] sm:$0xff]  ;;  %v496_v59 = vld [vmem:[#allocation9 + $0xb0] sm:$0xff]  ;;  %2924 = vmatprep.subr.bf16.mxu1 %v2923_v14  ;;  %v1110_v14 = vld [vmem:[#allocation9 + $0x8f8] sm:$0xff] }
 0x12d   : > { %693 = vmatprep.mubr.f32.mxu0 %v618_v22  ;;  %v2809_v22 = vpack.c.bf16 %v496_v59, %v494_v13  ;;  %v1108_v13 = vld [vmem:[#allocation9 + $0x8e8] sm:$0xff] }
 0x12e   : > { %694 = vmatmul.mubr.f32.vlgmr.msra.gmra.mrb[0].mxu0 %v615_v23  ;;  %v498_v23 = vld [vmem:[#allocation9 + $0xc0] sm:$0xff] }
 0x12f   : > { %2790 = vmatpush1.bf16.msra.mxu0 %v2789_v21  ;;  %699 = vmatprep.mubr.f32.mxu0 %v622_v30  ;;  %v2925_v21 = vpack.c.bf16 %v1089_v16, %v1087_v15  ;;  %v1098_v30 = vld [vmem:[#allocation9 + $0x898] sm:$0xff]  ;;  %v2813_v34 = vpack.c.bf16 %v500_v28, %v498_v23  ;;  %v515_v15 = vld [vmem:[#allocation9 + $0x148] sm:$0xff] }
 0x130   : > { %2792 = vmatprep.subr.bf16.mxu0 %v2791_v24  ;;  %v2927_v24 = vpack.c.bf16 %v1094_v58, %v1092_v18  ;;  %v2931_v36 = vpack.c.bf16 %v1098_v30, %v1096_v29  ;;  %v517_v16 = vld [vmem:[#allocation9 + $0x158] sm:$0xff]  ;;  %v514_v18 = vld [vmem:[#allocation9 + $0x140] sm:$0xff]  ;;  %v2943_v58 = vpack.c.bf16 %v1110_v14, %v1108_v13  ;;  %v1112_v23 = vld [vmem:[#allocation9 + $0x908] sm:$0xff] }
 0x131   : > { %2926 = vmatpush1.bf16.msra.mxu1 %v2925_v21  ;;  %v2827_v21 = vpack.c.bf16 %v517_v16, %v515_v15  ;;  %v518_v29 = vld [vmem:[#allocation9 + $0x160] sm:$0xff]  ;;  %v532_v13 = vld [vmem:[#allocation9 + $0x1d0] sm:$0xff]  ;;  %v535_v14 = vld [vmem:[#allocation9 + $0x1e8] sm:$0xff] }
 0x132   : > { %700 = vmatmul.mubr.f32.gmra.mrb[2].mxu0 %v620_v35  ;;  %v502_v35 = vld [vmem:[#allocation9 + $0xe0] sm:$0xff]  ;;  %2928 = vmatprep.subr.bf16.mxu1 %v2927_v24  ;;  %v1114_v24 = vld [vmem:[#allocation9 + $0x918] sm:$0xff] }
 0x133   : > { %2794 = vmatpush1.bf16.msra.mxu0 %v2793_v31  ;;  %705 = vmatprep.mubr.f32.mxu0 %v621_v19  ;;  %v499_v19 = vld [vmem:[#allocation9 + $0xc8] sm:$0xff]  ;;  %v2817_v48 = vpack.c.bf16 %v504_v40, %v502_v35  ;;  %v2947_v30 = vpack.c.bf16 %v1114_v24, %v1112_v23  ;;  %v537_v15 = vld [vmem:[#allocation9 + $0x1f8] sm:$0xff]  ;;  %v802_v23 = vld [vmem:[#allocation9 + $0x410] sm:$0xff] }
 0x134   : > { %2796 = vmatprep.subr.bf16.mxu0 %v2795_v32  ;;  %v503_v31 = vld [vmem:[#allocation9 + $0xe8] sm:$0xff]  ;;  %v505_v32 = vld [vmem:[#allocation9 + $0xf8] sm:$0xff] }
 0x135   : > { %2930 = vmatpush1.bf16.msra.mxu1 %v2929_v33  ;;  %v2831_v33 = vpack.c.bf16 %v521_v26, %v519_v25  ;;  %v1116_v35 = vld [vmem:[#allocation9 + $0x928] sm:$0xff]  ;;  %v807_v25 = vld [vmem:[#allocation9 + $0x438] sm:$0xff] }
 0x136   : > { %706 = vmatmul.mubr.f32.gmra.mrb[4].mxu0 %v619_v27  ;;  %v2811_v27 = vpack.c.bf16 %v501_v20, %v499_v19  ;;  %2932 = vmatprep.subr.bf16.mxu1 %v2931_v36  ;;  %v1107_v19 = vld [vmem:[#allocation9 + $0x8e0] sm:$0xff]  ;;  %v1109_v20 = vld [vmem:[#allocation9 + $0x8f0] sm:$0xff]  ;;  %v1118_v36 = vld [vmem:[#allocation9 + $0x938] sm:$0xff] }
 0x137   : > { %2798 = vmatpush1.bf16.msra.mxu0 %v2797_v38  ;;  %776 = vmatprep.mubr.f32.mxu0 %v457_v5  ;;  %v2805_v5 = vpack.c.bf16 %v492_v49, %v490_v46  ;;  %v1097_v38 = vld [vmem:[#allocation9 + $0x890] sm:$0xff]  ;;  %v509_v46 = vld [vmem:[#allocation9 + $0x118] sm:$0xff]  ;;  %v2951_v44 = vpack.c.bf16 %v1118_v36, %v1116_v35  ;;  %v805_v24 = vld [vmem:[#allocation9 + $0x428] sm:$0xff] }
 0x138   : > { %2800 = vmatprep.subr.bf16.mxu0 %v2799_v39  ;;  %v2815_v39 = vpack.c.bf16 %v505_v32, %v503_v31  ;;  %v2933_v49 = vpack.c.bf16 %v1097_v38, %v1095_v37  ;;  %v2819_v61 = vpack.c.bf16 %v509_v46, %v507_v45  ;;  %v1111_v31 = vld [vmem:[#allocation9 + $0x900] sm:$0xff]  ;;  %v1113_v32 = vld [vmem:[#allocation9 + $0x910] sm:$0xff]  ;;  %v523_v37 = vld [vmem:[#allocation9 + $0x188] sm:$0xff] }
 0x139   : > { %v525_v38 = vld [vmem:[#allocation9 + $0x198] sm:$0xff]  ;;  %v1115_v45 = vld [vmem:[#allocation9 + $0x920] sm:$0xff]  ;;  %v1117_v46 = vld [vmem:[#allocation9 + $0x930] sm:$0xff] }
 0x13a   : > { %2934 = vmatpush1.bf16.msra.mxu1 %v2933_v49  ;;  %v2835_v49 = vpack.c.bf16 %v525_v38, %v523_v37  ;;  %v808_v35 = vld [vmem:[#allocation9 + $0x440] sm:$0xff]  ;;  %v810_v36 = vld [vmem:[#allocation9 + $0x450] sm:$0xff]  ;;  %v813_v37 = vld [vmem:[#allocation9 + $0x468] sm:$0xff] }
 0x13b   : > { %2802 = vmatpush1.bf16.msra.mxu0 %v2801_v53  ;;  %v1099_v53 = vld [vmem:[#allocation9 + $0x8a0] sm:$0xff]  ;;  %2936 = vmatprep.subr.bf16.mxu1 %v2935_v52  ;;  %v1122_v52 = vld [vmem:[#allocation9 + $0x958] sm:$0xff] }
 0x13c   : > { %2804 = vmatprep.subr.bf16.mxu0 %v2803_v0  ;;  %v1106_v0 = vld [vmem:[#allocation9 + $0x8d8] sm:$0xff]  ;;  %v2937_v1 = vpack.c.bf16 %v1101_v60, %v1099_v53  ;;  %v527_v53 = vld [vmem:[#allocation9 + $0x1a8] sm:$0xff] }
 0x13d   : > { %v2939_v7 = vpack.c.bf16 %v1106_v0, %v1104_v63  ;;  %v529_v60 = vld [vmem:[#allocation9 + $0x1b8] sm:$0xff]  ;;  %v2955_v63 = vpack.c.bf16 %v1122_v52, %v1120_v51  ;;  %v1119_v0 = vld [vmem:[#allocation9 + $0x940] sm:$0xff] }
 0x13e   : > { %2938 = vmatpush1.bf16.msra.mxu1 %v2937_v1  ;;  %v2839_v57 = vpack.c.bf16 %v529_v60, %v527_v53  ;;  %v526_v1 = vld [vmem:[#allocation9 + $0x1a0] sm:$0xff]  ;;  %v815_v38 = vld [vmem:[#allocation9 + $0x478] sm:$0xff] }
 0x13f   : > { %2806 = vmatpush1.bf16.msra.mxu0 %v2805_v5  ;;  %v512_v5 = vld [vmem:[#allocation9 + $0x130] sm:$0xff]  ;;  %2940 = vmatprep.subr.bf16.mxu1 %v2939_v7  ;;  %v533_v7 = vld [vmem:[#allocation9 + $0x1d8] sm:$0xff]  ;;  %v816_v60 = vld [vmem:[#allocation9 + $0x480] sm:$0xff] }
 0x140   : > { %2808 = vmatprep.subr.bf16.mxu0 %v2807_v17  ;;  %v2941_v17 = vpack.c.bf16 %v1105_v11, %v1103_v10  ;;  %v2825_v59 = vpack.c.bf16 %v512_v5, %v510_v6  ;;  %v531_v6 = vld [vmem:[#allocation9 + $0x1c8] sm:$0xff]  ;;  %v2957_v10 = vpack.c.bf16 %v1121_v56, %v1119_v0  ;;  %v530_v5 = vld [vmem:[#allocation9 + $0x1c0] sm:$0xff] }
 0x141   : > { %v2845_v16 = vpack.c.bf16 %v532_v13, %v530_v5  ;;  %v829_v5 = vld [vmem:[#allocation9 + $0x4e8] sm:$0xff]  ;;  %v831_v13 = vld [vmem:[#allocation9 + $0x4f8] sm:$0xff] }
 0x142   : > { %2942 = vmatpush1.bf16.msra.mxu1 %v2941_v17  ;;  %v2847_v17 = vpack.c.bf16 %v537_v15, %v535_v14  ;;  %v2879_v15 = vpack.c.bf16 %v831_v13, %v829_v5 }
 0x143   : > { %2810 = vmatpush1.bf16.msra.mxu0 %v2809_v22  ;;  %v516_v22 = vld [vmem:[#allocation9 + $0x150] sm:$0xff]  ;;  %2944 = vmatprep.subr.bf16.mxu1 %v2943_v58  ;;  %v801_v58 = vld [vmem:[#allocation9 + $0x408] sm:$0xff] }
 0x144   : > { %2812 = vmatprep.subr.bf16.mxu0 %v2811_v27  ;;  %v2945_v27 = vpack.c.bf16 %v1109_v20, %v1107_v19  ;;  %v2829_v28 = vpack.c.bf16 %v516_v22, %v514_v18  ;;  %v536_v18 = vld [vmem:[#allocation9 + $0x1f0] sm:$0xff]  ;;  %v803_v19 = vld [vmem:[#allocation9 + $0x418] sm:$0xff]  ;;  %v800_v22 = vld [vmem:[#allocation9 + $0x400] sm:$0xff] }
 0x145   : > { %v2853_v26 = vpack.c.bf16 %v802_v23, %v800_v22  ;;  %v837_v22 = vld [vmem:[#allocation9 + $0x528] sm:$0xff]  ;;  %v839_v23 = vld [vmem:[#allocation9 + $0x538] sm:$0xff] }
 0x146   : > { %2946 = vmatpush1.bf16.msra.mxu1 %v2945_v27  ;;  %v2855_v27 = vpack.c.bf16 %v807_v25, %v805_v24  ;;  %v2887_v25 = vpack.c.bf16 %v839_v23, %v837_v22  ;;  %v1129_v22 = vld [vmem:[#allocation9 + $0x990] sm:$0xff]  ;;  %v1132_v23 = vld [vmem:[#allocation9 + $0x9a8] sm:$0xff] }
 0x147   : > { %2814 = vmatpush1.bf16.msra.mxu0 %v2813_v34  ;;  %v520_v34 = vld [vmem:[#allocation9 + $0x170] sm:$0xff]  ;;  %2948 = vmatprep.subr.bf16.mxu1 %v2947_v30  ;;  %v809_v30 = vld [vmem:[#allocation9 + $0x448] sm:$0xff] }
 0x148   : > { %2816 = vmatprep.subr.bf16.mxu0 %v2815_v39  ;;  %v2949_v39 = vpack.c.bf16 %v1113_v32, %v1111_v31  ;;  %v2833_v40 = vpack.c.bf16 %v520_v34, %v518_v29  ;;  %v806_v29 = vld [vmem:[#allocation9 + $0x430] sm:$0xff]  ;;  %v811_v31 = vld [vmem:[#allocation9 + $0x458] sm:$0xff] }
 0x149   : > { %v2859_v34 = vpack.c.bf16 %v811_v31, %v809_v30 }
 0x14a   : > { %2950 = vmatpush1.bf16.msra.mxu1 %v2949_v39  ;;  %v473_v39 = vld [vmem:[#allocation2 + $0x28] sm:$0x3f] }
 0x14b   : > { %2818 = vmatpush1.bf16.msra.mxu0 %v2817_v48  ;;  %v524_v48 = vld [vmem:[#allocation9 + $0x190] sm:$0xff]  ;;  %2952 = vmatprep.subr.bf16.mxu1 %v2951_v44  ;;  %v812_v44 = vld [vmem:[#allocation9 + $0x460] sm:$0xff] }
 0x14c   : > { %2820 = vmatprep.subr.bf16.mxu0 %v2819_v61  ;;  %v2953_v61 = vpack.c.bf16 %v1117_v46, %v1115_v45  ;;  %v2837_v62 = vpack.c.bf16 %v524_v48, %v522_v41  ;;  %v2861_v41 = vpack.c.bf16 %v810_v36, %v808_v35  ;;  %v814_v45 = vld [vmem:[#allocation9 + $0x470] sm:$0xff]  ;;  %v819_v48 = vld [vmem:[#allocation9 + $0x498] sm:$0xff] }
 0x14d   : > { %v472_v46 = vld [vmem:[#allocation2 + $0x20] sm:$0x3f]  ;;  %v2865_v52 = vpack.c.bf16 %v814_v45, %v812_v44  ;;  %v848_v45 = vld [vmem:[#allocation9 + $0x580] sm:$0xff] }
 0x14e   : > { %2954 = vmatpush1.bf16.msra.mxu1 %v2953_v61  ;;  %v818_v61 = vld [vmem:[#allocation9 + $0x490] sm:$0xff]  ;;  %v847_v35 = vld [vmem:[#allocation9 + $0x578] sm:$0xff] }
 0x14f   : > { %2822 = vmatpush1.bf16.msra.mxu0 %v2821_v3  ;;  %v528_v3 = vld [vmem:[#allocation9 + $0x1b0] sm:$0xff]  ;;  %2956 = vmatprep.subr.bf16.mxu1 %v2955_v63  ;;  %v823_v63 = vld [vmem:[#allocation9 + $0x4b8] sm:$0xff]  ;;  %v2869_v0 = vpack.c.bf16 %v818_v61, %v816_v60  ;;  %v857_v61 = vld [vmem:[#allocation9 + $0x5c8] sm:$0xff] }
 0x150   : > { %2824 = vmatprep.subr.bf16.mxu0 %v2823_v12  ;;  %v2841_v11 = vpack.c.bf16 %v528_v3, %v526_v1  ;;  %v2843_v12 = vpack.c.bf16 %v533_v7, %v531_v6  ;;  %v822_v1 = vld [vmem:[#allocation9 + $0x4b0] sm:$0xff]  ;;  %v825_v3 = vld [vmem:[#allocation9 + $0x4c8] sm:$0xff]  ;;  %v827_v6 = vld [vmem:[#allocation9 + $0x4d8] sm:$0xff] }
 0x151   : > { %v854_v60 = vld [vmem:[#allocation9 + $0x5b0] sm:$0xff] }
 0x152   : > { %2958 = vmatpush1.bf16.msra.mxu1 %v2957_v10  ;;  %v2875_v10 = vpack.c.bf16 %v827_v6, %v825_v3  ;;  %v863_v3 = vld [vmem:[#allocation9 + $0x5f8] sm:$0xff] }
 0x153   : > { %2826 = vmatpush1.bf16.msra.mxu0 %v2825_v59  ;;  %v534_v59 = vld [vmem:[#allocation9 + $0x1e0] sm:$0xff] }
 0x154   : > { %2828 = vmatprep.subr.bf16.mxu0 %v2827_v21  ;;  %v2849_v20 = vpack.c.bf16 %v536_v18, %v534_v59  ;;  %v2851_v21 = vpack.c.bf16 %v803_v19, %v801_v58  ;;  %v833_v59 = vld [vmem:[#allocation9 + $0x508] sm:$0xff]  ;;  %v835_v18 = vld [vmem:[#allocation9 + $0x518] sm:$0xff] }
 0x155   : > { %v2883_v19 = vpack.c.bf16 %v835_v18, %v833_v59 }
 0x157   : > { %2830 = vmatpush1.bf16.msra.mxu0 %v2829_v28  ;;  %v804_v28 = vld [vmem:[#allocation9 + $0x420] sm:$0xff] }
 0x158   : > { %2832 = vmatprep.subr.bf16.mxu0 %v2831_v33  ;;  %v2857_v32 = vpack.c.bf16 %v806_v29, %v804_v28  ;;  %v796_v33 = vld [vmem:[#allocation2 + $0x8] sm:$0xfc]  ;;  %v841_v28 = vld [vmem:[#allocation9 + $0x548] sm:$0xff]  ;;  %v843_v29 = vld [vmem:[#allocation9 + $0x558] sm:$0xff] }
 0x159   : > { %v2891_v31 = vpack.c.bf16 %v843_v29, %v841_v28  ;;  %v1136_v29 = vld [vmem:[#allocation9 + $0x9c8] sm:$0xff] }
 0x15b   : > { %2834 = vmatpush1.bf16.msra.mxu0 %v2833_v40  ;;  %v871_v40 = vrot.slane %v796_v33, 2  ;;  %v842_v33 = vld [vmem:[#allocation9 + $0x550] sm:$0xff] }
 0x15c   : > { %2836 = vmatprep.subr.bf16.mxu0 %v2835_v49  ;;  %v817_v49 = vld [vmem:[#allocation9 + $0x488] sm:$0xff] }
 0x15d   : > { %v873_v51 = vsel %vm411_vm1, %v871_v40, %v872_v2  ;;  %v2867_v53 = vpack.c.bf16 %v819_v48, %v817_v49  ;;  %v849_v40 = vld [vmem:[#allocation9 + $0x588] sm:$0xff]  ;;  %v855_v48 = vld [vmem:[#allocation9 + $0x5b8] sm:$0xff] }
 0x15e   : > { %v853_v49 = vld [vmem:[#allocation9 + $0x5a8] sm:$0xff] }
 0x15f   : > { %2838 = vmatpush1.bf16.msra.mxu0 %v2837_v62  ;;  %v821_v62 = vld [vmem:[#allocation9 + $0x4a8] sm:$0xff] }
 0x160   : > { %2840 = vmatprep.subr.bf16.mxu0 %v2839_v57  ;;  %v2871_v56 = vpack.c.bf16 %v823_v63, %v821_v62  ;;  %v820_v57 = vld [vmem:[#allocation9 + $0x4a0] sm:$0xff]  ;;  %v859_v62 = vld [vmem:[#allocation9 + $0x5d8] sm:$0xff] }
 0x161   : > { %v2873_v7 = vpack.c.bf16 %v822_v1, %v820_v57  ;;  %v858_v57 = vld [vmem:[#allocation9 + $0x5d0] sm:$0xff]  ;;  %v861_v1 = vld [vmem:[#allocation9 + $0x5e8] sm:$0xff] }
 0x163   : > { %2842 = vmatpush1.bf16.msra.mxu0 %v2841_v11  ;;  %v824_v11 = vld [vmem:[#allocation9 + $0x4c0] sm:$0xff] }
 0x164   : > { %2844 = vmatprep.subr.bf16.mxu0 %v2843_v12  ;;  %v826_v12 = vld [vmem:[#allocation9 + $0x4d0] sm:$0xff] }
 0x165   : > { %v2877_v14 = vpack.c.bf16 %v826_v12, %v824_v11  ;;  %v862_v11 = vld [vmem:[#allocation9 + $0x5f0] sm:$0xff]  ;;  %v795_v12 = vld [vmem:[#allocation2] sm:$0xfc] }
 0x166   : > { %v868_v13 = vrot.slane %v795_v12, 2 }
 0x167   : > { %2846 = vmatpush1.bf16.msra.mxu0 %v2845_v16  ;;  %v828_v16 = vld [vmem:[#allocation9 + $0x4e0] sm:$0xff] }
 0x168   : > { %2848 = vmatprep.subr.bf16.mxu0 %v2847_v17  ;;  %v830_v17 = vld [vmem:[#allocation9 + $0x4f0] sm:$0xff] }
 0x169   : > { %v2881_v58 = vpack.c.bf16 %v830_v17, %v828_v16  ;;  %v874_v17 = vrot.slane %v460_v54, 2  ;;  %v1130_v54 = vld [vmem:[#allocation9 + $0x998] sm:$0xff] }
 0x16b   : > { %2850 = vmatpush1.bf16.msra.mxu0 %v2849_v20  ;;  %v832_v20 = vld [vmem:[#allocation9 + $0x500] sm:$0xff] }
 0x16c   : > { %2852 = vmatprep.subr.bf16.mxu0 %v2851_v21  ;;  %v834_v21 = vld [vmem:[#allocation9 + $0x510] sm:$0xff] }
 0x16d   : > { %v2885_v24 = vpack.c.bf16 %v834_v21, %v832_v20  ;;  %v2963_v21 = vpack.c.bf16 %v1130_v54, %v1128_v50  ;;  %v1016_v50 = vld [vmem:[#allocation9 + $0x630] sm:$0xff] }
 0x16e   : > { %777 = vmatmul.mubr.f32.vlgmr.msra.gmra.mrb[0].mxu0 %v456_v4  ;;  %v2863_v4 = vpack.c.bf16 %v815_v38, %v813_v37  ;;  %v844_v38 = vld [vmem:[#allocation9 + $0x560] sm:$0xff] }
 0x16f   : > { %782 = vmatprep.mubr.f32.mxu0 %v4078_v8  ;;  %2854 = vmatpush1.bf16.msra.mxu0 %v2853_v26  ;;  %v836_v26 = vld [vmem:[#allocation9 + $0x520] sm:$0xff] }
 0x170   : > { %2856 = vmatprep.subr.bf16.mxu0 %v2855_v27  ;;  %v838_v27 = vld [vmem:[#allocation9 + $0x530] sm:$0xff]  ;;  %v1127_v8 = vld [vmem:[#allocation9 + $0x980] sm:$0xff] }
 0x171   : > { %v2889_v30 = vpack.c.bf16 %v838_v27, %v836_v26  ;;  %v1131_v26 = vld [vmem:[#allocation9 + $0x9a0] sm:$0xff]  ;;  %v1133_v27 = vld [vmem:[#allocation9 + $0x9b0] sm:$0xff] }
 0x172   : > { %783 = vmatmul.mubr.f32.gmra.mrb[2].mxu0 %v4080_v9  ;;  %v2969_v28 = vpack.c.bf16 %v1133_v27, %v1131_v26 }
 0x173   : > { %788 = vmatprep.mubr.f32.mxu0 %v473_v39  ;;  %2858 = vmatpush1.bf16.msra.mxu0 %v2857_v32  ;;  %v840_v32 = vld [vmem:[#allocation9 + $0x540] sm:$0xff]  ;;  %v846_v39 = vld [vmem:[#allocation9 + $0x570] sm:$0xff] }
 0x174   : > { %2860 = vmatprep.subr.bf16.mxu0 %v2859_v34  ;;  %v845_v34 = vld [vmem:[#allocation9 + $0x568] sm:$0xff]  ;;  %v2893_v36 = vpack.c.bf16 %v842_v33, %v840_v32  ;;  %v1135_v32 = vld [vmem:[#allocation9 + $0x9c0] sm:$0xff]  ;;  %v1137_v33 = vld [vmem:[#allocation9 + $0x9d0] sm:$0xff] }
 0x175   : > { %v2895_v37 = vpack.c.bf16 %v847_v35, %v845_v34  ;;  %v2973_v34 = vpack.c.bf16 %v1137_v33, %v1135_v32  ;;  %v1140_v35 = vld [vmem:[#allocation9 + $0x9e8] sm:$0xff] }
 0x176   : > { %789 = vmatmul.mubr.f32.gmra.mrb[4].mxu0 %v472_v46  ;;  %v850_v46 = vld [vmem:[#allocation9 + $0x590] sm:$0xff] }
 0x177   : > { %2862 = vmatpush1.bf16.msra.mxu0 %v2861_v41  ;;  %948 = vmatprep.mubr.f32.mxu0 %v873_v51  ;;  %v851_v41 = vld [vmem:[#allocation9 + $0x598] sm:$0xff]  ;;  %v2901_v51 = vpack.c.bf16 %v850_v46, %v848_v45  ;;  %v973_v45 = vld [vmem:[#allocation10] sm:$0x3] }
 0x178   : > { %2864 = vmatprep.subr.bf16.mxu0 %v2863_v4  ;;  %v2897_v4 = vpack.c.bf16 %v846_v39, %v844_v38  ;;  %v2899_v44 = vpack.c.bf16 %v851_v41, %v849_v40  ;;  %v1139_v38 = vld [vmem:[#allocation9 + $0x9e0] sm:$0xff]  ;;  %v1141_v39 = vld [vmem:[#allocation9 + $0x9f0] sm:$0xff]  ;;  %v1011_v41 = vld [vmem:[#allocation9 + $0x608] sm:$0xff]  ;;  %v978_v46 = vrot.slane %v973_v45, %v4026_v42 }
 0x179   : > { %v2977_v40 = vpack.c.bf16 %v1141_v39, %v1139_v38  ;;  %v1029_v38 = vld [vmem:[#allocation9 + $0x698] sm:$0xff]  ;;  %v1026_v39 = vld [vmem:[#allocation9 + $0x680] sm:$0xff] }
 0x17b   : > { %2866 = vmatpush1.bf16.msra.mxu0 %v2865_v52  ;;  %v2903_v52 = vpack.c.bf16 %v855_v48, %v853_v49  ;;  %v982_v49 = vrot.slane %v973_v45, %v4028_v43 }
 0x17c   : > { %2868 = vmatprep.subr.bf16.mxu0 %v2867_v53  ;;  %v852_v53 = vld [vmem:[#allocation9 + $0x5a0] sm:$0xff] }
 0x17d   : > { %v2905_v63 = vpack.c.bf16 %v854_v60, %v852_v53 }
 0x17f   : > { %2870 = vmatpush1.bf16.msra.mxu0 %v2869_v0  ;;  %v2907_v0 = vpack.c.bf16 %v859_v62, %v857_v61 }
 0x180   : > { %2872 = vmatprep.subr.bf16.mxu0 %v2871_v56  ;;  %v856_v56 = vld [vmem:[#allocation9 + $0x5c0] sm:$0xff] }
 0x181   : > { %v2909_v6 = vpack.c.bf16 %v858_v57, %v856_v56 }
 0x183   : > { %2874 = vmatpush1.bf16.msra.mxu0 %v2873_v7  ;;  %v2911_v7 = vpack.c.bf16 %v863_v3, %v861_v1 }
 0x184   : > { %2876 = vmatprep.subr.bf16.mxu0 %v2875_v10  ;;  %v860_v10 = vld [vmem:[#allocation9 + $0x5e0] sm:$0xff] }
 0x185   : > { %v2913_v5 = vpack.c.bf16 %v862_v11, %v860_v10 }
 0x187   : > { %2878 = vmatpush1.bf16.msra.mxu0 %v2877_v14  ;;  %v876_v14 = vrot.slane %v461_v55, 2  ;;  %v1126_v55 = vld [vmem:[#allocation9 + $0x978] sm:$0xff] }
 0x188   : > { %2880 = vmatprep.subr.bf16.mxu0 %v2879_v15  ;;  %v869_v15 = vrot.slane %v4080_v9, 2  ;;  %v1123_v9 = vld [vmem:[#allocation9 + $0x960] sm:$0xff] }
 0x189   : > { %v877_v59 = vsel %vm411_vm1, %v872_v2, %v876_v14  ;;  %v2965_v2 = vpack.c.bf16 %v1129_v22, %v1127_v8  ;;  %v1021_v8 = vld [vmem:[#allocation9 + $0x658] sm:$0xff] }
 0x18a   : > { %v870_v16 = vsel %vm411_vm1, %v868_v13, %v869_v15  ;;  %v875_v18 = vsel %vm411_vm1, %v869_v15, %v874_v17  ;;  %v1010_v13 = vld [vmem:[#allocation9 + $0x600] sm:$0xff] }
 0x18b   : > { %2882 = vmatpush1.bf16.msra.mxu0 %v2881_v58  ;;  %v2959_v58 = vpack.c.bf16 %v1126_v55, %v1124_v47 }
 0x18c   : > { %2884 = vmatprep.subr.bf16.mxu0 %v2883_v19  ;;  %v1125_v19 = vld [vmem:[#allocation9 + $0x970] sm:$0xff] }
 0x18d   : > { %v2961_v20 = vpack.c.bf16 %v1125_v19, %v1123_v9  ;;  %2960 = vmatprep.subr.bf16.mxu1 %v2959_v58 }
 0x18f   : > { %2886 = vmatpush1.bf16.msra.mxu0 %v2885_v24  ;;  %2962 = vmatpush1.bf16.msra.mxu1 %v2961_v20  ;;  %v1134_v24 = vld [vmem:[#allocation9 + $0x9b8] sm:$0xff]  ;;  %v1014_v20 = vld [vmem:[#allocation9 + $0x620] sm:$0xff] }
 0x190   : > { %2888 = vmatprep.subr.bf16.mxu0 %v2887_v25  ;;  %2964 = vmatprep.subr.bf16.mxu1 %v2963_v21  ;;  %v2967_v25 = vpack.c.bf16 %v1134_v24, %v1132_v23  ;;  %v1019_v21 = vld [vmem:[#allocation9 + $0x648] sm:$0xff]  ;;  %v2985_v22 = vpack.c.bf16 %v1016_v50, %v1014_v20  ;;  %v1018_v24 = vld [vmem:[#allocation9 + $0x640] sm:$0xff]  ;;  %v1630_v50 = vld [vmem:[#allocation9 + $0xe70] sm:$0xff] }
 0x191   : > { %v2987_v23 = vpack.c.bf16 %v1021_v8, %v1019_v21  ;;  %v1628_v20 = vld [vmem:[#allocation9 + $0xe60] sm:$0xff]  ;;  %v1036_v21 = vld [vmem:[#allocation9 + $0x6d0] sm:$0xff]  ;;  %v1633_v8 = vld [vmem:[#allocation9 + $0xe88] sm:$0xff] }
 0x193   : > { %2890 = vmatpush1.bf16.msra.mxu0 %v2889_v30  ;;  %2966 = vmatpush1.bf16.msra.mxu1 %v2965_v2  ;;  %v1138_v30 = vld [vmem:[#allocation9 + $0x9d8] sm:$0xff] }
 0x194   : > { %2892 = vmatprep.subr.bf16.mxu0 %v2891_v31  ;;  %2968 = vmatprep.subr.bf16.mxu1 %v2967_v25  ;;  %v2971_v31 = vpack.c.bf16 %v1138_v30, %v1136_v29  ;;  %v1020_v25 = vld [vmem:[#allocation9 + $0x650] sm:$0xff]  ;;  %v1025_v29 = vld [vmem:[#allocation9 + $0x678] sm:$0xff] }
 0x197   : > { %2894 = vmatpush1.bf16.msra.mxu0 %v2893_v36  ;;  %2970 = vmatpush1.bf16.msra.mxu1 %v2969_v28  ;;  %v1142_v36 = vld [vmem:[#allocation9 + $0x9f8] sm:$0xff]  ;;  %v1023_v28 = vld [vmem:[#allocation9 + $0x668] sm:$0xff] }
 0x198   : > { %2896 = vmatprep.subr.bf16.mxu0 %v2895_v37  ;;  %2972 = vmatprep.subr.bf16.mxu1 %v2971_v31  ;;  %v2975_v37 = vpack.c.bf16 %v1142_v36, %v1140_v35  ;;  %v2989_v31 = vpack.c.bf16 %v1020_v25, %v1018_v24  ;;  %v2991_v33 = vpack.c.bf16 %v1025_v29, %v1023_v28  ;;  %v1024_v35 = vld [vmem:[#allocation9 + $0x670] sm:$0xff]  ;;  %v1632_v28 = vld [vmem:[#allocation9 + $0xe80] sm:$0xff] }
 0x199   : > { %v3121_v24 = vpack.c.bf16 %v1630_v50, %v1628_v20  ;;  %v1634_v29 = vld [vmem:[#allocation9 + $0xe90] sm:$0xff]  ;;  %v1054_v20 = vld [vmem:[#allocation9 + $0x760] sm:$0xff] }
 0x19b   : > { %2898 = vmatpush1.bf16.msra.mxu0 %v2897_v4  ;;  %2974 = vmatpush1.bf16.msra.mxu1 %v2973_v34  ;;  %v1013_v4 = vld [vmem:[#allocation9 + $0x618] sm:$0xff]  ;;  %v1022_v34 = vld [vmem:[#allocation9 + $0x660] sm:$0xff] }
 0x19c   : > { %2900 = vmatprep.subr.bf16.mxu0 %v2899_v44  ;;  %2976 = vmatprep.subr.bf16.mxu1 %v2975_v37  ;;  %v2979_v44 = vpack.c.bf16 %v1013_v4, %v1011_v41  ;;  %v1027_v37 = vld [vmem:[#allocation9 + $0x688] sm:$0xff]  ;;  %v1619_v4 = vld [vmem:[#allocation9 + $0xe18] sm:$0xff]  ;;  %v2993_v45 = vpack.c.bf16 %v1024_v35, %v1022_v34 }
 0x19d   : > { %v1617_v41 = vld [vmem:[#allocation9 + $0xe08] sm:$0xff]  ;;  %v1045_v35 = vld [vmem:[#allocation9 + $0x718] sm:$0xff] }
 0x19e   : > { %v1043_v34 = vld [vmem:[#allocation9 + $0x708] sm:$0xff] }
 0x19f   : > { %2902 = vmatpush1.bf16.msra.mxu0 %v2901_v51  ;;  %2978 = vmatpush1.bf16.msra.mxu1 %v2977_v40  ;;  %v1028_v40 = vld [vmem:[#allocation9 + $0x690] sm:$0xff] }
 0x1a0   : > { %2904 = vmatprep.subr.bf16.mxu0 %v2903_v52  ;;  %2980 = vmatprep.subr.bf16.mxu1 %v2979_v44  ;;  %v1616_v44 = vld [vmem:[#allocation9 + $0xe00] sm:$0xff] }
 0x1a3   : > { %2906 = vmatpush1.bf16.msra.mxu0 %v2905_v63 }
 0x1a4   : > { %2908 = vmatprep.subr.bf16.mxu0 %v2907_v0 }
 0x1a7   : > { %2910 = vmatpush1.bf16.msra.mxu0 %v2909_v6 }
 0x1a8   : > { %2912 = vmatprep.subr.bf16.mxu0 %v2911_v7 }
 0x1ab   : > { %2914 = vmatpush1.bf16.msra.mxu0 %v2913_v5 }
 0x1ae   : > { %949 = vmatmul.mubr.f32.vlgmr.msra.gmra.mrb[0].mxu0 %v870_v16 }
 0x1af   : > { %954 = vmatprep.mubr.f32.mxu0 %v877_v59  ;;  %v1017_v59 = vld [vmem:[#allocation9 + $0x638] sm:$0xff] }
 0x1b2   : > { %955 = vmatmul.mubr.f32.gmra.mrb[2].mxu0 %v875_v18 }
 0x1b3   : > { %960 = vmatprep.mubr.f32.mxu0 %v876_v14  ;;  %v1012_v14 = vld [vmem:[#allocation9 + $0x610] sm:$0xff] }
 0x1b4   : > { %v2981_v58 = vpack.c.bf16 %v1012_v14, %v1010_v13  ;;  %v1030_v13 = vld [vmem:[#allocation9 + $0x6a0] sm:$0xff] }
 0x1b6   : > { %961 = vmatmul.mubr.f32.gmra.mrb[4].mxu0 %v874_v17  ;;  %v1015_v17 = vld [vmem:[#allocation9 + $0x628] sm:$0xff] }
 0x1b7   : > { %v2983_v19 = vpack.c.bf16 %v1017_v59, %v1015_v17  ;;  %v1032_v59 = vld [vmem:[#allocation9 + $0x6b0] sm:$0xff] }
 0x281   : > { %v950_v48 = vpop.f32.mrb[0].mxu0 }
 0x282   : > { %v4108_v51 = vadd.f32 %v978_v46, %v950_v48  ;;  %v952_v52 = vpop.f32.mrb[1].mxu0  ;;  %v1621_v48 = vld [vmem:[#allocation9 + $0xe28] sm:$0xff] }
 0x283   : > { %v4110_v53 = vadd.f32 %v982_v49, %v952_v52  ;;  %v1623_v52 = vld [vmem:[#allocation9 + $0xe38] sm:$0xff] }
 0x284   : > { %v991_v60 = vmax.f32 %v4108_v51, 0.0 }
 0x285   : > { %v992_v61 = vmax.f32 %v4110_v53, 0.0  ;;  %v956_v62 = vpop.f32.mrb[2].mxu0  ;;  %v1034_v53 = vld [vmem:[#allocation9 + $0x6c0] sm:$0xff] }
 0x286   : > { %997 = vst [vmem:[#allocation3] sm:$0xff] %v991_v60  ;;  %v958_v63 = vpop.f32.mrb[3].mxu0  ;;  %v987_v56 = vadd.f32 %v978_v46, %v956_v62  ;;  %v2995_v62 = vpack.c.bf16 %v1029_v38, %v1027_v37  ;;  %v3005_v25 = vpack.c.bf16 %v1036_v21, %v1034_v53  ;;  %v1042_v38 = vld [vmem:[#allocation9 + $0x700] sm:$0xff]  ;;  %v1650_v21 = vld [vmem:[#allocation9 + $0xf10] sm:$0xff] }
 0x287   : > { %998 = vst [vmem:[#allocation3 + $0x8] sm:$0xff] %v992_v61  ;;  %v988_v0 = vadd.f32 %v982_v49, %v958_v63 }
 0x288   : > { %v4120_v10 = vmax.f32 %v987_v56, 0.0  ;;  %v1620_v56 = vld [vmem:[#allocation9 + $0xe20] sm:$0xff] }
 0x289   : > { %v962_v57 = vpop.f32.mrb[4].mxu0  ;;  %v4118_v6 = vmax.f32 %v988_v0, 0.0  ;;  %v3111_v0 = vpack.c.bf16 %v1623_v52, %v1621_v48  ;;  %v1049_v48 = vld [vmem:[#allocation9 + $0x738] sm:$0xff] }
 0x28a   : > { %v989_v1 = vadd.f32 %v978_v46, %v962_v57  ;;  %v964_v3 = vpop.f32.mrb[5].mxu0  ;;  %v1150_v55 = vrot.slane %v4120_v10, 1  ;;  %v3107_v46 = vpack.c.bf16 %v1619_v4, %v1617_v41  ;;  %v1622_v57 = vld [vmem:[#allocation9 + $0xe30] sm:$0xff]  ;;  %v3011_v4 = vpack.c.bf16 %v1045_v35, %v1043_v34  ;;  %v1657_v34 = vld [vmem:[#allocation9 + $0xf48] sm:$0xff]  ;;  %v1659_v35 = vld [vmem:[#allocation9 + $0xf58] sm:$0xff] }
 0x28b   : > { %v990_v7 = vadd.f32 %v982_v49, %v964_v3  ;;  %v1153_v47 = vrot.slane %v4118_v6, 1  ;;  %v1618_v49 = vld [vmem:[#allocation9 + $0xe10] sm:$0xff]  ;;  %v1031_v3 = vld [vmem:[#allocation9 + $0x6a8] sm:$0xff]  ;;  %v1408_v51 = vrot.slane %v4118_v6, 2 }
 0x28c   : > { %v995_v11 = vmax.f32 %v989_v1, 0.0  ;;  %v3109_v63 = vpack.c.bf16 %v1618_v49, %v1616_v44  ;;  %v1625_v1 = vld [vmem:[#allocation9 + $0xe48] sm:$0xff]  ;;  %3108 = vmatprep.subr.bf16.mxu0 %v3107_v46  ;;  %v1638_v41 = vld [vmem:[#allocation9 + $0xeb0] sm:$0xff]  ;;  %v1643_v46 = vld [vmem:[#allocation9 + $0xed8] sm:$0xff] }
 0x28d   : > { %v996_v12 = vmax.f32 %v990_v7, 0.0  ;;  %v1074_v5 = vld [vmem:[#allocation3] sm:$0xfe]  ;;  %v1033_v7 = vld [vmem:[#allocation9 + $0x6b8] sm:$0xff]  ;;  %v1044_v44 = vld [vmem:[#allocation9 + $0x710] sm:$0xff] }
 0x28e   : > { %1001 = vst [vmem:[#allocation3 + $0x20] sm:$0x3f] %v995_v11  ;;  %v1075_v15 = vld [vmem:[#allocation3 + $0x8] sm:$0xfe]  ;;  %v1149_v16 = vrot.slane %v1074_v5, 1  ;;  %v1627_v11 = vld [vmem:[#allocation9 + $0xe58] sm:$0xff]  ;;  %3110 = vmatpush1.bf16.msra.mxu0 %v3109_v63  ;;  %v2997_v5 = vpack.c.bf16 %v1028_v40, %v1026_v39  ;;  %v2999_v17 = vpack.c.bf16 %v1033_v7, %v1031_v3 }
 0x28f   : > { %1002 = vst [vmem:[#allocation3 + $0x28] sm:$0x3f] %v996_v12  ;;  %v1152_v18 = vrot.slane %v1075_v15, 1  ;;  %v3113_v12 = vpack.c.bf16 %v1622_v57, %v1620_v56  ;;  %v3115_v14 = vpack.c.bf16 %v1627_v11, %v1625_v1  ;;  %v1624_v15 = vld [vmem:[#allocation9 + $0xe40] sm:$0xff]  ;;  %3112 = vmatprep.subr.bf16.mxu0 %v3111_v0  ;;  %v1047_v49 = vld [vmem:[#allocation9 + $0x728] sm:$0xff]  ;;  %v1642_v57 = vld [vmem:[#allocation9 + $0xed0] sm:$0xff] }
 0x290   : > { %v1151_v54 = vsel %vm355_vm0, %v1149_v16, %v1150_v55  ;;  %v1626_v16 = vld [vmem:[#allocation9 + $0xe50] sm:$0xff]  ;;  %v1636_v40 = vld [vmem:[#allocation9 + $0xea0] sm:$0xff]  ;;  %v3015_v1 = vpack.c.bf16 %v1049_v48, %v1047_v49  ;;  %v1645_v7 = vld [vmem:[#allocation9 + $0xee8] sm:$0xff] }
 0x291   : > { %v1154_v9 = vsel %vm355_vm0, %v1152_v18, %v1153_v47  ;;  %v1629_v18 = vld [vmem:[#allocation9 + $0xe68] sm:$0xff]  ;;  %v3129_v52 = vpack.c.bf16 %v1638_v41, %v1636_v40  ;;  %v1046_v63 = vld [vmem:[#allocation9 + $0x720] sm:$0xff]  ;;  %v1048_v3 = vld [vmem:[#allocation9 + $0x730] sm:$0xff]  ;;  %v3147_v40 = vpack.c.bf16 %v1659_v35, %v1657_v34 }
 0x292   : > { %1229 = vmatprep.mubr.f32.mxu1 %v1154_v9  ;;  %3114 = vmatpush1.bf16.msra.mxu0 %v3113_v12  ;;  %v3117_v9 = vpack.c.bf16 %v1626_v16, %v1624_v15  ;;  %v1640_v56 = vld [vmem:[#allocation9 + $0xec0] sm:$0xff]  ;;  %v1647_v11 = vld [vmem:[#allocation9 + $0xef8] sm:$0xff]  ;;  %v1051_v12 = vld [vmem:[#allocation9 + $0x748] sm:$0xff] }
 0x293   : > { %1230 = vmatmul.mubr.f32.vlgmr.msra.gmra.mrb[0].mxu1 %v1151_v54  ;;  %3116 = vmatprep.subr.bf16.mxu0 %v3115_v14  ;;  %v3017_v14 = vpack.c.bf16 %v1048_v3, %v1046_v63  ;;  %v1050_v15 = vld [vmem:[#allocation9 + $0x740] sm:$0xff]  ;;  %v3135_v16 = vpack.c.bf16 %v1647_v11, %v1645_v7  ;;  %v1067_v49 = vld [vmem:[#allocation9 + $0x7c8] sm:$0xff]  ;;  %v1069_v48 = vld [vmem:[#allocation9 + $0x7d8] sm:$0xff] }
 0x294   : > { %2982 = vmatpush1.bf16.msra.mxu1 %v2981_v58  ;;  %v1037_v58 = vld [vmem:[#allocation9 + $0x6d8] sm:$0xff]  ;;  %v1656_v41 = vld [vmem:[#allocation9 + $0xf40] sm:$0xff]  ;;  %v3035_v63 = vpack.c.bf16 %v1069_v48, %v1067_v49  ;;  %v1354_v34 = vld [vmem:[#allocation9 + $0xa90] sm:$0xff] }
 0x295   : > { %2984 = vmatprep.subr.bf16.mxu1 %v2983_v19  ;;  %v1076_v2 = vld [vmem:[#allocation3 + $0x20] sm:$0x1f]  ;;  %v3001_v19 = vpack.c.bf16 %v1032_v59, %v1030_v13  ;;  %v3133_v13 = vpack.c.bf16 %v1642_v57, %v1640_v56  ;;  %v1646_v59 = vld [vmem:[#allocation9 + $0xef0] sm:$0xff] }
 0x296   : > { %v1077_v26 = vld [vmem:[#allocation3 + $0x28] sm:$0x1f]  ;;  %v1155_v27 = vrot.slane %v1076_v2, 1  ;;  %3118 = vmatpush1.bf16.msra.mxu0 %v3117_v9  ;;  %v1070_v11 = vld [vmem:[#allocation9 + $0x7e0] sm:$0xff] }
 0x297   : > { %v1157_v30 = vrot.slane %v1077_v26, 1  ;;  %v1039_v2 = vld [vmem:[#allocation9 + $0x6e8] sm:$0xff]  ;;  %v1038_v26 = vld [vmem:[#allocation9 + $0x6e0] sm:$0xff]  ;;  %v1068_v56 = vld [vmem:[#allocation9 + $0x7d0] sm:$0xff] }
 0x298   : > { %2986 = vmatpush1.bf16.msra.mxu1 %v2985_v22  ;;  %v1156_v36 = vsel %vm355_vm0, %v1150_v55, %v1155_v27  ;;  %v1035_v55 = vld [vmem:[#allocation9 + $0x6c8] sm:$0xff]  ;;  %v1635_v22 = vld [vmem:[#allocation9 + $0xe98] sm:$0xff]  ;;  %v1362_v49 = vld [vmem:[#allocation9 + $0xad0] sm:$0xff] }
 0x299   : > { %v1158_v32 = vsel %vm355_vm0, %v1153_v47, %v1157_v30  ;;  %2988 = vmatprep.subr.bf16.mxu1 %v2987_v23  ;;  %v1631_v47 = vld [vmem:[#allocation9 + $0xe78] sm:$0xff]  ;;  %v3003_v54 = vpack.c.bf16 %v1037_v58, %v1035_v55  ;;  %v1649_v55 = vld [vmem:[#allocation9 + $0xf08] sm:$0xff] }
 0x29a   : > { %1235 = vmatprep.mubr.f32.mxu1 %v1158_v32  ;;  %v1041_v23 = vld [vmem:[#allocation9 + $0x6f8] sm:$0xff]  ;;  %v1637_v32 = vld [vmem:[#allocation9 + $0xea8] sm:$0xff] }
 0x29b   : > { %1236 = vmatmul.mubr.f32.gmra.mrb[2].mxu1 %v1156_v36  ;;  %v3125_v36 = vpack.c.bf16 %v1634_v29, %v1632_v28  ;;  %v1651_v58 = vld [vmem:[#allocation9 + $0xf18] sm:$0xff]  ;;  %v1055_v9 = vld [vmem:[#allocation9 + $0x768] sm:$0xff]  ;;  %v1058_v28 = vld [vmem:[#allocation9 + $0x780] sm:$0xff] }
 0x29c   : > { %1241 = vmatprep.mubr.f32.mxu1 %v1157_v30  ;;  %2990 = vmatpush1.bf16.msra.mxu1 %v2989_v31  ;;  %v3007_v30 = vpack.c.bf16 %v1041_v23, %v1039_v2  ;;  %v1040_v31 = vld [vmem:[#allocation9 + $0x6f0] sm:$0xff]  ;;  %v3139_v50 = vpack.c.bf16 %v1651_v58, %v1649_v55  ;;  %v1653_v2 = vld [vmem:[#allocation9 + $0xf28] sm:$0xff]  ;;  %v1655_v23 = vld [vmem:[#allocation9 + $0xf38] sm:$0xff] }
 0x29d   : > { %2992 = vmatprep.subr.bf16.mxu1 %v2991_v33  ;;  %v1639_v33 = vld [vmem:[#allocation9 + $0xeb8] sm:$0xff]  ;;  %v3009_v37 = vpack.c.bf16 %v1040_v31, %v1038_v26  ;;  %v3143_v29 = vpack.c.bf16 %v1655_v23, %v1653_v2  ;;  %v1654_v31 = vld [vmem:[#allocation9 + $0xf30] sm:$0xff]  ;;  %v1071_v57 = vld [vmem:[#allocation9 + $0x7e8] sm:$0xff] }
 0x29e   : > { %v3127_v39 = vpack.c.bf16 %v1639_v33, %v1637_v32  ;;  %v1060_v33 = vld [vmem:[#allocation9 + $0x790] sm:$0xff]  ;;  %v1340_v58 = vld [vmem:[#allocation9 + $0xa20] sm:$0xff]  ;;  %v1357_v35 = vld [vmem:[#allocation9 + $0xaa8] sm:$0xff] }
 0x29f   : > { %1242 = vmatmul.mubr.f32.gmra.mrb[4].mxu1 %v1155_v27  ;;  %v3123_v27 = vpack.c.bf16 %v1635_v22, %v1633_v8  ;;  %v1056_v22 = vld [vmem:[#allocation9 + $0x770] sm:$0xff]  ;;  %v1365_v48 = vld [vmem:[#allocation9 + $0xae8] sm:$0xff] }
 0x2a0   : > { %1312 = vmatprep.mubr.f32.mxu1 %v992_v61  ;;  %2994 = vmatpush1.bf16.msra.mxu1 %v2993_v45  ;;  %v3119_v61 = vpack.c.bf16 %v1631_v47, %v1629_v18  ;;  %v1641_v45 = vld [vmem:[#allocation9 + $0xec8] sm:$0xff]  ;;  %v1052_v47 = vld [vmem:[#allocation9 + $0x750] sm:$0xff] }
 0x2a1   : > { %2996 = vmatprep.subr.bf16.mxu1 %v2995_v62  ;;  %v3013_v62 = vpack.c.bf16 %v1044_v44, %v1042_v38  ;;  %v3131_v0 = vpack.c.bf16 %v1643_v46, %v1641_v45  ;;  %v1062_v45 = vld [vmem:[#allocation9 + $0x7a0] sm:$0xff]  ;;  %v1064_v46 = vld [vmem:[#allocation9 + $0x7b0] sm:$0xff] }
 0x2a2   : > { %3120 = vmatprep.subr.bf16.mxu0 %v3119_v61  ;;  %v3021_v61 = vpack.c.bf16 %v1052_v47, %v1050_v15  ;;  %v1008_v2 = vld [vmem:[#allocation3 + $0x28] sm:$0xf] }
 0x2a3   : > { %3122 = vmatpush1.bf16.msra.mxu0 %v3121_v24  ;;  %v1059_v24 = vld [vmem:[#allocation9 + $0x788] sm:$0xff] }
 0x2a4   : > { %2998 = vmatpush1.bf16.msra.mxu1 %v2997_v5  ;;  %3124 = vmatprep.subr.bf16.mxu0 %v3123_v27  ;;  %v1053_v5 = vld [vmem:[#allocation9 + $0x758] sm:$0xff]  ;;  %v3025_v27 = vpack.c.bf16 %v1056_v22, %v1054_v20  ;;  %v1332_v20 = vld [vmem:[#allocation3 + $0x8] sm:$0xfc] }
 0x2a5   : > { %3000 = vmatprep.subr.bf16.mxu1 %v2999_v17  ;;  %v1644_v17 = vld [vmem:[#allocation9 + $0xee0] sm:$0xff]  ;;  %v3019_v18 = vpack.c.bf16 %v1053_v5, %v1051_v12  ;;  %v1072_v12 = vld [vmem:[#allocation9 + $0x7f0] sm:$0xff]  ;;  %v1337_v5 = vld [vmem:[#allocation9 + $0xa08] sm:$0xff]  ;;  %v1407_v23 = vrot.slane %v1332_v20, 2 }
 0x2a6   : > { %v3137_v53 = vpack.c.bf16 %v1646_v59, %v1644_v17  ;;  %v1338_v17 = vld [vmem:[#allocation9 + $0xa10] sm:$0xff]  ;;  %v1341_v59 = vld [vmem:[#allocation9 + $0xa28] sm:$0xff]  ;;  %v1351_v22 = vld [vmem:[#allocation9 + $0xa78] sm:$0xff] }
 0x2a7   : > { %3126 = vmatpush1.bf16.msra.mxu0 %v3125_v36  ;;  %v1063_v36 = vld [vmem:[#allocation9 + $0x7a8] sm:$0xff] }
 0x2a8   : > { %3002 = vmatpush1.bf16.msra.mxu1 %v3001_v19  ;;  %3128 = vmatprep.subr.bf16.mxu0 %v3127_v39  ;;  %v1057_v19 = vld [vmem:[#allocation9 + $0x778] sm:$0xff]  ;;  %v3029_v39 = vpack.c.bf16 %v1060_v33, %v1058_v28  ;;  %v1353_v28 = vld [vmem:[#allocation9 + $0xa88] sm:$0xff]  ;;  %v1352_v33 = vld [vmem:[#allocation9 + $0xa80] sm:$0xff] }
 0x2a9   : > { %3004 = vmatprep.subr.bf16.mxu1 %v3003_v54  ;;  %v1648_v54 = vld [vmem:[#allocation9 + $0xf00] sm:$0xff]  ;;  %v3023_v8 = vpack.c.bf16 %v1057_v19, %v1055_v9  ;;  %v1342_v9 = vld [vmem:[#allocation9 + $0xa30] sm:$0xff]  ;;  %v1345_v19 = vld [vmem:[#allocation9 + $0xa48] sm:$0xff] }
 0x2aa   : > { %v3141_v26 = vpack.c.bf16 %v1650_v21, %v1648_v54  ;;  %v1344_v54 = vld [vmem:[#allocation9 + $0xa40] sm:$0xff]  ;;  %v1346_v21 = vld [vmem:[#allocation9 + $0xa50] sm:$0xff] }
 0x2ab   : > { %3130 = vmatpush1.bf16.msra.mxu0 %v3129_v52 }
 0x2ac   : > { %3006 = vmatpush1.bf16.msra.mxu1 %v3005_v25  ;;  %3132 = vmatprep.subr.bf16.mxu0 %v3131_v0  ;;  %v1061_v25 = vld [vmem:[#allocation9 + $0x798] sm:$0xff]  ;;  %v1066_v0 = vld [vmem:[#allocation9 + $0x7c0] sm:$0xff] }
 0x2ad   : > { %3008 = vmatprep.subr.bf16.mxu1 %v3007_v30  ;;  %v1652_v30 = vld [vmem:[#allocation9 + $0xf20] sm:$0xff]  ;;  %v3027_v32 = vpack.c.bf16 %v1061_v25, %v1059_v24  ;;  %v3037_v3 = vpack.c.bf16 %v1068_v56, %v1066_v0  ;;  %v3053_v24 = vpack.c.bf16 %v1346_v21, %v1344_v54  ;;  %v1366_v56 = vld [vmem:[#allocation9 + $0xaf0] sm:$0xff]  ;;  %v1385_v21 = vld [vmem:[#allocation9 + $0xb88] sm:$0xff] }
 0x2ae   : > { %v3145_v38 = vpack.c.bf16 %v1654_v31, %v1652_v30  ;;  %v1348_v25 = vld [vmem:[#allocation9 + $0xa60] sm:$0xff]  ;;  %v1409_v30 = vsel %vm411_vm1, %v1407_v23, %v1408_v51  ;;  %v1382_v54 = vld [vmem:[#allocation9 + $0xb70] sm:$0xff] }
 0x2af   : > { %3134 = vmatpush1.bf16.msra.mxu0 %v3133_v13  ;;  %v1339_v13 = vld [vmem:[#allocation9 + $0xa18] sm:$0xff]  ;;  %v1364_v0 = vld [vmem:[#allocation9 + $0xae0] sm:$0xff] }
 0x2b0   : > { %3010 = vmatpush1.bf16.msra.mxu1 %v3009_v37  ;;  %3136 = vmatprep.subr.bf16.mxu0 %v3135_v16  ;;  %v1065_v37 = vld [vmem:[#allocation9 + $0x7b8] sm:$0xff]  ;;  %v3043_v15 = vpack.c.bf16 %v1339_v13, %v1337_v5  ;;  %v1336_v16 = vld [vmem:[#allocation9 + $0xa00] sm:$0xff]  ;;  %v1373_v5 = vld [vmem:[#allocation9 + $0xb28] sm:$0xff] }
 0x2b1   : > { %3012 = vmatprep.subr.bf16.mxu1 %v3011_v4  ;;  %v1658_v4 = vld [vmem:[#allocation9 + $0xf50] sm:$0xff]  ;;  %v3031_v44 = vpack.c.bf16 %v1065_v37, %v1063_v36  ;;  %v3045_v47 = vpack.c.bf16 %v1338_v17, %v1336_v16  ;;  %v1359_v36 = vld [vmem:[#allocation9 + $0xab8] sm:$0xff]  ;;  %v3061_v37 = vpack.c.bf16 %v1354_v34, %v1352_v33  ;;  %v1372_v16 = vld [vmem:[#allocation9 + $0xb20] sm:$0xff] }
 0x2b2   : > { %v3149_v52 = vpack.c.bf16 %v1658_v4, %v1656_v41  ;;  %v1361_v41 = vld [vmem:[#allocation9 + $0xac8] sm:$0xff]  ;;  %v1363_v4 = vld [vmem:[#allocation9 + $0xad8] sm:$0xff]  ;;  %v1374_v17 = vld [vmem:[#allocation9 + $0xb30] sm:$0xff] }
 0x2b3   : > { %3138 = vmatpush1.bf16.msra.mxu0 %v3137_v53  ;;  %v1347_v53 = vld [vmem:[#allocation9 + $0xa58] sm:$0xff]  ;;  %v1384_v23 = vld [vmem:[#allocation9 + $0xb80] sm:$0xff] }
 0x2b4   : > { %3014 = vmatpush1.bf16.msra.mxu1 %v3013_v62  ;;  %3140 = vmatprep.subr.bf16.mxu0 %v3139_v50  ;;  %v3033_v62 = vpack.c.bf16 %v1064_v46, %v1062_v45  ;;  %v3051_v50 = vpack.c.bf16 %v1347_v53, %v1345_v19  ;;  %v3067_v45 = vpack.c.bf16 %v1363_v4, %v1361_v41  ;;  %v1360_v46 = vld [vmem:[#allocation9 + $0xac0] sm:$0xff]  ;;  %v1375_v13 = vld [vmem:[#allocation9 + $0xb38] sm:$0xff]  ;;  %v1381_v19 = vld [vmem:[#allocation9 + $0xb68] sm:$0xff] }
 0x2b5   : > { %3016 = vmatprep.subr.bf16.mxu1 %v3015_v1  ;;  %v1073_v1 = vld [vmem:[#allocation9 + $0x7f8] sm:$0xff]  ;;  %v1392_v34 = vld [vmem:[#allocation9 + $0xbc0] sm:$0xff]  ;;  %v1398_v41 = vld [vmem:[#allocation9 + $0xbf0] sm:$0xff] }
 0x2b6   : > { %v3039_v7 = vpack.c.bf16 %v1073_v1, %v1071_v57  ;;  %v1369_v57 = vld [vmem:[#allocation9 + $0xb08] sm:$0xff]  ;;  %v1371_v1 = vld [vmem:[#allocation9 + $0xb18] sm:$0xff] }
 0x2b7   : > { %3142 = vmatpush1.bf16.msra.mxu0 %v3141_v26  ;;  %v1350_v26 = vld [vmem:[#allocation9 + $0xa70] sm:$0xff]  ;;  %v1383_v53 = vld [vmem:[#allocation9 + $0xb78] sm:$0xff]  ;;  %v1331_v4 = vld [vmem:[#allocation3] sm:$0xfc] }
 0x2b8   : > { %3018 = vmatpush1.bf16.msra.mxu1 %v3017_v14  ;;  %3144 = vmatprep.subr.bf16.mxu0 %v3143_v29  ;;  %v3041_v14 = vpack.c.bf16 %v1072_v12, %v1070_v11  ;;  %v1355_v29 = vld [vmem:[#allocation9 + $0xa98] sm:$0xff]  ;;  %v3057_v31 = vpack.c.bf16 %v1350_v26, %v1348_v25  ;;  %v1368_v11 = vld [vmem:[#allocation9 + $0xb00] sm:$0xff]  ;;  %v1370_v12 = vld [vmem:[#allocation9 + $0xb10] sm:$0xff]  ;;  %v3087_v20 = vpack.c.bf16 %v1383_v53, %v1381_v19 }
 0x2b9   : > { %3020 = vmatprep.subr.bf16.mxu1 %v3019_v18  ;;  %v1343_v18 = vld [vmem:[#allocation9 + $0xa38] sm:$0xff]  ;;  %v1672_v19 = vld [vmem:[#allocation9 + $0xfc0] sm:$0xff]  ;;  %v1674_v53 = vld [vmem:[#allocation9 + $0xfd0] sm:$0xff] }
 0x2ba   : > { %v3047_v55 = vpack.c.bf16 %v1343_v18, %v1341_v59  ;;  %v1377_v59 = vld [vmem:[#allocation9 + $0xb48] sm:$0xff]  ;;  %v1379_v18 = vld [vmem:[#allocation9 + $0xb58] sm:$0xff] }
 0x2bb   : > { %3146 = vmatpush1.bf16.msra.mxu0 %v3145_v38  ;;  %v3063_v38 = vpack.c.bf16 %v1359_v36, %v1357_v35  ;;  %v1391_v25 = vld [vmem:[#allocation9 + $0xbb8] sm:$0xff]  ;;  %v1394_v35 = vld [vmem:[#allocation9 + $0xbd0] sm:$0xff]  ;;  %v1397_v36 = vld [vmem:[#allocation9 + $0xbe8] sm:$0xff] }
 0x2bc   : > { %3022 = vmatpush1.bf16.msra.mxu1 %v3021_v61  ;;  %3148 = vmatprep.subr.bf16.mxu0 %v3147_v40  ;;  %v3049_v61 = vpack.c.bf16 %v1342_v9, %v1340_v58  ;;  %v1358_v40 = vld [vmem:[#allocation9 + $0xab0] sm:$0xff]  ;;  %v1376_v58 = vld [vmem:[#allocation9 + $0xb40] sm:$0xff] }
 0x2bd   : > { %3024 = vmatprep.subr.bf16.mxu1 %v3023_v8  ;;  %v1349_v8 = vld [vmem:[#allocation9 + $0xa68] sm:$0xff]  ;;  %v1378_v9 = vld [vmem:[#allocation9 + $0xb50] sm:$0xff] }
 0x2bf   : > { %3150 = vmatpush1.bf16.msra.mxu0 %v3149_v52  ;;  %v1367_v52 = vld [vmem:[#allocation9 + $0xaf8] sm:$0xff] }
 0x2c0   : > { %3026 = vmatpush1.bf16.msra.mxu1 %v3025_v27  ;;  %v1007_v27 = vld [vmem:[#allocation3 + $0x20] sm:$0xf] }
 0x2c1   : > { %3028 = vmatprep.subr.bf16.mxu1 %v3027_v32  ;;  %v3059_v32 = vpack.c.bf16 %v1355_v29, %v1353_v28  ;;  %v1388_v28 = vld [vmem:[#allocation9 + $0xba0] sm:$0xff]  ;;  %v1390_v29 = vld [vmem:[#allocation9 + $0xbb0] sm:$0xff] }
 0x2c4   : > { %3030 = vmatpush1.bf16.msra.mxu1 %v3029_v39  ;;  %v1356_v39 = vld [vmem:[#allocation9 + $0xaa0] sm:$0xff] }
 0x2c5   : > { %3032 = vmatprep.subr.bf16.mxu1 %v3031_v44  ;;  %v3065_v44 = vpack.c.bf16 %v1358_v40, %v1356_v39  ;;  %v1396_v40 = vld [vmem:[#allocation9 + $0xbe0] sm:$0xff] }
 0x2c8   : > { %3034 = vmatpush1.bf16.msra.mxu1 %v3033_v62  ;;  %v3069_v62 = vpack.c.bf16 %v1362_v49, %v1360_v46  ;;  %v1404_v46 = vrot.slane %v1331_v4, 2 }
 0x2c9   : > { %3036 = vmatprep.subr.bf16.mxu1 %v3035_v63  ;;  %v3071_v63 = vpack.c.bf16 %v1367_v52, %v1365_v48  ;;  %v1333_v48 = vld [vmem:[#allocation3 + $0x20] sm:$0x3f]  ;;  %v1405_v52 = vrot.slane %v4120_v10, 2 }
 0x2cc   : > { %3038 = vmatpush1.bf16.msra.mxu1 %v3037_v3  ;;  %v3073_v3 = vpack.c.bf16 %v1366_v56, %v1364_v0 }
 0x2cd   : > { %3040 = vmatprep.subr.bf16.mxu1 %v3039_v7  ;;  %v3075_v7 = vpack.c.bf16 %v1371_v1, %v1369_v57  ;;  %v1661_v57 = vld [vmem:[#allocation9 + $0xf68] sm:$0xff]  ;;  %v1663_v1 = vld [vmem:[#allocation9 + $0xf78] sm:$0xff] }
 0x2d0   : > { %3042 = vmatpush1.bf16.msra.mxu1 %v3041_v14  ;;  %v3077_v14 = vpack.c.bf16 %v1370_v12, %v1368_v11  ;;  %v1662_v11 = vld [vmem:[#allocation9 + $0xf70] sm:$0xff]  ;;  %v1665_v12 = vld [vmem:[#allocation9 + $0xf88] sm:$0xff] }
 0x2d1   : > { %3044 = vmatprep.subr.bf16.mxu1 %v3043_v15  ;;  %v3079_v15 = vpack.c.bf16 %v1375_v13, %v1373_v5  ;;  %v1667_v5 = vld [vmem:[#allocation9 + $0xf98] sm:$0xff] }
 0x2d2   : > { %v3155_v13 = vpack.c.bf16 %v1667_v5, %v1665_v12  ;;  %v1553_v12 = vld [vmem:[#allocation9 + $0xc30] sm:$0xff] }
 0x2d3   : > { %1313 = vmatmul.mubr.f32.vlgmr.msra.gmra.mrb[0].mxu1 %v991_v60  ;;  %v3055_v60 = vpack.c.bf16 %v1351_v22, %v1349_v8  ;;  %v1387_v8 = vld [vmem:[#allocation9 + $0xb98] sm:$0xff] }
 0x2d4   : > { %1318 = vmatprep.mubr.f32.mxu1 %v4118_v6  ;;  %3046 = vmatpush1.bf16.msra.mxu1 %v3045_v47  ;;  %v3081_v47 = vpack.c.bf16 %v1374_v17, %v1372_v16  ;;  %v1664_v6 = vld [vmem:[#allocation9 + $0xf80] sm:$0xff]  ;;  %v1671_v16 = vld [vmem:[#allocation9 + $0xfb8] sm:$0xff] }
 0x2d5   : > { %3048 = vmatprep.subr.bf16.mxu1 %v3047_v55  ;;  %v3083_v55 = vpack.c.bf16 %v1379_v18, %v1377_v59  ;;  %v1668_v59 = vld [vmem:[#allocation9 + $0xfa0] sm:$0xff]  ;;  %v1670_v18 = vld [vmem:[#allocation9 + $0xfb0] sm:$0xff] }
 0x2d7   : > { %1319 = vmatmul.mubr.f32.gmra.mrb[2].mxu1 %v4120_v10 }
 0x2d8   : > { %1324 = vmatprep.mubr.f32.mxu1 %v1008_v2  ;;  %3050 = vmatpush1.bf16.msra.mxu1 %v3049_v61  ;;  %v3085_v61 = vpack.c.bf16 %v1378_v9, %v1376_v58  ;;  %v3091_v2 = vpack.c.bf16 %v1387_v8, %v1385_v21  ;;  %v1675_v58 = vld [vmem:[#allocation9 + $0xfd8] sm:$0xff]  ;;  %v1676_v21 = vld [vmem:[#allocation9 + $0xfe0] sm:$0xff]  ;;  %v1678_v8 = vld [vmem:[#allocation9 + $0xff0] sm:$0xff] }
 0x2d9   : > { %3052 = vmatprep.subr.bf16.mxu1 %v3051_v50  ;;  %v1380_v50 = vld [vmem:[#allocation9 + $0xb60] sm:$0xff] }
 0x2da   : > { %v3089_v22 = vpack.c.bf16 %v1382_v54, %v1380_v50  ;;  %v1679_v50 = vld [vmem:[#allocation9 + $0xff8] sm:$0xff] }
 0x2db   : > { %1325 = vmatmul.mubr.f32.gmra.mrb[4].mxu1 %v1007_v27 }
 0x2dc   : > { %3054 = vmatpush1.bf16.msra.mxu1 %v3053_v24  ;;  %1484 = vmatprep.mubr.f32.mxu1 %v1409_v30  ;;  %v1386_v24 = vld [vmem:[#allocation9 + $0xb90] sm:$0xff]  ;;  %v1393_v30 = vld [vmem:[#allocation9 + $0xbc8] sm:$0xff] }
 0x2dd   : > { %3056 = vmatprep.subr.bf16.mxu1 %v3055_v60  ;;  %v1389_v60 = vld [vmem:[#allocation9 + $0xba8] sm:$0xff]  ;;  %v3093_v26 = vpack.c.bf16 %v1386_v24, %v1384_v23  ;;  %v1550_v23 = vld [vmem:[#allocation9 + $0xc18] sm:$0xff] }
 0x2de   : > { %v3095_v27 = vpack.c.bf16 %v1391_v25, %v1389_v60  ;;  %v1510_v60 = vld [vmem:[#allocation10 + $0x2] sm:$0x3] }
 0x2df   : > { %v1515_v25 = vrot.slane %v1510_v60, %v4026_v42 }
 0x2e0   : > { %3058 = vmatpush1.bf16.msra.mxu1 %v3057_v31  ;;  %v1395_v31 = vld [vmem:[#allocation9 + $0xbd8] sm:$0xff] }
 0x2e1   : > { %3060 = vmatprep.subr.bf16.mxu1 %v3059_v32  ;;  %v3097_v32 = vpack.c.bf16 %v1390_v29, %v1388_v28  ;;  %v3099_v33 = vpack.c.bf16 %v1395_v31, %v1393_v30 }
 0x2e4   : > { %3062 = vmatpush1.bf16.msra.mxu1 %v3061_v37  ;;  %v1399_v37 = vld [vmem:[#allocation9 + $0xbf8] sm:$0xff] }
 0x2e5   : > { %3064 = vmatprep.subr.bf16.mxu1 %v3063_v38  ;;  %v3101_v38 = vpack.c.bf16 %v1394_v35, %v1392_v34  ;;  %v3103_v39 = vpack.c.bf16 %v1399_v37, %v1397_v36 }
 0x2e8   : > { %3066 = vmatpush1.bf16.msra.mxu1 %v3065_v44  ;;  %v3105_v44 = vpack.c.bf16 %v1398_v41, %v1396_v40 }
 0x2e9   : > { %3068 = vmatprep.subr.bf16.mxu1 %v3067_v45  ;;  %v1334_v45 = vld [vmem:[#allocation3 + $0x28] sm:$0x3f] }
 0x2ea   : > { %v1412_v49 = vrot.slane %v1334_v45, 2 }
 0x2ec   : > { %3070 = vmatpush1.bf16.msra.mxu1 %v3069_v62  ;;  %v1406_v62 = vsel %vm411_vm1, %v1404_v46, %v1405_v52  ;;  %v1413_v0 = vsel %vm411_vm1, %v1408_v51, %v1412_v49 }
 0x2ed   : > { %3072 = vmatprep.subr.bf16.mxu1 %v3071_v63  ;;  %v1410_v63 = vrot.slane %v1333_v48, 2  ;;  %v1549_v48 = vld [vmem:[#allocation9 + $0xc10] sm:$0xff] }
 0x2ef   : > { %v1411_v56 = vsel %vm411_vm1, %v1405_v52, %v1410_v63 }
 0x2f0   : > { %3074 = vmatpush1.bf16.msra.mxu1 %v3073_v3  ;;  %v3151_v3 = vpack.c.bf16 %v1663_v1, %v1661_v57 }
 0x2f1   : > { %3076 = vmatprep.subr.bf16.mxu1 %v3075_v7  ;;  %v1660_v7 = vld [vmem:[#allocation9 + $0xf60] sm:$0xff] }
 0x2f2   : > { %v3153_v10 = vpack.c.bf16 %v1662_v11, %v1660_v7  ;;  %3152 = vmatprep.subr.bf16.mxu0 %v3151_v3 }
 0x2f4   : > { %3078 = vmatpush1.bf16.msra.mxu1 %v3077_v14  ;;  %3154 = vmatpush1.bf16.msra.mxu0 %v3153_v10  ;;  %v1666_v14 = vld [vmem:[#allocation9 + $0xf90] sm:$0xff]  ;;  %v1551_v10 = vld [vmem:[#allocation9 + $0xc20] sm:$0xff] }
 0x2f5   : > { %3080 = vmatprep.subr.bf16.mxu1 %v3079_v15  ;;  %v3157_v51 = vpack.c.bf16 %v1666_v14, %v1664_v6  ;;  %3156 = vmatprep.subr.bf16.mxu0 %v3155_v13  ;;  %v1669_v15 = vld [vmem:[#allocation9 + $0xfa8] sm:$0xff]  ;;  %v1558_v6 = vld [vmem:[#allocation9 + $0xc58] sm:$0xff]  ;;  %v3177_v14 = vpack.c.bf16 %v1553_v12, %v1551_v10  ;;  %v2165_v10 = vld [vmem:[#allocation9 + $0x1460] sm:$0xff] }
 0x2f6   : > { %v3159_v17 = vpack.c.bf16 %v1671_v16, %v1669_v15  ;;  %v1556_v13 = vld [vmem:[#allocation9 + $0xc48] sm:$0xff]  ;;  %v1555_v16 = vld [vmem:[#allocation9 + $0xc40] sm:$0xff]  ;;  %v2167_v12 = vld [vmem:[#allocation9 + $0x1470] sm:$0xff] }
 0x2f7   : > { %v3179_v15 = vpack.c.bf16 %v1558_v6, %v1556_v13  ;;  %v1573_v13 = vld [vmem:[#allocation9 + $0xcd0] sm:$0xff]  ;;  %v2170_v6 = vld [vmem:[#allocation9 + $0x1488] sm:$0xff] }
 0x2f8   : > { %3082 = vmatpush1.bf16.msra.mxu1 %v3081_v47  ;;  %3158 = vmatpush1.bf16.msra.mxu0 %v3157_v51  ;;  %v3161_v47 = vpack.c.bf16 %v1670_v18, %v1668_v59 }
 0x2f9   : > { %3084 = vmatprep.subr.bf16.mxu1 %v3083_v55  ;;  %3160 = vmatprep.subr.bf16.mxu0 %v3159_v17  ;;  %v1673_v55 = vld [vmem:[#allocation9 + $0xfc8] sm:$0xff]  ;;  %v1557_v17 = vld [vmem:[#allocation9 + $0xc50] sm:$0xff] }
 0x2fa   : > { %v3163_v9 = vpack.c.bf16 %v1675_v58, %v1673_v55  ;;  %v1562_v55 = vld [vmem:[#allocation9 + $0xc78] sm:$0xff] }
 0x2fc   : > { %3086 = vmatpush1.bf16.msra.mxu1 %v3085_v61  ;;  %3162 = vmatpush1.bf16.msra.mxu0 %v3161_v47  ;;  %v3165_v61 = vpack.c.bf16 %v1674_v53, %v1672_v19  ;;  %v1560_v47 = vld [vmem:[#allocation9 + $0xc68] sm:$0xff] }
 0x2fd   : > { %3088 = vmatprep.subr.bf16.mxu1 %v3087_v20  ;;  %3164 = vmatprep.subr.bf16.mxu0 %v3163_v9  ;;  %v1677_v20 = vld [vmem:[#allocation9 + $0xfe8] sm:$0xff]  ;;  %v3181_v9 = vpack.c.bf16 %v1557_v17, %v1555_v16  ;;  %v3183_v53 = vpack.c.bf16 %v1562_v55, %v1560_v47  ;;  %v3313_v16 = vpack.c.bf16 %v2167_v12, %v2165_v10  ;;  %v2169_v47 = vld [vmem:[#allocation9 + $0x1480] sm:$0xff]  ;;  %v2171_v55 = vld [vmem:[#allocation9 + $0x1490] sm:$0xff] }
 0x2fe   : > { %v3167_v54 = vpack.c.bf16 %v1679_v50, %v1677_v20  ;;  %v1561_v20 = vld [vmem:[#allocation9 + $0xc70] sm:$0xff]  ;;  %v1591_v10 = vld [vmem:[#allocation9 + $0xd60] sm:$0xff] }
 0x300   : > { %3090 = vmatpush1.bf16.msra.mxu1 %v3089_v22  ;;  %3166 = vmatpush1.bf16.msra.mxu0 %v3165_v61  ;;  %v3169_v22 = vpack.c.bf16 %v1678_v8, %v1676_v21  ;;  %v1559_v61 = vld [vmem:[#allocation9 + $0xc60] sm:$0xff]  ;;  %v1566_v21 = vld [vmem:[#allocation9 + $0xc98] sm:$0xff] }
 0x301   : > { %3092 = vmatprep.subr.bf16.mxu1 %v3091_v2  ;;  %3168 = vmatprep.subr.bf16.mxu0 %v3167_v54  ;;  %v1548_v2 = vld [vmem:[#allocation9 + $0xc08] sm:$0xff]  ;;  %v1563_v8 = vld [vmem:[#allocation9 + $0xc80] sm:$0xff] }
 0x302   : > { %v3171_v24 = vpack.c.bf16 %v1550_v23, %v1548_v2  ;;  %v1564_v54 = vld [vmem:[#allocation9 + $0xc88] sm:$0xff]  ;;  %v2156_v23 = vld [vmem:[#allocation9 + $0x1418] sm:$0xff] }
 0x303   : > { %v2154_v2 = vld [vmem:[#allocation9 + $0x1408] sm:$0xff] }
 0x304   : > { %3094 = vmatpush1.bf16.msra.mxu1 %v3093_v26  ;;  %3170 = vmatpush1.bf16.msra.mxu0 %v3169_v22  ;;  %v1519_v26 = vrot.slane %v1510_v60, %v4028_v43  ;;  %v1565_v22 = vld [vmem:[#allocation9 + $0xc90] sm:$0xff]  ;;  %v3185_v60 = vpack.c.bf16 %v1561_v20, %v1559_v61  ;;  %v1580_v61 = vld [vmem:[#allocation9 + $0xd08] sm:$0xff]  ;;  %v1582_v20 = vld [vmem:[#allocation9 + $0xd18] sm:$0xff] }
 0x305   : > { %3096 = vmatprep.subr.bf16.mxu1 %v3095_v27  ;;  %3172 = vmatprep.subr.bf16.mxu0 %v3171_v24  ;;  %v2153_v24 = vld [vmem:[#allocation9 + $0x1400] sm:$0xff] }
 0x308   : > { %3098 = vmatpush1.bf16.msra.mxu1 %v3097_v32 }
 0x309   : > { %3100 = vmatprep.subr.bf16.mxu1 %v3099_v33 }
 0x30c   : > { %3102 = vmatpush1.bf16.msra.mxu1 %v3101_v38 }
 0x30d   : > { %3104 = vmatprep.subr.bf16.mxu1 %v3103_v39 }
 0x310   : > { %3106 = vmatpush1.bf16.msra.mxu1 %v3105_v44 }
 0x313   : > { %1485 = vmatmul.mubr.f32.vlgmr.msra.gmra.mrb[0].mxu1 %v1406_v62 }
 0x314   : > { %1490 = vmatprep.mubr.f32.mxu1 %v1413_v0  ;;  %v1554_v0 = vld [vmem:[#allocation9 + $0xc38] sm:$0xff] }
 0x317   : > { %1491 = vmatmul.mubr.f32.gmra.mrb[2].mxu1 %v1411_v56 }
 0x318   : > { %1496 = vmatprep.mubr.f32.mxu1 %v1412_v49  ;;  %v1547_v49 = vld [vmem:[#allocation9 + $0xc00] sm:$0xff] }
 0x319   : > { %v3173_v3 = vpack.c.bf16 %v1549_v48, %v1547_v49  ;;  %v1567_v49 = vld [vmem:[#allocation9 + $0xca0] sm:$0xff] }
 0x31b   : > { %1497 = vmatmul.mubr.f32.gmra.mrb[4].mxu1 %v1410_v63  ;;  %v1552_v63 = vld [vmem:[#allocation9 + $0xc28] sm:$0xff] }
 0x31c   : > { %v3175_v11 = vpack.c.bf16 %v1554_v0, %v1552_v63  ;;  %v1569_v0 = vld [vmem:[#allocation9 + $0xcb0] sm:$0xff] }
 0x3e6   : > { %v1486_v27 = vpop.f32.mrb[0].mxu1 }
 0x3e7   : > { %v4146_v28 = vadd.f32 %v1515_v25, %v1486_v27  ;;  %v1488_v29 = vpop.f32.mrb[1].mxu1  ;;  %v2158_v27 = vld [vmem:[#allocation9 + $0x1428] sm:$0xff] }
 0x3e8   : > { %v4148_v30 = vadd.f32 %v1519_v26, %v1488_v29  ;;  %v2160_v29 = vld [vmem:[#allocation9 + $0x1438] sm:$0xff] }
 0x3e9   : > { %v1528_v31 = vmax.f32 %v4146_v28, 0.0 }
 0x3ea   : > { %v1529_v32 = vmax.f32 %v4148_v30, 0.0  ;;  %v1492_v33 = vpop.f32.mrb[2].mxu1  ;;  %v1571_v30 = vld [vmem:[#allocation9 + $0xcc0] sm:$0xff] }
 0x3eb   : > { %1534 = vst [vmem:[#allocation2] sm:$0xff] %v1528_v31  ;;  %v1524_v34 = vadd.f32 %v1515_v25, %v1492_v33  ;;  %v1494_v35 = vpop.f32.mrb[3].mxu1  ;;  %v3187_v33 = vpack.c.bf16 %v1566_v21, %v1564_v54  ;;  %v3197_v17 = vpack.c.bf16 %v1573_v13, %v1571_v30  ;;  %v1579_v21 = vld [vmem:[#allocation9 + $0xd00] sm:$0xff]  ;;  %v2187_v13 = vld [vmem:[#allocation9 + $0x1510] sm:$0xff] }
 0x3ec   : > { %1535 = vst [vmem:[#allocation2 + $0x8] sm:$0xff] %v1529_v32  ;;  %v1525_v36 = vadd.f32 %v1519_v26, %v1494_v35  ;;  %v3303_v35 = vpack.c.bf16 %v2160_v29, %v2158_v27  ;;  %v1586_v27 = vld [vmem:[#allocation9 + $0xd38] sm:$0xff] }
 0x3ed   : > { %v4156_v37 = vmax.f32 %v1524_v34, 0.0 }
 0x3ee   : > { %v4158_v38 = vmax.f32 %v1525_v36, 0.0  ;;  %v1498_v39 = vpop.f32.mrb[4].mxu1  ;;  %v2157_v36 = vld [vmem:[#allocation9 + $0x1420] sm:$0xff] }
 0x3ef   : > { %v1526_v40 = vadd.f32 %v1515_v25, %v1498_v39  ;;  %v1500_v41 = vpop.f32.mrb[5].mxu1  ;;  %v1687_v1 = vrot.slane %v4156_v37, 1  ;;  %v3299_v25 = vpack.c.bf16 %v2156_v23, %v2154_v2  ;;  %v2159_v39 = vld [vmem:[#allocation9 + $0x1430] sm:$0xff]  ;;  %v3203_v23 = vpack.c.bf16 %v1582_v20, %v1580_v61  ;;  %v2194_v61 = vld [vmem:[#allocation9 + $0x1548] sm:$0xff]  ;;  %v2196_v20 = vld [vmem:[#allocation9 + $0x1558] sm:$0xff] }
 0x3f0   : > { %v1527_v4 = vadd.f32 %v1519_v26, %v1500_v41  ;;  %v1690_v57 = vrot.slane %v4158_v38, 1  ;;  %v2155_v26 = vld [vmem:[#allocation9 + $0x1410] sm:$0xff]  ;;  %v1568_v41 = vld [vmem:[#allocation9 + $0xca8] sm:$0xff]  ;;  %v1945_v28 = vrot.slane %v4158_v38, 2 }
 0x3f1   : > { %v1532_v44 = vmax.f32 %v1526_v40, 0.0  ;;  %v3301_v34 = vpack.c.bf16 %v2155_v26, %v2153_v24  ;;  %v2162_v40 = vld [vmem:[#allocation9 + $0x1448] sm:$0xff]  ;;  %3300 = vmatprep.subr.bf16.mxu1 %v3299_v25  ;;  %v2175_v2 = vld [vmem:[#allocation9 + $0x14b0] sm:$0xff]  ;;  %v2180_v25 = vld [vmem:[#allocation9 + $0x14d8] sm:$0xff] }
 0x3f2   : > { %v1533_v45 = vmax.f32 %v1527_v4, 0.0  ;;  %v1611_v46 = vld [vmem:[#allocation2] sm:$0xfe]  ;;  %v1584_v26 = vld [vmem:[#allocation9 + $0xd28] sm:$0xff] }
 0x3f3   : > { %1538 = vst [vmem:[#allocation2 + $0x20] sm:$0xf] %v1532_v44  ;;  %v1612_v52 = vld [vmem:[#allocation2 + $0x8] sm:$0xfe]  ;;  %v1686_v62 = vrot.slane %v1611_v46, 1  ;;  %3302 = vmatpush1.bf16.msra.mxu1 %v3301_v34  ;;  %v3189_v46 = vpack.c.bf16 %v1565_v22, %v1563_v8  ;;  %v1581_v24 = vld [vmem:[#allocation9 + $0xd10] sm:$0xff] }
 0x3f4   : > { %1539 = vst [vmem:[#allocation2 + $0x28] sm:$0xf] %v1533_v45  ;;  %v1689_v56 = vrot.slane %v1612_v52, 1  ;;  %v1570_v4 = vld [vmem:[#allocation9 + $0xcb8] sm:$0xff]  ;;  %v3305_v45 = vpack.c.bf16 %v2159_v39, %v2157_v36  ;;  %v2161_v52 = vld [vmem:[#allocation9 + $0x1440] sm:$0xff]  ;;  %3304 = vmatprep.subr.bf16.mxu1 %v3303_v35  ;;  %v2179_v39 = vld [vmem:[#allocation9 + $0x14d0] sm:$0xff] }
 0x3f5   : > { %v1688_v5 = vsel %vm355_vm0, %v1686_v62, %v1687_v1  ;;  %v2164_v44 = vld [vmem:[#allocation9 + $0x1458] sm:$0xff]  ;;  %v2163_v62 = vld [vmem:[#allocation9 + $0x1450] sm:$0xff]  ;;  %v3191_v63 = vpack.c.bf16 %v1570_v4, %v1568_v41  ;;  %v2173_v22 = vld [vmem:[#allocation9 + $0x14a0] sm:$0xff] }
 0x3f6   : > { %v1691_v7 = vsel %vm355_vm0, %v1689_v56, %v1690_v57  ;;  %v3307_v48 = vpack.c.bf16 %v2164_v44, %v2162_v40  ;;  %v2166_v56 = vld [vmem:[#allocation9 + $0x1468] sm:$0xff]  ;;  %v3321_v29 = vpack.c.bf16 %v2175_v2, %v2173_v22  ;;  %v1583_v34 = vld [vmem:[#allocation9 + $0xd20] sm:$0xff]  ;;  %v3207_v40 = vpack.c.bf16 %v1586_v27, %v1584_v26  ;;  %v1585_v41 = vld [vmem:[#allocation9 + $0xd30] sm:$0xff] }
 0x3f7   : > { %1766 = vmatprep.mubr.f32.mxu0 %v1691_v7  ;;  %3306 = vmatpush1.bf16.msra.mxu1 %v3305_v45  ;;  %v3309_v7 = vpack.c.bf16 %v2163_v62, %v2161_v52  ;;  %v2177_v36 = vld [vmem:[#allocation9 + $0x14c0] sm:$0xff]  ;;  %v2182_v4 = vld [vmem:[#allocation9 + $0x14e8] sm:$0xff]  ;;  %v2184_v44 = vld [vmem:[#allocation9 + $0x14f8] sm:$0xff]  ;;  %v3339_v22 = vpack.c.bf16 %v2196_v20, %v2194_v61 }
 0x3f8   : > { %1767 = vmatmul.mubr.f32.vlgmr.msra.gmra.mrb[6].mxu0 %v1688_v5  ;;  %3308 = vmatprep.subr.bf16.mxu1 %v3307_v48  ;;  %v1588_v45 = vld [vmem:[#allocation9 + $0xd48] sm:$0xff]  ;;  %v3209_v48 = vpack.c.bf16 %v1585_v41, %v1583_v34  ;;  %v1587_v52 = vld [vmem:[#allocation9 + $0xd40] sm:$0xff]  ;;  %v3327_v62 = vpack.c.bf16 %v2184_v44, %v2182_v4  ;;  %v1606_v27 = vld [vmem:[#allocation9 + $0xdd8] sm:$0xff] }
 0x3f9   : > { %3174 = vmatpush1.bf16.msra.mxu0 %v3173_v3  ;;  %v1574_v3 = vld [vmem:[#allocation9 + $0xcd8] sm:$0xff]  ;;  %v2193_v2 = vld [vmem:[#allocation9 + $0x1540] sm:$0xff]  ;;  %v1604_v26 = vld [vmem:[#allocation9 + $0xdc8] sm:$0xff] }
 0x3fa   : > { %3176 = vmatprep.subr.bf16.mxu0 %v3175_v11  ;;  %v1613_v51 = vld [vmem:[#allocation2 + $0x20] sm:$0x7]  ;;  %v3193_v11 = vpack.c.bf16 %v1569_v0, %v1567_v49  ;;  %v3325_v49 = vpack.c.bf16 %v2179_v39, %v2177_v36  ;;  %v3227_v34 = vpack.c.bf16 %v1606_v27, %v1604_v26  ;;  %v1608_v39 = vld [vmem:[#allocation9 + $0xde8] sm:$0xff]  ;;  %v1607_v44 = vld [vmem:[#allocation9 + $0xde0] sm:$0xff] }
 0x3fb   : > { %v1614_v59 = vld [vmem:[#allocation2 + $0x28] sm:$0x7]  ;;  %v1692_v18 = vrot.slane %v1613_v51, 1  ;;  %v1576_v51 = vld [vmem:[#allocation9 + $0xce8] sm:$0xff]  ;;  %3310 = vmatpush1.bf16.msra.mxu1 %v3309_v7  ;;  %v2183_v0 = vld [vmem:[#allocation9 + $0x14f0] sm:$0xff] }
 0x3fc   : > { %v1694_v58 = vrot.slane %v1614_v59, 1  ;;  %v1575_v59 = vld [vmem:[#allocation9 + $0xce0] sm:$0xff]  ;;  %v1592_v7 = vld [vmem:[#allocation9 + $0xd68] sm:$0xff]  ;;  %v1605_v36 = vld [vmem:[#allocation9 + $0xdd0] sm:$0xff] }
 0x3fd   : > { %3178 = vmatpush1.bf16.msra.mxu0 %v3177_v14  ;;  %v1693_v50 = vsel %vm355_vm0, %v1687_v1, %v1692_v18  ;;  %v1572_v1 = vld [vmem:[#allocation9 + $0xcc8] sm:$0xff]  ;;  %v2172_v14 = vld [vmem:[#allocation9 + $0x1498] sm:$0xff]  ;;  %v1891_v61 = vld [vmem:[#allocation9 + $0x1090] sm:$0xff] }
 0x3fe   : > { %v1695_v19 = vsel %vm355_vm0, %v1690_v57, %v1694_v58  ;;  %3180 = vmatprep.subr.bf16.mxu0 %v3179_v15  ;;  %v2168_v57 = vld [vmem:[#allocation9 + $0x1478] sm:$0xff]  ;;  %v3195_v5 = vpack.c.bf16 %v1574_v3, %v1572_v1  ;;  %v2186_v1 = vld [vmem:[#allocation9 + $0x1508] sm:$0xff]  ;;  %v1899_v26 = vld [vmem:[#allocation9 + $0x10d0] sm:$0xff] }
 0x3ff   : > { %1772 = vmatprep.mubr.f32.mxu0 %v1695_v19  ;;  %v1578_v15 = vld [vmem:[#allocation9 + $0xcf8] sm:$0xff]  ;;  %v2174_v19 = vld [vmem:[#allocation9 + $0x14a8] sm:$0xff] }
 0x400   : > { %1773 = vmatmul.mubr.f32.gmra.mrb[8].mxu0 %v1693_v50  ;;  %v3317_v50 = vpack.c.bf16 %v2171_v55, %v2169_v47  ;;  %v2188_v3 = vld [vmem:[#allocation9 + $0x1518] sm:$0xff]  ;;  %v1595_v47 = vld [vmem:[#allocation9 + $0xd80] sm:$0xff]  ;;  %v1894_v20 = vld [vmem:[#allocation9 + $0x10a8] sm:$0xff] }
 0x401   : > { %1778 = vmatprep.mubr.f32.mxu0 %v1694_v58  ;;  %3182 = vmatpush1.bf16.msra.mxu0 %v3181_v9  ;;  %v3199_v58 = vpack.c.bf16 %v1578_v15, %v1576_v51  ;;  %v1577_v9 = vld [vmem:[#allocation9 + $0xcf0] sm:$0xff]  ;;  %v3331_v12 = vpack.c.bf16 %v2188_v3, %v2186_v1  ;;  %v2190_v51 = vld [vmem:[#allocation9 + $0x1528] sm:$0xff]  ;;  %v2192_v15 = vld [vmem:[#allocation9 + $0x1538] sm:$0xff] }
 0x402   : > { %3184 = vmatprep.subr.bf16.mxu0 %v3183_v53  ;;  %v2176_v53 = vld [vmem:[#allocation9 + $0x14b8] sm:$0xff]  ;;  %v3201_v54 = vpack.c.bf16 %v1577_v9, %v1575_v59  ;;  %v3335_v55 = vpack.c.bf16 %v2192_v15, %v2190_v51  ;;  %v2191_v9 = vld [vmem:[#allocation9 + $0x1530] sm:$0xff]  ;;  %v1877_v3 = vld [vmem:[#allocation9 + $0x1020] sm:$0xff] }
 0x403   : > { %v3319_v8 = vpack.c.bf16 %v2176_v53, %v2174_v19  ;;  %v1597_v53 = vld [vmem:[#allocation9 + $0xd90] sm:$0xff]  ;;  %v1545_v51 = vld [vmem:[#allocation2 + $0x28] sm:$0x3]  ;;  %v1902_v27 = vld [vmem:[#allocation9 + $0x10e8] sm:$0xff] }
 0x404   : > { %1779 = vmatmul.mubr.f32.gmra.mrb[10].mxu0 %v1692_v18  ;;  %v3315_v18 = vpack.c.bf16 %v2172_v14, %v2170_v6  ;;  %v1593_v14 = vld [vmem:[#allocation9 + $0xd70] sm:$0xff] }
 0x405   : > { %1849 = vmatprep.mubr.f32.mxu0 %v1529_v32  ;;  %3186 = vmatpush1.bf16.msra.mxu0 %v3185_v60  ;;  %v3311_v32 = vpack.c.bf16 %v2168_v57, %v2166_v56  ;;  %v2178_v60 = vld [vmem:[#allocation9 + $0x14c8] sm:$0xff]  ;;  %v1589_v57 = vld [vmem:[#allocation9 + $0xd50] sm:$0xff] }
 0x406   : > { %3188 = vmatprep.subr.bf16.mxu0 %v3187_v33  ;;  %v3205_v33 = vpack.c.bf16 %v1581_v24, %v1579_v21  ;;  %v3323_v35 = vpack.c.bf16 %v2180_v25, %v2178_v60  ;;  %v1599_v60 = vld [vmem:[#allocation9 + $0xda0] sm:$0xff]  ;;  %v1601_v25 = vld [vmem:[#allocation9 + $0xdb0] sm:$0xff] }
 0x407   : > { %3312 = vmatprep.subr.bf16.mxu1 %v3311_v32  ;;  %v3213_v32 = vpack.c.bf16 %v1589_v57, %v1587_v52 }
 0x408   : > { %3314 = vmatpush1.bf16.msra.mxu1 %v3313_v16  ;;  %v1596_v16 = vld [vmem:[#allocation9 + $0xd88] sm:$0xff] }
 0x409   : > { %3190 = vmatpush1.bf16.msra.mxu0 %v3189_v46  ;;  %3316 = vmatprep.subr.bf16.mxu1 %v3315_v18  ;;  %v1590_v46 = vld [vmem:[#allocation9 + $0xd58] sm:$0xff]  ;;  %v3217_v18 = vpack.c.bf16 %v1593_v14, %v1591_v10  ;;  %v1869_v10 = vld [vmem:[#allocation2 + $0x8] sm:$0xfc] }
 0x40a   : > { %3192 = vmatprep.subr.bf16.mxu0 %v3191_v63  ;;  %v2181_v63 = vld [vmem:[#allocation9 + $0x14e0] sm:$0xff]  ;;  %v3211_v56 = vpack.c.bf16 %v1590_v46, %v1588_v45  ;;  %v1609_v45 = vld [vmem:[#allocation9 + $0xdf0] sm:$0xff]  ;;  %v1874_v46 = vld [vmem:[#allocation9 + $0x1008] sm:$0xff]  ;;  %v1944_v15 = vrot.slane %v1869_v10, 2 }
 0x40b   : > { %v3329_v30 = vpack.c.bf16 %v2183_v0, %v2181_v63  ;;  %v1875_v63 = vld [vmem:[#allocation9 + $0x1010] sm:$0xff]  ;;  %v1878_v0 = vld [vmem:[#allocation9 + $0x1028] sm:$0xff]  ;;  %v1888_v14 = vld [vmem:[#allocation9 + $0x1078] sm:$0xff] }
 0x40c   : > { %3318 = vmatpush1.bf16.msra.mxu1 %v3317_v50  ;;  %v1600_v50 = vld [vmem:[#allocation9 + $0xda8] sm:$0xff] }
 0x40d   : > { %3194 = vmatpush1.bf16.msra.mxu0 %v3193_v11  ;;  %3320 = vmatprep.subr.bf16.mxu1 %v3319_v8  ;;  %v1594_v11 = vld [vmem:[#allocation9 + $0xd78] sm:$0xff]  ;;  %v3221_v8 = vpack.c.bf16 %v1597_v53, %v1595_v47  ;;  %v1890_v47 = vld [vmem:[#allocation9 + $0x1088] sm:$0xff]  ;;  %v1889_v53 = vld [vmem:[#allocation9 + $0x1080] sm:$0xff] }
 0x40e   : > { %3196 = vmatprep.subr.bf16.mxu0 %v3195_v5  ;;  %v2185_v5 = vld [vmem:[#allocation9 + $0x1500] sm:$0xff]  ;;  %v3215_v6 = vpack.c.bf16 %v1594_v11, %v1592_v7  ;;  %v1879_v7 = vld [vmem:[#allocation9 + $0x1030] sm:$0xff]  ;;  %v1882_v11 = vld [vmem:[#allocation9 + $0x1048] sm:$0xff] }
 0x40f   : > { %v3333_v59 = vpack.c.bf16 %v2187_v13, %v2185_v5  ;;  %v1881_v5 = vld [vmem:[#allocation9 + $0x1040] sm:$0xff]  ;;  %v1883_v13 = vld [vmem:[#allocation9 + $0x1050] sm:$0xff] }
 0x410   : > { %3322 = vmatpush1.bf16.msra.mxu1 %v3321_v29 }
 0x411   : > { %3198 = vmatpush1.bf16.msra.mxu0 %v3197_v17  ;;  %3324 = vmatprep.subr.bf16.mxu1 %v3323_v35  ;;  %v1598_v17 = vld [vmem:[#allocation9 + $0xd98] sm:$0xff]  ;;  %v1603_v35 = vld [vmem:[#allocation9 + $0xdc0] sm:$0xff] }
 0x412   : > { %3200 = vmatprep.subr.bf16.mxu0 %v3199_v58  ;;  %v2189_v58 = vld [vmem:[#allocation9 + $0x1520] sm:$0xff]  ;;  %v3219_v19 = vpack.c.bf16 %v1598_v17, %v1596_v16  ;;  %v3229_v41 = vpack.c.bf16 %v1605_v36, %v1603_v35  ;;  %v3245_v16 = vpack.c.bf16 %v1883_v13, %v1881_v5  ;;  %v1903_v36 = vld [vmem:[#allocation9 + $0x10f0] sm:$0xff]  ;;  %v1922_v13 = vld [vmem:[#allocation9 + $0x1188] sm:$0xff] }
 0x413   : > { %v3337_v21 = vpack.c.bf16 %v2191_v9, %v2189_v58  ;;  %v1885_v17 = vld [vmem:[#allocation9 + $0x1060] sm:$0xff]  ;;  %v1946_v58 = vsel %vm411_vm1, %v1944_v15, %v1945_v28  ;;  %v1919_v5 = vld [vmem:[#allocation9 + $0x1170] sm:$0xff] }
 0x414   : > { %3326 = vmatpush1.bf16.msra.mxu1 %v3325_v49  ;;  %v1876_v49 = vld [vmem:[#allocation9 + $0x1018] sm:$0xff]  ;;  %v1901_v35 = vld [vmem:[#allocation9 + $0x10e0] sm:$0xff] }
 0x415   : > { %3202 = vmatpush1.bf16.msra.mxu0 %v3201_v54  ;;  %3328 = vmatprep.subr.bf16.mxu1 %v3327_v62  ;;  %v1602_v54 = vld [vmem:[#allocation9 + $0xdb8] sm:$0xff]  ;;  %v3235_v52 = vpack.c.bf16 %v1876_v49, %v1874_v46  ;;  %v1873_v62 = vld [vmem:[#allocation9 + $0x1000] sm:$0xff]  ;;  %v1910_v46 = vld [vmem:[#allocation9 + $0x1128] sm:$0xff] }
 0x416   : > { %3204 = vmatprep.subr.bf16.mxu0 %v3203_v23  ;;  %v2195_v23 = vld [vmem:[#allocation9 + $0x1550] sm:$0xff]  ;;  %v3223_v24 = vpack.c.bf16 %v1602_v54, %v1600_v50  ;;  %v3237_v57 = vpack.c.bf16 %v1875_v63, %v1873_v62  ;;  %v1896_v50 = vld [vmem:[#allocation9 + $0x10b8] sm:$0xff]  ;;  %v3253_v54 = vpack.c.bf16 %v1891_v61, %v1889_v53  ;;  %v1909_v62 = vld [vmem:[#allocation9 + $0x1120] sm:$0xff] }
 0x417   : > { %v3341_v29 = vpack.c.bf16 %v2195_v23, %v2193_v2  ;;  %v1898_v2 = vld [vmem:[#allocation9 + $0x10c8] sm:$0xff]  ;;  %v1900_v23 = vld [vmem:[#allocation9 + $0x10d8] sm:$0xff]  ;;  %v1911_v63 = vld [vmem:[#allocation9 + $0x1130] sm:$0xff] }
 0x418   : > { %3330 = vmatpush1.bf16.msra.mxu1 %v3329_v30  ;;  %v1884_v30 = vld [vmem:[#allocation9 + $0x1058] sm:$0xff]  ;;  %v1921_v15 = vld [vmem:[#allocation9 + $0x1180] sm:$0xff] }
 0x419   : > { %3206 = vmatpush1.bf16.msra.mxu0 %v3205_v33  ;;  %3332 = vmatprep.subr.bf16.mxu1 %v3331_v12  ;;  %v3225_v33 = vpack.c.bf16 %v1601_v25, %v1599_v60  ;;  %v3243_v12 = vpack.c.bf16 %v1884_v30, %v1882_v11  ;;  %v3259_v60 = vpack.c.bf16 %v1900_v23, %v1898_v2  ;;  %v1897_v25 = vld [vmem:[#allocation9 + $0x10c0] sm:$0xff]  ;;  %v1912_v49 = vld [vmem:[#allocation9 + $0x1138] sm:$0xff]  ;;  %v1918_v11 = vld [vmem:[#allocation9 + $0x1168] sm:$0xff] }
 0x41a   : > { %3208 = vmatprep.subr.bf16.mxu0 %v3207_v40  ;;  %v1610_v40 = vld [vmem:[#allocation9 + $0xdf8] sm:$0xff]  ;;  %v1929_v61 = vld [vmem:[#allocation9 + $0x11c0] sm:$0xff]  ;;  %v1935_v2 = vld [vmem:[#allocation9 + $0x11f0] sm:$0xff] }
 0x41b   : > { %v3231_v4 = vpack.c.bf16 %v1610_v40, %v1608_v39  ;;  %v1906_v39 = vld [vmem:[#allocation9 + $0x1108] sm:$0xff]  ;;  %v1908_v40 = vld [vmem:[#allocation9 + $0x1118] sm:$0xff] }
 0x41c   : > { %3334 = vmatpush1.bf16.msra.mxu1 %v3333_v59  ;;  %v1887_v59 = vld [vmem:[#allocation9 + $0x1070] sm:$0xff]  ;;  %v1920_v30 = vld [vmem:[#allocation9 + $0x1178] sm:$0xff] }
 0x41d   : > { %3210 = vmatpush1.bf16.msra.mxu0 %v3209_v48  ;;  %3336 = vmatprep.subr.bf16.mxu1 %v3335_v55  ;;  %v3233_v48 = vpack.c.bf16 %v1609_v45, %v1607_v44  ;;  %v1892_v55 = vld [vmem:[#allocation9 + $0x1098] sm:$0xff]  ;;  %v3249_v9 = vpack.c.bf16 %v1887_v59, %v1885_v17  ;;  %v1905_v44 = vld [vmem:[#allocation9 + $0x1100] sm:$0xff]  ;;  %v1907_v45 = vld [vmem:[#allocation9 + $0x1110] sm:$0xff]  ;;  %v3279_v10 = vpack.c.bf16 %v1920_v30, %v1918_v11 }
 0x41e   : > { %3212 = vmatprep.subr.bf16.mxu0 %v3211_v56  ;;  %v1880_v56 = vld [vmem:[#allocation9 + $0x1038] sm:$0xff]  ;;  %v2209_v11 = vld [vmem:[#allocation9 + $0x15c0] sm:$0xff]  ;;  %v2211_v30 = vld [vmem:[#allocation9 + $0x15d0] sm:$0xff] }
 0x41f   : > { %v3239_v1 = vpack.c.bf16 %v1880_v56, %v1878_v0  ;;  %v1914_v0 = vld [vmem:[#allocation9 + $0x1148] sm:$0xff]  ;;  %v1916_v56 = vld [vmem:[#allocation9 + $0x1158] sm:$0xff] }
 0x420   : > { %3338 = vmatpush1.bf16.msra.mxu1 %v3337_v21  ;;  %v3255_v21 = vpack.c.bf16 %v1896_v50, %v1894_v20  ;;  %v1928_v17 = vld [vmem:[#allocation9 + $0x11b8] sm:$0xff]  ;;  %v1931_v20 = vld [vmem:[#allocation9 + $0x11d0] sm:$0xff]  ;;  %v1934_v50 = vld [vmem:[#allocation9 + $0x11e8] sm:$0xff] }
 0x421   : > { %3214 = vmatpush1.bf16.msra.mxu0 %v3213_v32  ;;  %3340 = vmatprep.subr.bf16.mxu1 %v3339_v22  ;;  %v3241_v32 = vpack.c.bf16 %v1879_v7, %v1877_v3  ;;  %v1895_v22 = vld [vmem:[#allocation9 + $0x10b0] sm:$0xff]  ;;  %v1913_v3 = vld [vmem:[#allocation9 + $0x1140] sm:$0xff]  ;;  %v1868_v23 = vld [vmem:[#allocation2] sm:$0xfc] }
 0x422   : > { %3216 = vmatprep.subr.bf16.mxu0 %v3215_v6  ;;  %v1886_v6 = vld [vmem:[#allocation9 + $0x1068] sm:$0xff]  ;;  %v1915_v7 = vld [vmem:[#allocation9 + $0x1150] sm:$0xff] }
 0x424   : > { %3342 = vmatpush1.bf16.msra.mxu1 %v3341_v29  ;;  %v1904_v29 = vld [vmem:[#allocation9 + $0x10f8] sm:$0xff] }
 0x425   : > { %3218 = vmatpush1.bf16.msra.mxu0 %v3217_v18  ;;  %v1544_v18 = vld [vmem:[#allocation2 + $0x20] sm:$0x3] }
 0x426   : > { %3220 = vmatprep.subr.bf16.mxu0 %v3219_v19  ;;  %v3251_v19 = vpack.c.bf16 %v1892_v55, %v1890_v47  ;;  %v1925_v47 = vld [vmem:[#allocation9 + $0x11a0] sm:$0xff]  ;;  %v1927_v55 = vld [vmem:[#allocation9 + $0x11b0] sm:$0xff] }
 0x429   : > { %3222 = vmatpush1.bf16.msra.mxu0 %v3221_v8  ;;  %v1893_v8 = vld [vmem:[#allocation9 + $0x10a0] sm:$0xff] }
 0x42a   : > { %3224 = vmatprep.subr.bf16.mxu0 %v3223_v24  ;;  %v3257_v24 = vpack.c.bf16 %v1895_v22, %v1893_v8  ;;  %v1933_v22 = vld [vmem:[#allocation9 + $0x11e0] sm:$0xff] }
 0x42d   : > { %3226 = vmatpush1.bf16.msra.mxu0 %v3225_v33  ;;  %v3261_v33 = vpack.c.bf16 %v1899_v26, %v1897_v25  ;;  %v1941_v25 = vrot.slane %v1868_v23, 2 }
 0x42e   : > { %3228 = vmatprep.subr.bf16.mxu0 %v3227_v34  ;;  %v3263_v34 = vpack.c.bf16 %v1904_v29, %v1902_v27  ;;  %v1870_v27 = vld [vmem:[#allocation2 + $0x20] sm:$0xf]  ;;  %v1942_v29 = vrot.slane %v4156_v37, 2 }
 0x431   : > { %3230 = vmatpush1.bf16.msra.mxu0 %v3229_v41  ;;  %v3265_v41 = vpack.c.bf16 %v1903_v36, %v1901_v35 }
 0x432   : > { %3232 = vmatprep.subr.bf16.mxu0 %v3231_v4  ;;  %v3267_v4 = vpack.c.bf16 %v1908_v40, %v1906_v39  ;;  %v2198_v39 = vld [vmem:[#allocation9 + $0x1568] sm:$0xff]  ;;  %v2200_v40 = vld [vmem:[#allocation9 + $0x1578] sm:$0xff] }
 0x435   : > { %3234 = vmatpush1.bf16.msra.mxu0 %v3233_v48  ;;  %v3269_v48 = vpack.c.bf16 %v1907_v45, %v1905_v44  ;;  %v2199_v44 = vld [vmem:[#allocation9 + $0x1570] sm:$0xff]  ;;  %v2202_v45 = vld [vmem:[#allocation9 + $0x1588] sm:$0xff] }
 0x436   : > { %3236 = vmatprep.subr.bf16.mxu0 %v3235_v52  ;;  %v3271_v52 = vpack.c.bf16 %v1912_v49, %v1910_v46  ;;  %v2204_v46 = vld [vmem:[#allocation9 + $0x1598] sm:$0xff] }
 0x437   : > { %v3347_v49 = vpack.c.bf16 %v2204_v46, %v2202_v45  ;;  %v2088_v45 = vld [vmem:[#allocation9 + $0x1230] sm:$0xff] }
 0x438   : > { %1850 = vmatmul.mubr.f32.vlgmr.msra.gmra.mrb[6].mxu0 %v1528_v31  ;;  %v3247_v31 = vpack.c.bf16 %v1888_v14, %v1886_v6  ;;  %v1924_v6 = vld [vmem:[#allocation9 + $0x1198] sm:$0xff] }
 0x439   : > { %1855 = vmatprep.mubr.f32.mxu0 %v4158_v38  ;;  %3238 = vmatpush1.bf16.msra.mxu0 %v3237_v57  ;;  %v3273_v57 = vpack.c.bf16 %v1911_v63, %v1909_v62  ;;  %v2201_v38 = vld [vmem:[#allocation9 + $0x1580] sm:$0xff]  ;;  %v2208_v62 = vld [vmem:[#allocation9 + $0x15b8] sm:$0xff] }
 0x43a   : > { %3240 = vmatprep.subr.bf16.mxu0 %v3239_v1  ;;  %v3275_v1 = vpack.c.bf16 %v1916_v56, %v1914_v0  ;;  %v2205_v0 = vld [vmem:[#allocation9 + $0x15a0] sm:$0xff]  ;;  %v2207_v56 = vld [vmem:[#allocation9 + $0x15b0] sm:$0xff] }
 0x43c   : > { %1856 = vmatmul.mubr.f32.gmra.mrb[8].mxu0 %v4156_v37 }
 0x43d   : > { %1861 = vmatprep.mubr.f32.mxu0 %v1545_v51  ;;  %3242 = vmatpush1.bf16.msra.mxu0 %v3241_v32  ;;  %v3277_v32 = vpack.c.bf16 %v1915_v7, %v1913_v3  ;;  %v3283_v51 = vpack.c.bf16 %v1924_v6, %v1922_v13  ;;  %v2212_v3 = vld [vmem:[#allocation9 + $0x15d8] sm:$0xff]  ;;  %v2213_v13 = vld [vmem:[#allocation9 + $0x15e0] sm:$0xff]  ;;  %v2215_v6 = vld [vmem:[#allocation9 + $0x15f0] sm:$0xff] }
 0x43e   : > { %3244 = vmatprep.subr.bf16.mxu0 %v3243_v12  ;;  %v1917_v12 = vld [vmem:[#allocation9 + $0x1160] sm:$0xff] }
 0x43f   : > { %v3281_v14 = vpack.c.bf16 %v1919_v5, %v1917_v12  ;;  %v2216_v12 = vld [vmem:[#allocation9 + $0x15f8] sm:$0xff] }
 0x440   : > { %1862 = vmatmul.mubr.f32.gmra.mrb[10].mxu0 %v1544_v18 }
 0x441   : > { %3246 = vmatpush1.bf16.msra.mxu0 %v3245_v16  ;;  %2021 = vmatprep.mubr.f32.mxu0 %v1946_v58  ;;  %v1923_v16 = vld [vmem:[#allocation9 + $0x1190] sm:$0xff]  ;;  %v1930_v58 = vld [vmem:[#allocation9 + $0x11c8] sm:$0xff] }
 0x442   : > { %3248 = vmatprep.subr.bf16.mxu0 %v3247_v31  ;;  %v1926_v31 = vld [vmem:[#allocation9 + $0x11a8] sm:$0xff]  ;;  %v3285_v59 = vpack.c.bf16 %v1923_v16, %v1921_v15  ;;  %v2085_v15 = vld [vmem:[#allocation9 + $0x1218] sm:$0xff] }
 0x443   : > { %v3287_v18 = vpack.c.bf16 %v1928_v17, %v1926_v31  ;;  %v2047_v31 = vld [vmem:[#allocation10 + $0x4] sm:$0x3] }
 0x444   : > { %v2052_v17 = vrot.slane %v2047_v31, %v4026_v42 }
 0x445   : > { %3250 = vmatpush1.bf16.msra.mxu0 %v3249_v9  ;;  %v1932_v9 = vld [vmem:[#allocation9 + $0x11d8] sm:$0xff] }
 0x446   : > { %3252 = vmatprep.subr.bf16.mxu0 %v3251_v19  ;;  %v3289_v19 = vpack.c.bf16 %v1927_v55, %v1925_v47  ;;  %v3291_v53 = vpack.c.bf16 %v1932_v9, %v1930_v58 }
 0x449   : > { %3254 = vmatpush1.bf16.msra.mxu0 %v3253_v54  ;;  %v1936_v54 = vld [vmem:[#allocation9 + $0x11f8] sm:$0xff] }
 0x44a   : > { %3256 = vmatprep.subr.bf16.mxu0 %v3255_v21  ;;  %v3293_v21 = vpack.c.bf16 %v1931_v20, %v1929_v61  ;;  %v3295_v8 = vpack.c.bf16 %v1936_v54, %v1934_v50 }
 0x44d   : > { %3258 = vmatpush1.bf16.msra.mxu0 %v3257_v24  ;;  %v3297_v24 = vpack.c.bf16 %v1935_v2, %v1933_v22 }
 0x44e   : > { %3260 = vmatprep.subr.bf16.mxu0 %v3259_v60  ;;  %v1871_v60 = vld [vmem:[#allocation2 + $0x28] sm:$0xf] }
 0x44f   : > { %v1949_v26 = vrot.slane %v1871_v60, 2 }
 0x451   : > { %3262 = vmatpush1.bf16.msra.mxu0 %v3261_v33  ;;  %v1943_v33 = vsel %vm411_vm1, %v1941_v25, %v1942_v29  ;;  %v1950_v35 = vsel %vm411_vm1, %v1945_v28, %v1949_v26 }
 0x452   : > { %3264 = vmatprep.subr.bf16.mxu0 %v3263_v34  ;;  %v1947_v34 = vrot.slane %v1870_v27, 2  ;;  %v2084_v27 = vld [vmem:[#allocation9 + $0x1210] sm:$0xff] }
 0x454   : > { %v1948_v36 = vsel %vm411_vm1, %v1942_v29, %v1947_v34 }
 0x455   : > { %3266 = vmatpush1.bf16.msra.mxu0 %v3265_v41  ;;  %v3343_v41 = vpack.c.bf16 %v2200_v40, %v2198_v39 }
 0x456   : > { %3268 = vmatprep.subr.bf16.mxu0 %v3267_v4  ;;  %v2197_v4 = vld [vmem:[#allocation9 + $0x1560] sm:$0xff] }
 0x457   : > { %v3345_v37 = vpack.c.bf16 %v2199_v44, %v2197_v4  ;;  %3344 = vmatprep.subr.bf16.mxu1 %v3343_v41 }
 0x459   : > { %3270 = vmatpush1.bf16.msra.mxu0 %v3269_v48  ;;  %3346 = vmatpush1.bf16.msra.mxu1 %v3345_v37  ;;  %v2203_v48 = vld [vmem:[#allocation9 + $0x1590] sm:$0xff]  ;;  %v2086_v37 = vld [vmem:[#allocation9 + $0x1220] sm:$0xff] }
 0x45a   : > { %3272 = vmatprep.subr.bf16.mxu0 %v3271_v52  ;;  %v3349_v28 = vpack.c.bf16 %v2203_v48, %v2201_v38  ;;  %3348 = vmatprep.subr.bf16.mxu1 %v3347_v49  ;;  %v2206_v52 = vld [vmem:[#allocation9 + $0x15a8] sm:$0xff]  ;;  %v2093_v38 = vld [vmem:[#allocation9 + $0x1258] sm:$0xff]  ;;  %v3369_v48 = vpack.c.bf16 %v2088_v45, %v2086_v37 }
 0x45b   : > { %v3351_v63 = vpack.c.bf16 %v2208_v62, %v2206_v52  ;;  %v2091_v49 = vld [vmem:[#allocation9 + $0x1248] sm:$0xff]  ;;  %v2090_v62 = vld [vmem:[#allocation9 + $0x1240] sm:$0xff]  ;;  %v2125_v37 = vld [vmem:[#allocation9 + $0x1358] sm:$0xff] }
 0x45c   : > { %v3371_v52 = vpack.c.bf16 %v2093_v38, %v2091_v49  ;;  %v2122_v49 = vld [vmem:[#allocation9 + $0x1340] sm:$0xff]  ;;  %v2124_v38 = vld [vmem:[#allocation9 + $0x1350] sm:$0xff] }
 0x45d   : > { %3274 = vmatpush1.bf16.msra.mxu0 %v3273_v57  ;;  %3350 = vmatpush1.bf16.msra.mxu1 %v3349_v28  ;;  %v3353_v57 = vpack.c.bf16 %v2207_v56, %v2205_v0 }
 0x45e   : > { %3276 = vmatprep.subr.bf16.mxu0 %v3275_v1  ;;  %3352 = vmatprep.subr.bf16.mxu1 %v3351_v63  ;;  %v2210_v1 = vld [vmem:[#allocation9 + $0x15c8] sm:$0xff]  ;;  %v2092_v63 = vld [vmem:[#allocation9 + $0x1250] sm:$0xff] }
 0x45f   : > { %v3355_v7 = vpack.c.bf16 %v2212_v3, %v2210_v1  ;;  %v2097_v1 = vld [vmem:[#allocation9 + $0x1278] sm:$0xff] }
 0x461   : > { %3278 = vmatpush1.bf16.msra.mxu0 %v3277_v32  ;;  %3354 = vmatpush1.bf16.msra.mxu1 %v3353_v57  ;;  %v3357_v32 = vpack.c.bf16 %v2211_v30, %v2209_v11  ;;  %v2095_v57 = vld [vmem:[#allocation9 + $0x1268] sm:$0xff] }
 0x462   : > { %3280 = vmatprep.subr.bf16.mxu0 %v3279_v10  ;;  %3356 = vmatprep.subr.bf16.mxu1 %v3355_v7  ;;  %v2214_v10 = vld [vmem:[#allocation9 + $0x15e8] sm:$0xff]  ;;  %v3373_v7 = vpack.c.bf16 %v2092_v63, %v2090_v62  ;;  %v3375_v30 = vpack.c.bf16 %v2097_v1, %v2095_v57  ;;  %v2126_v63 = vld [vmem:[#allocation9 + $0x1360] sm:$0xff]  ;;  %v2133_v57 = vld [vmem:[#allocation9 + $0x1398] sm:$0xff] }
 0x463   : > { %v3359_v5 = vpack.c.bf16 %v2216_v12, %v2214_v10  ;;  %v2096_v10 = vld [vmem:[#allocation9 + $0x1270] sm:$0xff] }
 0x465   : > { %3282 = vmatpush1.bf16.msra.mxu0 %v3281_v14  ;;  %3358 = vmatpush1.bf16.msra.mxu1 %v3357_v32  ;;  %v3361_v14 = vpack.c.bf16 %v2215_v6, %v2213_v13  ;;  %v2094_v32 = vld [vmem:[#allocation9 + $0x1260] sm:$0xff]  ;;  %v2101_v13 = vld [vmem:[#allocation9 + $0x1298] sm:$0xff] }
 0x466   : > { %3284 = vmatprep.subr.bf16.mxu0 %v3283_v51  ;;  %3360 = vmatprep.subr.bf16.mxu1 %v3359_v5  ;;  %v2083_v51 = vld [vmem:[#allocation9 + $0x1208] sm:$0xff]  ;;  %v3377_v6 = vpack.c.bf16 %v2096_v10, %v2094_v32  ;;  %v2137_v32 = vld [vmem:[#allocation9 + $0x13b8] sm:$0xff] }
 0x467   : > { %v3363_v16 = vpack.c.bf16 %v2085_v15, %v2083_v51  ;;  %v2099_v5 = vld [vmem:[#allocation9 + $0x1288] sm:$0xff]  ;;  %v2098_v51 = vld [vmem:[#allocation9 + $0x1280] sm:$0xff]  ;;  %v2100_v15 = vld [vmem:[#allocation9 + $0x1290] sm:$0xff] }
 0x469   : > { %3286 = vmatpush1.bf16.msra.mxu0 %v3285_v59  ;;  %3362 = vmatpush1.bf16.msra.mxu1 %v3361_v14  ;;  %v2056_v59 = vrot.slane %v2047_v31, %v4028_v43  ;;  %v3379_v14 = vpack.c.bf16 %v2101_v13, %v2099_v5  ;;  %v2105_v31 = vld [vmem:[#allocation9 + $0x12b8] sm:$0xff]  ;;  %v2134_v5 = vld [vmem:[#allocation9 + $0x13a0] sm:$0xff]  ;;  %v2136_v13 = vld [vmem:[#allocation9 + $0x13b0] sm:$0xff] }
 0x46a   : > { %3288 = vmatprep.subr.bf16.mxu0 %v3287_v18  ;;  %3364 = vmatprep.subr.bf16.mxu1 %v3363_v16  ;;  %v2103_v16 = vld [vmem:[#allocation9 + $0x12a8] sm:$0xff] }
 0x46d   : > { %3290 = vmatpush1.bf16.msra.mxu0 %v3289_v19 }
 0x46e   : > { %3292 = vmatprep.subr.bf16.mxu0 %v3291_v53 }
 0x471   : > { %3294 = vmatpush1.bf16.msra.mxu0 %v3293_v21 }
 0x472   : > { %3296 = vmatprep.subr.bf16.mxu0 %v3295_v8 }
 0x475   : > { %3298 = vmatpush1.bf16.msra.mxu0 %v3297_v24 }
 0x478   : > { %2022 = vmatmul.mubr.f32.vlgmr.msra.gmra.mrb[6].mxu0 %v1943_v33 }
 0x479   : > { %2027 = vmatprep.mubr.f32.mxu0 %v1950_v35  ;;  %v2089_v35 = vld [vmem:[#allocation9 + $0x1238] sm:$0xff] }
 0x47c   : > { %2028 = vmatmul.mubr.f32.gmra.mrb[8].mxu0 %v1948_v36 }
 0x47d   : > { %2033 = vmatprep.mubr.f32.mxu0 %v1949_v26  ;;  %v2082_v26 = vld [vmem:[#allocation9 + $0x1200] sm:$0xff] }
 0x47e   : > { %v3365_v41 = vpack.c.bf16 %v2084_v27, %v2082_v26  ;;  %v2117_v26 = vld [vmem:[#allocation9 + $0x1318] sm:$0xff] }
 0x480   : > { %2034 = vmatmul.mubr.f32.gmra.mrb[10].mxu0 %v1947_v34  ;;  %v2087_v34 = vld [vmem:[#allocation9 + $0x1228] sm:$0xff] }
 0x481   : > { %v3367_v44 = vpack.c.bf16 %v2089_v35, %v2087_v34  ;;  %v2116_v34 = vld [vmem:[#allocation9 + $0x1310] sm:$0xff]  ;;  %v2119_v35 = vld [vmem:[#allocation9 + $0x1328] sm:$0xff] }
 0x54b   : > { %v2023_v18 = vpop.f32.mrb[6].mxu0 }
 0x54c   : > { %v4184_v47 = vadd.f32 %v2052_v17, %v2023_v18  ;;  %v2025_v55 = vpop.f32.mrb[7].mxu0  ;;  %v2102_v18 = vld [vmem:[#allocation9 + $0x12a0] sm:$0xff] }
 0x54d   : > { %v4186_v58 = vadd.f32 %v2056_v59, %v2025_v55  ;;  %v2104_v55 = vld [vmem:[#allocation9 + $0x12b0] sm:$0xff] }
 0x54e   : > { %v2065_v9 = vmax.f32 %v4184_v47, 0.0 }
 0x54f   : > { %v2066_v19 = vmax.f32 %v4186_v58, 0.0  ;;  %v2029_v53 = vpop.f32.mrb[8].mxu0  ;;  %v2107_v58 = vld [vmem:[#allocation9 + $0x12c8] sm:$0xff] }
 0x550   : > { %2071 = vst [vmem:[#allocation3] sm:$0xff] %v2065_v9  ;;  %v2061_v61 = vadd.f32 %v2052_v17, %v2029_v53  ;;  %v2031_v20 = vpop.f32.mrb[9].mxu0  ;;  %v2109_v53 = vld [vmem:[#allocation9 + $0x12d8] sm:$0xff] }
 0x551   : > { %2072 = vst [vmem:[#allocation3 + $0x8] sm:$0xff] %v2066_v19  ;;  %v2062_v50 = vadd.f32 %v2056_v59, %v2031_v20  ;;  %v2106_v20 = vld [vmem:[#allocation9 + $0x12c0] sm:$0xff] }
 0x552   : > { %v4192_v54 = vmax.f32 %v2061_v61, 0.0  ;;  %v3385_v61 = vpack.c.bf16 %v2104_v55, %v2102_v18 }
 0x553   : > { %v4194_v21 = vmax.f32 %v2062_v50, 0.0  ;;  %v2035_v8 = vpop.f32.mrb[10].mxu0  ;;  %v2108_v50 = vld [vmem:[#allocation9 + $0x12d0] sm:$0xff] }
 0x554   : > { %v2063_v22 = vadd.f32 %v2052_v17, %v2035_v8  ;;  %v2037_v2 = vpop.f32.mrb[11].mxu0  ;;  %v2224_v40 = vrot.slane %v4192_v54, 1  ;;  %v3381_v17 = vpack.c.bf16 %v2100_v15, %v2098_v51  ;;  %v2111_v8 = vld [vmem:[#allocation9 + $0x12e8] sm:$0xff]  ;;  %v3417_v51 = vpack.c.bf16 %v2136_v13, %v2134_v5  ;;  %v2427_v13 = vld [vmem:[#allocation9 + $0x16f8] sm:$0xff] }
 0x555   : > { %v2064_v23 = vadd.f32 %v2056_v59, %v2037_v2  ;;  %v2227_v39 = vrot.slane %v4194_v21, 1  ;;  %v3383_v59 = vpack.c.bf16 %v2105_v31, %v2103_v16  ;;  %v3389_v2 = vpack.c.bf16 %v2108_v50, %v2106_v20  ;;  %v2138_v16 = vld [vmem:[#allocation9 + $0x13c0] sm:$0xff]  ;;  %v2140_v31 = vld [vmem:[#allocation9 + $0x13d0] sm:$0xff]  ;;  %v2425_v5 = vld [vmem:[#allocation9 + $0x16e8] sm:$0xff] }
 0x556   : > { %v2069_v24 = vmax.f32 %v2063_v22, 0.0  ;;  %v2113_v22 = vld [vmem:[#allocation9 + $0x12f8] sm:$0xff]  ;;  %v3421_v18 = vpack.c.bf16 %v2140_v31, %v2138_v16  ;;  %v2429_v16 = vld [vmem:[#allocation9 + $0x1708] sm:$0xff] }
 0x557   : > { %v2070_v60 = vmax.f32 %v2064_v23, 0.0  ;;  %v2146_v25 = vld [vmem:[#allocation3] sm:$0xfe]  ;;  %v3391_v23 = vpack.c.bf16 %v2113_v22, %v2111_v8  ;;  %v2398_v22 = vld [vmem:[#allocation9 + $0x1610] sm:$0xff]  ;;  %v2431_v31 = vld [vmem:[#allocation9 + $0x1718] sm:$0xff] }
 0x558   : > { %2075 = vst [vmem:[#allocation3 + $0x20] sm:$0x3] %v2069_v24  ;;  %v2147_v29 = vld [vmem:[#allocation3 + $0x8] sm:$0xfe]  ;;  %v2223_v33 = vrot.slane %v2146_v25, 1  ;;  %v2110_v24 = vld [vmem:[#allocation9 + $0x12e0] sm:$0xff] }
 0x559   : > { %2076 = vst [vmem:[#allocation3 + $0x28] sm:$0x3] %v2070_v60  ;;  %v2226_v36 = vrot.slane %v2147_v29, 1  ;;  %v2112_v60 = vld [vmem:[#allocation9 + $0x12f0] sm:$0xff]  ;;  %v2115_v25 = vld [vmem:[#allocation9 + $0x1308] sm:$0xff]  ;;  %v2396_v8 = vld [vmem:[#allocation9 + $0x1600] sm:$0xff] }
 0x55a   : > { %v2225_v46 = vsel %vm355_vm0, %v2223_v33, %v2224_v40  ;;  %v3393_v27 = vpack.c.bf16 %v2112_v60, %v2110_v24  ;;  %v3395_v29 = vpack.c.bf16 %v2117_v26, %v2115_v25  ;;  %v2114_v33 = vld [vmem:[#allocation9 + $0x1300] sm:$0xff]  ;;  %v3429_v24 = vpack.c.bf16 %v2398_v22, %v2396_v8  ;;  %v2392_v60 = vld [vmem:[#allocation3 + $0x8] sm:$0xfc]  ;;  %v2437_v8 = vld [vmem:[#allocation9 + $0x1748] sm:$0xff] }
 0x55b   : > { %v2228_v4 = vsel %vm355_vm0, %v2226_v36, %v2227_v39  ;;  %v2121_v36 = vld [vmem:[#allocation9 + $0x1338] sm:$0xff]  ;;  %v2400_v26 = vld [vmem:[#allocation9 + $0x1620] sm:$0xff] }
 0x55c   : > { %2301 = vmatprep.mubr.f32.mxu1 %v2228_v4  ;;  %v2120_v4 = vld [vmem:[#allocation9 + $0x1330] sm:$0xff]  ;;  %v2439_v22 = vld [vmem:[#allocation9 + $0x1758] sm:$0xff] }
 0x55d   : > { %2302 = vmatmul.mubr.f32.vlgmr.msra.gmra.mrb[6].mxu1 %v2225_v46 }
 0x55e   : > { %3366 = vmatpush1.bf16.msra.mxu1 %v3365_v41  ;;  %v2118_v41 = vld [vmem:[#allocation9 + $0x1320] sm:$0xff] }
 0x55f   : > { %3368 = vmatprep.subr.bf16.mxu1 %v3367_v44  ;;  %v2150_v28 = vld [vmem:[#allocation3 + $0x20] sm:$0x1]  ;;  %v2123_v44 = vld [vmem:[#allocation9 + $0x1348] sm:$0xff]  ;;  %v3401_v45 = vpack.c.bf16 %v2120_v4, %v2118_v41  ;;  %v2406_v41 = vld [vmem:[#allocation9 + $0x1650] sm:$0xff] }
 0x560   : > { %v2151_v0 = vld [vmem:[#allocation3 + $0x28] sm:$0x1]  ;;  %v2229_v56 = vrot.slane %v2150_v28, 1  ;;  %v3403_v46 = vpack.c.bf16 %v2125_v37, %v2123_v44  ;;  %v2129_v28 = vld [vmem:[#allocation9 + $0x1378] sm:$0xff] }
 0x561   : > { %v2231_v3 = vrot.slane %v2151_v0, 1  ;;  %v2128_v0 = vld [vmem:[#allocation9 + $0x1370] sm:$0xff]  ;;  %v2409_v4 = vld [vmem:[#allocation9 + $0x1668] sm:$0xff]  ;;  %v2411_v44 = vld [vmem:[#allocation9 + $0x1678] sm:$0xff] }
 0x562   : > { %3370 = vmatpush1.bf16.msra.mxu1 %v3369_v48  ;;  %v2230_v12 = vsel %vm355_vm0, %v2224_v40, %v2229_v56  ;;  %v3399_v40 = vpack.c.bf16 %v2121_v36, %v2119_v35  ;;  %v2127_v48 = vld [vmem:[#allocation9 + $0x1368] sm:$0xff]  ;;  %v3409_v1 = vpack.c.bf16 %v2128_v0, %v2126_v63  ;;  %v2468_v36 = vrot.slane %v4194_v21, 2  ;;  %v2419_v0 = vld [vmem:[#allocation9 + $0x16b8] sm:$0xff] }
 0x563   : > { %v2232_v11 = vsel %vm355_vm0, %v2227_v39, %v2231_v3  ;;  %3372 = vmatprep.subr.bf16.mxu1 %v3371_v52  ;;  %v3397_v39 = vpack.c.bf16 %v2116_v34, %v2114_v33  ;;  %v3405_v52 = vpack.c.bf16 %v2124_v38, %v2122_v49  ;;  %v3407_v62 = vpack.c.bf16 %v2129_v28, %v2127_v48  ;;  %v2131_v56 = vld [vmem:[#allocation9 + $0x1388] sm:$0xff]  ;;  %v2407_v33 = vld [vmem:[#allocation9 + $0x1658] sm:$0xff] }
 0x564   : > { %2307 = vmatprep.mubr.f32.mxu1 %v2232_v11  ;;  %v3411_v3 = vpack.c.bf16 %v2133_v57, %v2131_v56  ;;  %v2132_v11 = vld [vmem:[#allocation9 + $0x1390] sm:$0xff]  ;;  %v2467_v34 = vrot.slane %v2392_v60, 2  ;;  %v3439_v37 = vpack.c.bf16 %v2411_v44, %v2409_v4  ;;  %v2413_v49 = vld [vmem:[#allocation9 + $0x1688] sm:$0xff]  ;;  %v2415_v38 = vld [vmem:[#allocation9 + $0x1698] sm:$0xff] }
 0x565   : > { %2308 = vmatmul.mubr.f32.gmra.mrb[8].mxu1 %v2230_v12  ;;  %v3443_v28 = vpack.c.bf16 %v2415_v38, %v2413_v49  ;;  %v2417_v63 = vld [vmem:[#allocation9 + $0x16a8] sm:$0xff]  ;;  %v2438_v60 = vld [vmem:[#allocation9 + $0x1750] sm:$0xff]  ;;  %v2444_v4 = vld [vmem:[#allocation9 + $0x1780] sm:$0xff] }
 0x566   : > { %2378 = vmatprep.mubr.f32.mxu1 %v2066_v19  ;;  %3374 = vmatpush1.bf16.msra.mxu1 %v3373_v7  ;;  %v3387_v19 = vpack.c.bf16 %v2109_v53, %v2107_v58  ;;  %v2130_v7 = vld [vmem:[#allocation9 + $0x1380] sm:$0xff]  ;;  %v2144_v53 = vld [vmem:[#allocation9 + $0x13f0] sm:$0xff]  ;;  %v2469_v47 = vsel %vm411_vm1, %v2467_v34, %v2468_v36  ;;  %v3447_v57 = vpack.c.bf16 %v2419_v0, %v2417_v63  ;;  %v2453_v38 = vld [vmem:[#allocation9 + $0x17c8] sm:$0xff] }
 0x567   : > { %3376 = vmatprep.subr.bf16.mxu1 %v3375_v30  ;;  %v2135_v30 = vld [vmem:[#allocation9 + $0x13a8] sm:$0xff]  ;;  %v3413_v10 = vpack.c.bf16 %v2132_v11, %v2130_v7  ;;  %v2142_v58 = vld [vmem:[#allocation9 + $0x13e0] sm:$0xff]  ;;  %v2423_v11 = vld [vmem:[#allocation9 + $0x16d8] sm:$0xff] }
 0x568   : > { %v3415_v12 = vpack.c.bf16 %v2137_v32, %v2135_v30  ;;  %v3425_v20 = vpack.c.bf16 %v2144_v53, %v2142_v58  ;;  %v2421_v7 = vld [vmem:[#allocation9 + $0x16c8] sm:$0xff]  ;;  %v2435_v53 = vld [vmem:[#allocation9 + $0x1738] sm:$0xff]  ;;  %v2442_v34 = vld [vmem:[#allocation9 + $0x1770] sm:$0xff] }
 0x569   : > { %v3451_v32 = vpack.c.bf16 %v2423_v11, %v2421_v7  ;;  %v2433_v58 = vld [vmem:[#allocation9 + $0x1728] sm:$0xff]  ;;  %v2446_v44 = vld [vmem:[#allocation9 + $0x1790] sm:$0xff] }
 0x56a   : > { %3378 = vmatpush1.bf16.msra.mxu1 %v3377_v6  ;;  %v2139_v6 = vld [vmem:[#allocation9 + $0x13c8] sm:$0xff]  ;;  %v2450_v49 = vld [vmem:[#allocation9 + $0x17b0] sm:$0xff] }
 0x56b   : > { %3380 = vmatprep.subr.bf16.mxu1 %v3379_v14  ;;  %v2141_v14 = vld [vmem:[#allocation9 + $0x13d8] sm:$0xff]  ;;  %v2454_v63 = vld [vmem:[#allocation9 + $0x17d0] sm:$0xff]  ;;  %v2457_v0 = vld [vmem:[#allocation9 + $0x17e8] sm:$0xff] }
 0x56c   : > { %v3419_v15 = vpack.c.bf16 %v2141_v14, %v2139_v6  ;;  %v3455_v14 = vpack.c.bf16 %v2427_v13, %v2425_v5  ;;  %v2458_v7 = vld [vmem:[#allocation9 + $0x17f0] sm:$0xff]  ;;  %v2391_v11 = vld [vmem:[#allocation3] sm:$0xfc]  ;;  %v2393_v5 = vld [vmem:[#allocation3 + $0x20] sm:$0x3]  ;;  %v2465_v13 = vrot.slane %v4192_v54, 2 }
 0x56e   : > { %3382 = vmatpush1.bf16.msra.mxu1 %v3381_v17  ;;  %v2143_v17 = vld [vmem:[#allocation9 + $0x13e8] sm:$0xff] }
 0x56f   : > { %3384 = vmatprep.subr.bf16.mxu1 %v3383_v59  ;;  %v2145_v59 = vld [vmem:[#allocation9 + $0x13f8] sm:$0xff] }
 0x570   : > { %v3423_v55 = vpack.c.bf16 %v2145_v59, %v2143_v17  ;;  %v3459_v59 = vpack.c.bf16 %v2431_v31, %v2429_v16  ;;  %v2560_v16 = vld [vmem:[#allocation10 + $0x6] sm:$0x3] }
 0x571   : > { %v2565_v31 = vrot.slane %v2560_v16, %v4026_v42 }
 0x572   : > { %3386 = vmatpush1.bf16.msra.mxu1 %v3385_v61  ;;  %v2397_v61 = vld [vmem:[#allocation9 + $0x1608] sm:$0xff] }
 0x573   : > { %3388 = vmatprep.subr.bf16.mxu1 %v3387_v19  ;;  %v2399_v19 = vld [vmem:[#allocation9 + $0x1618] sm:$0xff] }
 0x574   : > { %v3427_v50 = vpack.c.bf16 %v2399_v19, %v2397_v61  ;;  %v3463_v19 = vpack.c.bf16 %v2435_v53, %v2433_v58 }
 0x576   : > { %3390 = vmatpush1.bf16.msra.mxu1 %v3389_v2  ;;  %v2401_v2 = vld [vmem:[#allocation9 + $0x1628] sm:$0xff] }
 0x577   : > { %3392 = vmatprep.subr.bf16.mxu1 %v3391_v23  ;;  %v2403_v23 = vld [vmem:[#allocation9 + $0x1638] sm:$0xff] }
 0x578   : > { %v3431_v25 = vpack.c.bf16 %v2403_v23, %v2401_v2  ;;  %v3467_v23 = vpack.c.bf16 %v2439_v22, %v2437_v8 }
 0x57a   : > { %3394 = vmatpush1.bf16.msra.mxu1 %v3393_v27  ;;  %v2402_v27 = vld [vmem:[#allocation9 + $0x1630] sm:$0xff] }
 0x57b   : > { %3396 = vmatprep.subr.bf16.mxu1 %v3395_v29  ;;  %v2405_v29 = vld [vmem:[#allocation9 + $0x1648] sm:$0xff]  ;;  %v3433_v35 = vpack.c.bf16 %v2402_v27, %v2400_v26  ;;  %v2443_v26 = vld [vmem:[#allocation9 + $0x1778] sm:$0xff] }
 0x57e   : > { %3398 = vmatpush1.bf16.msra.mxu1 %v3397_v39  ;;  %v3435_v39 = vpack.c.bf16 %v2407_v33, %v2405_v29  ;;  %v2440_v33 = vld [vmem:[#allocation9 + $0x1760] sm:$0xff] }
 0x57f   : > { %3400 = vmatprep.subr.bf16.mxu1 %v3399_v40  ;;  %v2404_v40 = vld [vmem:[#allocation9 + $0x1640] sm:$0xff] }
 0x582   : > { %3402 = vmatpush1.bf16.msra.mxu1 %v3401_v45  ;;  %v2408_v45 = vld [vmem:[#allocation9 + $0x1660] sm:$0xff] }
 0x583   : > { %3404 = vmatprep.subr.bf16.mxu1 %v3403_v46  ;;  %v2410_v46 = vld [vmem:[#allocation9 + $0x1670] sm:$0xff] }
 0x584   : > { %v3441_v48 = vpack.c.bf16 %v2410_v46, %v2408_v45  ;;  %v2448_v46 = vld [vmem:[#allocation9 + $0x17a0] sm:$0xff] }
 0x586   : > { %3406 = vmatpush1.bf16.msra.mxu1 %v3405_v52  ;;  %v2412_v52 = vld [vmem:[#allocation9 + $0x1680] sm:$0xff] }
 0x587   : > { %3408 = vmatprep.subr.bf16.mxu1 %v3407_v62  ;;  %v2414_v62 = vld [vmem:[#allocation9 + $0x1690] sm:$0xff] }
 0x588   : > { %v3445_v56 = vpack.c.bf16 %v2414_v62, %v2412_v52  ;;  %v2452_v62 = vld [vmem:[#allocation9 + $0x17c0] sm:$0xff] }
 0x58a   : > { %3410 = vmatpush1.bf16.msra.mxu1 %v3409_v1  ;;  %v2416_v1 = vld [vmem:[#allocation9 + $0x16a0] sm:$0xff] }
 0x58b   : > { %3412 = vmatprep.subr.bf16.mxu1 %v3411_v3  ;;  %v2418_v3 = vld [vmem:[#allocation9 + $0x16b0] sm:$0xff] }
 0x58c   : > { %v3449_v30 = vpack.c.bf16 %v2418_v3, %v2416_v1  ;;  %v2456_v3 = vld [vmem:[#allocation9 + $0x17e0] sm:$0xff] }
 0x58e   : > { %3414 = vmatpush1.bf16.msra.mxu1 %v3413_v10  ;;  %v2420_v10 = vld [vmem:[#allocation9 + $0x16c0] sm:$0xff] }
 0x58f   : > { %3416 = vmatprep.subr.bf16.mxu1 %v3415_v12  ;;  %v2422_v12 = vld [vmem:[#allocation9 + $0x16d0] sm:$0xff] }
 0x590   : > { %v3453_v6 = vpack.c.bf16 %v2422_v12, %v2420_v10  ;;  %v2464_v10 = vrot.slane %v2391_v11, 2 }
 0x592   : > { %3418 = vmatpush1.bf16.msra.mxu1 %v3417_v51  ;;  %v2424_v51 = vld [vmem:[#allocation9 + $0x16e0] sm:$0xff] }
 0x593   : > { %3420 = vmatprep.subr.bf16.mxu1 %v3419_v15  ;;  %v2426_v15 = vld [vmem:[#allocation9 + $0x16f0] sm:$0xff] }
 0x594   : > { %v3457_v17 = vpack.c.bf16 %v2426_v15, %v2424_v51 }
 0x596   : > { %3422 = vmatpush1.bf16.msra.mxu1 %v3421_v18  ;;  %v2428_v18 = vld [vmem:[#allocation9 + $0x1700] sm:$0xff] }
 0x597   : > { %3424 = vmatprep.subr.bf16.mxu1 %v3423_v55  ;;  %v2430_v55 = vld [vmem:[#allocation9 + $0x1710] sm:$0xff] }
 0x598   : > { %v3461_v61 = vpack.c.bf16 %v2430_v55, %v2428_v18 }
 0x59a   : > { %3426 = vmatpush1.bf16.msra.mxu1 %v3425_v20  ;;  %v2432_v20 = vld [vmem:[#allocation9 + $0x1720] sm:$0xff] }
 0x59b   : > { %3428 = vmatprep.subr.bf16.mxu1 %v3427_v50  ;;  %v2434_v50 = vld [vmem:[#allocation9 + $0x1730] sm:$0xff] }
 0x59c   : > { %v3465_v2 = vpack.c.bf16 %v2434_v50, %v2432_v20 }
 0x59d   : > { %2379 = vmatmul.mubr.f32.vlgmr.msra.gmra.mrb[6].mxu1 %v2065_v9  ;;  %v3437_v9 = vpack.c.bf16 %v2406_v41, %v2404_v40  ;;  %v3473_v40 = vpack.c.bf16 %v2442_v34, %v2440_v33 }
 0x59e   : > { %2384 = vmatprep.mubr.f32.mxu1 %v4194_v21  ;;  %3430 = vmatpush1.bf16.msra.mxu1 %v3429_v24  ;;  %v2436_v24 = vld [vmem:[#allocation9 + $0x1740] sm:$0xff] }
 0x59f   : > { %3432 = vmatprep.subr.bf16.mxu1 %v3431_v25  ;;  %v2441_v25 = vld [vmem:[#allocation9 + $0x1768] sm:$0xff]  ;;  %v3469_v27 = vpack.c.bf16 %v2438_v60, %v2436_v24 }
 0x5a0   : > { %v3471_v29 = vpack.c.bf16 %v2443_v26, %v2441_v25 }
 0x5a1   : > { %2385 = vmatmul.mubr.f32.gmra.mrb[8].mxu1 %v4192_v54 }
 0x5a2   : > { %3434 = vmatpush1.bf16.msra.mxu1 %v3433_v35  ;;  %2542 = vmatprep.mubr.f32.mxu1 %v2469_v47  ;;  %v2445_v35 = vld [vmem:[#allocation9 + $0x1788] sm:$0xff] }
 0x5a3   : > { %3436 = vmatprep.subr.bf16.mxu1 %v3435_v39  ;;  %v2447_v39 = vld [vmem:[#allocation9 + $0x1798] sm:$0xff]  ;;  %v2449_v47 = vld [vmem:[#allocation9 + $0x17a8] sm:$0xff] }
 0x5a4   : > { %v3475_v41 = vpack.c.bf16 %v2447_v39, %v2445_v35 }
 0x5a6   : > { %3438 = vmatpush1.bf16.msra.mxu1 %v3437_v9  ;;  %v2451_v9 = vld [vmem:[#allocation9 + $0x17b8] sm:$0xff] }
 0x5a7   : > { %3440 = vmatprep.subr.bf16.mxu1 %v3439_v37  ;;  %v3477_v37 = vpack.c.bf16 %v2446_v44, %v2444_v4  ;;  %v3479_v45 = vpack.c.bf16 %v2451_v9, %v2449_v47 }
 0x5aa   : > { %3442 = vmatpush1.bf16.msra.mxu1 %v3441_v48  ;;  %v2455_v48 = vld [vmem:[#allocation9 + $0x17d8] sm:$0xff] }
 0x5ab   : > { %3444 = vmatprep.subr.bf16.mxu1 %v3443_v28  ;;  %v3481_v28 = vpack.c.bf16 %v2450_v49, %v2448_v46  ;;  %v3483_v52 = vpack.c.bf16 %v2455_v48, %v2453_v38 }
 0x5ae   : > { %3446 = vmatpush1.bf16.msra.mxu1 %v3445_v56  ;;  %v2459_v56 = vld [vmem:[#allocation9 + $0x17f8] sm:$0xff] }
 0x5af   : > { %3448 = vmatprep.subr.bf16.mxu1 %v3447_v57  ;;  %v3485_v57 = vpack.c.bf16 %v2454_v63, %v2452_v62  ;;  %v3487_v1 = vpack.c.bf16 %v2459_v56, %v2457_v0 }
 0x5b2   : > { %3450 = vmatpush1.bf16.msra.mxu1 %v3449_v30  ;;  %v3489_v30 = vpack.c.bf16 %v2458_v7, %v2456_v3 }
 0x5b3   : > { %3452 = vmatprep.subr.bf16.mxu1 %v3451_v32  ;;  %v2394_v32 = vld [vmem:[#allocation3 + $0x28] sm:$0x3] }
 0x5b4   : > { %v2472_v12 = vrot.slane %v2394_v32, 2 }
 0x5b6   : > { %3454 = vmatpush1.bf16.msra.mxu1 %v3453_v6  ;;  %v2466_v6 = vsel %vm411_vm1, %v2464_v10, %v2465_v13  ;;  %v2473_v51 = vsel %vm411_vm1, %v2468_v36, %v2472_v12 }
 0x5b7   : > { %3456 = vmatprep.subr.bf16.mxu1 %v3455_v14  ;;  %v2470_v14 = vrot.slane %v2393_v5, 2 }
 0x5b9   : > { %v2471_v15 = vsel %vm411_vm1, %v2465_v13, %v2470_v14 }
 0x5ba   : > { %3458 = vmatpush1.bf16.msra.mxu1 %v3457_v17  ;;  %v2569_v17 = vrot.slane %v2560_v16, %v4028_v43 }
 0x5bb   : > { %3460 = vmatprep.subr.bf16.mxu1 %v3459_v59 }
 0x5be   : > { %3462 = vmatpush1.bf16.msra.mxu1 %v3461_v61 }
 0x5bf   : > { %3464 = vmatprep.subr.bf16.mxu1 %v3463_v19 }
 0x5c2   : > { %3466 = vmatpush1.bf16.msra.mxu1 %v3465_v2 }
 0x5c3   : > { %3468 = vmatprep.subr.bf16.mxu1 %v3467_v23 }
 0x5c6   : > { %3470 = vmatpush1.bf16.msra.mxu1 %v3469_v27 }
 0x5c7   : > { %3472 = vmatprep.subr.bf16.mxu1 %v3471_v29 }
 0x5ca   : > { %3474 = vmatpush1.bf16.msra.mxu1 %v3473_v40 }
 0x5cb   : > { %3476 = vmatprep.subr.bf16.mxu1 %v3475_v41 }
 0x5ce   : > { %3478 = vmatpush1.bf16.msra.mxu1 %v3477_v37 }
 0x5cf   : > { %3480 = vmatprep.subr.bf16.mxu1 %v3479_v45 }
 0x5d2   : > { %3482 = vmatpush1.bf16.msra.mxu1 %v3481_v28 }
 0x5d3   : > { %3484 = vmatprep.subr.bf16.mxu1 %v3483_v52 }
 0x5d6   : > { %3486 = vmatpush1.bf16.msra.mxu1 %v3485_v57 }
 0x5d7   : > { %3488 = vmatprep.subr.bf16.mxu1 %v3487_v1 }
 0x5da   : > { %3490 = vmatpush1.bf16.msra.mxu1 %v3489_v30 }
 0x5dd   : > { %2543 = vmatmul.mubr.f32.vlgmr.msra.gmra.mrb[6].mxu1 %v2466_v6 }
 0x5de   : > { %2548 = vmatprep.mubr.f32.mxu1 %v2473_v51 }
 0x5e1   : > { %2549 = vmatmul.mubr.f32.gmra.mrb[8].mxu1 %v2471_v15 }
 0x6b0   : > { %v2544_v54 = vpop.f32.mrb[6].mxu1 }
 0x6b1   : > { %v2572_v59 = vadd.f32 %v2565_v31, %v2544_v54  ;;  %v2546_v18 = vpop.f32.mrb[7].mxu1 }
 0x6b2   : > { %v2573_v55 = vadd.f32 %v2569_v17, %v2546_v18 }
 0x6b3   : > { %v2576_v58 = vmax.f32 %v2572_v59, 0.0 }
 0x6b4   : > { %v2577_v21 = vmax.f32 %v2573_v55, 0.0  ;;  %v2550_v36 = vpop.f32.mrb[8].mxu1 }
 0x6b5   : > { %2580 = vst [vmem:[%s272_s15] sm:$0xff] %v2576_v58  ;;  %v2574_v53 = vadd.f32 %v2565_v31, %v2550_v36  ;;  %v2552_v61 = vpop.f32.mrb[9].mxu1 }
 0x6b6   : > { %2581 = vst [vmem:[%s272_s15 + $0x8] sm:$0xff] %v2577_v21  ;;  %v2575_v19 = vadd.f32 %v2569_v17, %v2552_v61 }
 0x6b7   : > { %v2578_v42 = vmax.f32 %v2574_v53, 0.0 }
 0x6b8   : > { %v2579_v43 = vmax.f32 %v2575_v19, 0.0 }
 0x6b9   : > { %2582 = vst [vmem:[%s272_s15 + $0x10] sm:$0xff] %v2578_v42 }
 0x6ba   : > { %2583 = vst [vmem:[%s272_s15 + $0x18] sm:$0xff] %v2579_v43 }
 0x6bb   : > { %3749 = shalt.err (!%p3746_p1)
}
 0x6bc   : > { %s3750_s30 = scalar_lea.hbm %s4225_s12, 512  ;;  %s3754_s8 = scalar_lea.hbm %s4273_s5, 1024 }
 0x6bd   : > { %p3751_p0 = scmp.ne.s32.totalorder %s4225_s12, %s3750_s30  ;;  %p3755_p9 = scmp.lt.u32.totalorder %s4225_s12, %s4273_s5 }
 0x6be   : > { %p3756_p12 = scmp.lt.u32.totalorder %s3754_s8, %s3750_s30  ;;  %p3758_p2 = scmp.lt.u32.totalorder %s3750_s30, %s4225_s12 }
 0x6bf   : > { %p3752_p6 = pnand %p3751_p0, %p4291_p3 }
 0x6c0   : > { %p3757_p10 = por %p3756_p12, %p3755_p9 }
 0x6c1   : > { %p3753_p5 = pneg %p3752_p6 }
 0x6c2   : > { %p3759_p4 = por %p3758_p2, %p3757_p10 }
 0x6c4   : > { %p3760_p7 = pnand %p3759_p4, %p3753_p5 }
 0x6c6   : > { %3763 = shalt.err (!%p3760_p7)
}
 0x6c7   : > { %s3822_s14 = smov 256   ;;  %s3823_s15 = smov 16  }
 0x6c8   : > { %3551 = dma.vmem_to_hbm [thread:$0]  (%p4291_p3), %s4220_s16, 512, %s4225_s12, %s4227_s26, %s3822_s14, %s3822_s14, %s3823_s15  }
 0x6c9 PF: > { %p3578_p8 = scmp.ge.s32.totalorder %s3810_s21, 2  ;;  %s2613_s17 = sand.u32 1, %s3798_s18  }
 0x6ca   : > { %p4292_p11 = scmp.ne.s32.totalorder %s4279_s29, 0  ;;  %s2614_s25 = scalar_lea.sflag [#allocation6], %s2613_s17 }
 0x6cc   : > { %p3567_p13 = pnand %p3578_p8, %p4292_p11 }
 0x6ce   : > { %3793 = dma.done.wait (!%p3567_p13), %s2614_s25, 512  }
 0x6cf   : > { %3795 = vsyncadd (!%p3567_p13), %s2614_s25, 4294966784  ;;  %p18_p1 = scmp.ge.s32.totalorder %s3879_s24, 4   ;;  %s4293_s18 = smov %s3802_s19 }
 0x6d0   : > { %s4294_s19 = smov %s3806_s20  ;;  %s4295_s20 = smov %s3890_s27 }
 0x6d1   : > { %s4296_s21 = smov %s3879_s24  ;;  %20 = sbr.rel (!%p18_p1) target bundleno = 8 (0x8), region = 108 }
 0x6d8   :  { %2619 = vsyncpa [#allocation5], 1 }
 0x6d9   :  { %2621 = vsyncpa [#allocation5 + $0x1], 1 }
 0x6da   :  { %2622 = vsyncpa [#allocation8], 1 }
 0x6db   :  { %2623 = vsyncpa [#allocation11], 1 }
 0x6dc   :  { %2624 = vsyncpa [#allocation6], 1 }
 0x6dd   :  { %2626 = vsyncpa [#allocation6 + $0x1], 1 }

</bundles_post_ra>
